<compile_context>
chip_gen: v5e
topology: v5e:2x2
jax: 0.10.0
libtpu: 0.0.40
codegen_flags: <defaults>
</compile_context>

<pallas_src>
import functools

import numpy as np

import jax
import jax.numpy as jnp
from jax.experimental import pallas as pl
from jax.experimental.pallas import tpu as pltpu


# ----------------------------------------------------------------------------
# Pallas kernel: fused conv3x3 + bias + ReLU + conv3x3 + bias + scale + residual
# ----------------------------------------------------------------------------
def _resblock_kernel(xw_ref, mask_ref, w1_ref, b1_ref, w2_ref, b2_ref, o_ref,
                     *, wp, l1, res_scale):
    # xw_ref  : [1, 1, L0, Cp]  f32   flattened (rows*cols) input window w/ halo
    # mask_ref: [1, L1, 1]      f32   1.0 where the intermediate map is valid
    # w*_ref  : [9, Cp, Cp]     bf16  per-tap [Cin, Cout] matrices
    # b*_ref  : [1, Cp]         f32
    # o_ref   : [1, 1, TH*Wp, Cp] f32 flattened output tile (padded cols kept)
    x_flat = xw_ref[0, 0]                        # [L0, Cp] f32
    x_bf = x_flat.astype(jnp.bfloat16)           # MXU operand
    cp = x_flat.shape[1]
    m2 = o_ref.shape[2]                          # TH * Wp

    # ---- conv1: 9 shifted matmuls over the (TH+2, Wp) extended window ------
    acc1 = jnp.zeros((l1, cp), jnp.float32)
    for dy in range(3):
        for dx in range(3):
            s = dy * wp + dx
            acc1 = acc1 + jnp.dot(x_bf[s:s + l1, :], w1_ref[dy * 3 + dx],
                                  preferred_element_type=jnp.float32)
    acc1 = jnp.maximum(acc1 + b1_ref[...], 0.0)          # bias + ReLU (f32)
    # Zero out positions that correspond to conv2's zero padding (and the
    # flat-layout tail), then drop to bf16 for the second MXU pass.
    mid = (acc1 * mask_ref[0]).astype(jnp.bfloat16)       # [L1, Cp]

    # ---- conv2: 9 shifted matmuls over the (TH, Wp) output rows ------------
    acc2 = jnp.zeros((m2, cp), jnp.float32)
    for dy in range(3):
        for dx in range(3):
            s = dy * wp + dx
            acc2 = acc2 + jnp.dot(mid[s:s + m2, :], w2_ref[dy * 3 + dx],
                                  preferred_element_type=jnp.float32)
    acc2 = acc2 + b2_ref[...]

    # ---- residual (exact, f32 input tile) ----------------------------------
    x_res = x_flat[2 * wp + 2: 2 * wp + 2 + m2, :]
    o_ref[0, 0] = (acc2 * res_scale + x_res).astype(o_ref.dtype)


# ----------------------------------------------------------------------------
# Wrapper
# ----------------------------------------------------------------------------
def _pick_tile_h(H, Wp, Cp, budget_bytes=6 * 1024 * 1024):
    """Largest row-tile dividing H whose per-step VMEM footprint fits budget."""
    best = 1
    for th in range(1, H + 1):
        if H % th:
            continue
        l0 = (th + 4) * Wp + 16
        l1 = (th + 2) * Wp + 8
        per_step = (2 * l0 + 2 * th * Wp + 3 * l1) * Cp * 4
        if per_step <= budget_bytes:
            best = th
    return best


def resblock_forward(x, params, *, res_scale=1.0, tile_h=None):
    """ResBlock forward, NCHW in / NCHW out (PyTorch semantics, k=3, pad=1)."""
    N, C, H, W = x.shape
    w1, b1, w2, b2 = params["w1"], params["b1"], params["w2"], params["b2"]

    Cp = ((C + 127) // 128) * 128          # lane-dense channel padding
    Wp = W + 4                             # 2-px spatial pad (halo for 2 convs)
    if tile_h is None:
        tile_h = _pick_tile_h(H, Wp, Cp)
    assert H % tile_h == 0, "tile_h must divide H"
    TH = tile_h
    nT = H // TH
    P0, P1 = 16, 8                         # flat tail padding (P0 >= P1 + 2)
    L0 = (TH + 4) * Wp + P0                # input window rows (flattened)
    L1 = (TH + 2) * Wp + P1                # intermediate rows (flattened)
    M2 = TH * Wp                           # output rows (flattened, padded cols)

    # ---- layout plumbing (cheap XLA glue, only at module boundary) ---------
    x_nhwc = jnp.transpose(x, (0, 2, 3, 1)).astype(jnp.float32)
    x_nhwc = jnp.pad(x_nhwc, ((0, 0), (2, 2), (2, 2), (0, Cp - C)))  # [N,H+4,Wp,Cp]

    wins = [
        jax.lax.slice_in_dim(x_nhwc, t * TH, t * TH + TH + 4, axis=1)
           .reshape(N, (TH + 4) * Wp, Cp)
        for t in range(nT)
    ]
    xw = jnp.stack(wins, axis=1)                                   # [N,nT,(TH+4)*Wp,Cp]
    xw = jnp.pad(xw, ((0, 0), (0, 0), (0, P0), (0, 0)))            # [N,nT,L0,Cp]

    # conv weights -> per-tap [Cin, Cout] matrices (bf16 for the MXU)
    def prep_w(w):
        wt = jnp.transpose(w, (2, 3, 1, 0))                        # [3,3,Cin,Cout]
        wt = jnp.pad(wt, ((0, 0), (0, 0), (0, Cp - C), (0, Cp - C)))
        return wt.reshape(9, Cp, Cp).astype(jnp.bfloat16)

    def prep_b(b):
        return jnp.pad(b.astype(jnp.float32), (0, Cp - C)).reshape(1, Cp)

    w1m, w2m, b1m, b2m = prep_w(w1), prep_w(w2), prep_b(b1), prep_b(b2)

    # per-tile validity mask for the intermediate map (encodes conv2's zero pad)
    a = np.arange(TH + 2)[:, None]
    b = np.arange(Wp)[None, :]
    col_ok = (b >= 1) & (b <= W)
    mask_np = np.zeros((nT, L1, 1), np.float32)
    for t in range(nT):
        r = t * TH - 1 + a
        m = ((r >= 0) & (r < H) & col_ok).astype(np.float32)
        mask_np[t, :(TH + 2) * Wp, 0] = m.reshape(-1)
    mask = jnp.asarray(mask_np)

    kern = functools.partial(_resblock_kernel, wp=Wp, l1=L1,
                             res_scale=float(res_scale))

    out_flat = pl.pallas_call(
        kern,
        out_shape=jax.ShapeDtypeStruct((N, nT, M2, Cp), jnp.float32),
        grid=(N, nT),
        in_specs=[
            pl.BlockSpec((1, 1, L0, Cp), lambda n, t: (n, t, 0, 0)),  # x windows
            pl.BlockSpec((1, L1, 1), lambda n, t: (t, 0, 0)),         # mask
            pl.BlockSpec((9, Cp, Cp), lambda n, t: (0, 0, 0)),        # w1 (resident)
            pl.BlockSpec((1, Cp), lambda n, t: (0, 0)),               # b1
            pl.BlockSpec((9, Cp, Cp), lambda n, t: (0, 0, 0)),        # w2 (resident)
            pl.BlockSpec((1, Cp), lambda n, t: (0, 0)),               # b2
        ],
        out_specs=pl.BlockSpec((1, 1, M2, Cp), lambda n, t: (n, t, 0, 0)),
        compiler_params=pltpu.CompilerParams(
            dimension_semantics=("parallel", "parallel"),
            vmem_limit_bytes=32 * 1024 * 1024,
        ),
    )(xw, mask, w1m, b1m, w2m, b2m)

    # strip column / channel padding and go back to NCHW at the boundary
    out = out_flat.reshape(N, nT, TH, Wp, Cp)[:, :, :, :W, :C]
    out = out.reshape(N, H, W, C)
    return jnp.transpose(out, (0, 3, 1, 2))


# ----------------------------------------------------------------------------
# Plain-JAX reference (same bf16-operand / f32-accumulate policy as the kernel)
# ----------------------------------------------------------------------------
def _ref_resblock(x, params, res_scale):
    dn = jax.lax.conv_dimension_numbers(x.shape, params["w1"].shape,
                                        ("NCHW", "OIHW", "NCHW"))

    def conv(inp, w):
        return jax.lax.conv_general_dilated(
            inp.astype(jnp.bfloat16), w.astype(jnp.bfloat16),
            window_strides=(1, 1), padding=((1, 1), (1, 1)),
            dimension_numbers=dn, preferred_element_type=jnp.float32)

    y = conv(x, params["w1"]) + params["b1"][None, :, None, None]
    y = jnp.maximum(y, 0.0)
    y = conv(y, params["w2"]) + params["b2"][None, :, None, None]
    return y * res_scale + x


# ----------------------------------------------------------------------------
# Main
# ----------------------------------------------------------------------------
if __name__ == "__main__":
    n_feat = 4
    N, H, W = 2, 16, 16
    res_scale = 1.0

    key = jax.random.PRNGKey(0)
    kx, k1, kb1, k2, kb2 = jax.random.split(key, 5)
    x = jax.random.normal(kx, (N, n_feat, H, W), dtype=jnp.float32)
    params = {
        "w1": 0.1 * jax.random.normal(k1, (n_feat, n_feat, 3, 3), jnp.float32),
        "b1": 0.05 * jax.random.normal(kb1, (n_feat,), jnp.float32),
        "w2": 0.1 * jax.random.normal(k2, (n_feat, n_feat, 3, 3), jnp.float32),
        "b2": 0.05 * jax.random.normal(kb2, (n_feat,), jnp.float32),
    }

    fwd = jax.jit(functools.partial(resblock_forward,
                                    res_scale=res_scale, tile_h=8))
    out = fwd(x, params)
    jax.block_until_ready(out)

    ref = _ref_resblock(x, params, res_scale)
    np.testing.assert_allclose(np.asarray(out), np.asarray(ref),
                               rtol=2e-3, atol=2e-3)

    assert out.shape == (N, n_feat, H, W) and out.dtype == jnp.float32
    print("KERNEL_OK")
</pallas_src>

<mosaic_0001>
module attributes {stable_mosaic.version = 11 : i64} {
  func.func @_resblock_kernel(%arg0: i32, %arg1: i32, %arg2: memref<1x1x256x128xf32, #tpu.memory_space<vmem>>, %arg3: memref<1x208x1xf32, #tpu.memory_space<vmem>>, %arg4: memref<9x128x128xbf16, #tpu.memory_space<vmem>>, %arg5: memref<1x128xf32, #tpu.memory_space<vmem>>, %arg6: memref<9x128x128xbf16, #tpu.memory_space<vmem>>, %arg7: memref<1x128xf32, #tpu.memory_space<vmem>>, %arg8: memref<1x1x160x128xf32, #tpu.memory_space<vmem>>) attributes {dimension_semantics = [#tpu.dimension_semantics<parallel>, #tpu.dimension_semantics<parallel>], iteration_bounds = array<i64: 2, 2>, scalar_prefetch = 0 : i64, scratch_operands = 0 : i64, tpu.core_type = #tpu.core_type<tc>, window_params = [{transform_indices = @transform_0, window_bounds = array<i64: 1, 1, 256, 128>}, {transform_indices = @transform_1, window_bounds = array<i64: 1, 208, 1>}, {pipeline_mode = #tpu.pipeline_mode<synchronous>, transform_indices = @transform_2, window_bounds = array<i64: 9, 128, 128>}, {pipeline_mode = #tpu.pipeline_mode<synchronous>, transform_indices = @transform_3, window_bounds = array<i64: 1, 128>}, {pipeline_mode = #tpu.pipeline_mode<synchronous>, transform_indices = @transform_4, window_bounds = array<i64: 9, 128, 128>}, {pipeline_mode = #tpu.pipeline_mode<synchronous>, transform_indices = @transform_5, window_bounds = array<i64: 1, 128>}, {transform_indices = @transform_6, window_bounds = array<i64: 1, 1, 160, 128>}]} {
    %c0 = arith.constant 0 : index
    %c0_0 = arith.constant 0 : index
    %c0_1 = arith.constant 0 : index
    %c0_2 = arith.constant 0 : index
    %0 = vector.load %arg2[%c0, %c0_0, %c0_1, %c0_2] : memref<1x1x256x128xf32, #tpu.memory_space<vmem>>, vector<1x1x256x128xf32>
    %1 = vector.shape_cast %0 : vector<1x1x256x128xf32> to vector<256x128xf32>
    %2 = arith.truncf %1 : vector<256x128xf32> to vector<256x128xbf16>
    %cst = arith.constant 0.000000e+00 : f32
    %3 = vector.broadcast %cst : f32 to vector<208x128xf32>
    %4 = vector.extract_strided_slice %2 {offsets = [0, 0], sizes = [208, 128], strides = [1, 1]} : vector<256x128xbf16> to vector<208x128xbf16>
    %c0_3 = arith.constant 0 : index
    %c0_4 = arith.constant 0 : index
    %c0_5 = arith.constant 0 : index
    %5 = vector.load %arg4[%c0_3, %c0_4, %c0_5] : memref<9x128x128xbf16, #tpu.memory_space<vmem>>, vector<1x128x128xbf16>
    %6 = vector.shape_cast %5 : vector<1x128x128xbf16> to vector<128x128xbf16>
    %cst_6 = arith.constant dense<0.000000e+00> : vector<208x128xf32>
    %7 = tpu.matmul %4, %6, %cst_6 {dimension_numbers = #tpu.dot_dimension_numbers<[1], [0], [0], [1], [0, 0, 1, 1], [], []>} : vector<208x128xbf16>, vector<128x128xbf16>, vector<208x128xf32> -> vector<208x128xf32>
    %8 = arith.addf %3, %7 : vector<208x128xf32>
    %9 = vector.extract_strided_slice %2 {offsets = [1, 0], sizes = [208, 128], strides = [1, 1]} : vector<256x128xbf16> to vector<208x128xbf16>
    %c1 = arith.constant 1 : index
    %c0_7 = arith.constant 0 : index
    %c0_8 = arith.constant 0 : index
    %10 = vector.load %arg4[%c1, %c0_7, %c0_8] : memref<9x128x128xbf16, #tpu.memory_space<vmem>>, vector<1x128x128xbf16>
    %11 = vector.shape_cast %10 : vector<1x128x128xbf16> to vector<128x128xbf16>
    %cst_9 = arith.constant dense<0.000000e+00> : vector<208x128xf32>
    %12 = tpu.matmul %9, %11, %cst_9 {dimension_numbers = #tpu.dot_dimension_numbers<[1], [0], [0], [1], [0, 0, 1, 1], [], []>} : vector<208x128xbf16>, vector<128x128xbf16>, vector<208x128xf32> -> vector<208x128xf32>
    %13 = arith.addf %8, %12 : vector<208x128xf32>
    %14 = vector.extract_strided_slice %2 {offsets = [2, 0], sizes = [208, 128], strides = [1, 1]} : vector<256x128xbf16> to vector<208x128xbf16>
    %c2 = arith.constant 2 : index
    %c0_10 = arith.constant 0 : index
    %c0_11 = arith.constant 0 : index
    %15 = vector.load %arg4[%c2, %c0_10, %c0_11] : memref<9x128x128xbf16, #tpu.memory_space<vmem>>, vector<1x128x128xbf16>
    %16 = vector.shape_cast %15 : vector<1x128x128xbf16> to vector<128x128xbf16>
    %cst_12 = arith.constant dense<0.000000e+00> : vector<208x128xf32>
    %17 = tpu.matmul %14, %16, %cst_12 {dimension_numbers = #tpu.dot_dimension_numbers<[1], [0], [0], [1], [0, 0, 1, 1], [], []>} : vector<208x128xbf16>, vector<128x128xbf16>, vector<208x128xf32> -> vector<208x128xf32>
    %18 = arith.addf %13, %17 : vector<208x128xf32>
    %19 = vector.extract_strided_slice %2 {offsets = [20, 0], sizes = [208, 128], strides = [1, 1]} : vector<256x128xbf16> to vector<208x128xbf16>
    %c3 = arith.constant 3 : index
    %c0_13 = arith.constant 0 : index
    %c0_14 = arith.constant 0 : index
    %20 = vector.load %arg4[%c3, %c0_13, %c0_14] : memref<9x128x128xbf16, #tpu.memory_space<vmem>>, vector<1x128x128xbf16>
    %21 = vector.shape_cast %20 : vector<1x128x128xbf16> to vector<128x128xbf16>
    %cst_15 = arith.constant dense<0.000000e+00> : vector<208x128xf32>
    %22 = tpu.matmul %19, %21, %cst_15 {dimension_numbers = #tpu.dot_dimension_numbers<[1], [0], [0], [1], [0, 0, 1, 1], [], []>} : vector<208x128xbf16>, vector<128x128xbf16>, vector<208x128xf32> -> vector<208x128xf32>
    %23 = arith.addf %18, %22 : vector<208x128xf32>
    %24 = vector.extract_strided_slice %2 {offsets = [21, 0], sizes = [208, 128], strides = [1, 1]} : vector<256x128xbf16> to vector<208x128xbf16>
    %c4 = arith.constant 4 : index
    %c0_16 = arith.constant 0 : index
    %c0_17 = arith.constant 0 : index
    %25 = vector.load %arg4[%c4, %c0_16, %c0_17] : memref<9x128x128xbf16, #tpu.memory_space<vmem>>, vector<1x128x128xbf16>
    %26 = vector.shape_cast %25 : vector<1x128x128xbf16> to vector<128x128xbf16>
    %cst_18 = arith.constant dense<0.000000e+00> : vector<208x128xf32>
    %27 = tpu.matmul %24, %26, %cst_18 {dimension_numbers = #tpu.dot_dimension_numbers<[1], [0], [0], [1], [0, 0, 1, 1], [], []>} : vector<208x128xbf16>, vector<128x128xbf16>, vector<208x128xf32> -> vector<208x128xf32>
    %28 = arith.addf %23, %27 : vector<208x128xf32>
    %29 = vector.extract_strided_slice %2 {offsets = [22, 0], sizes = [208, 128], strides = [1, 1]} : vector<256x128xbf16> to vector<208x128xbf16>
    %c5 = arith.constant 5 : index
    %c0_19 = arith.constant 0 : index
    %c0_20 = arith.constant 0 : index
    %30 = vector.load %arg4[%c5, %c0_19, %c0_20] : memref<9x128x128xbf16, #tpu.memory_space<vmem>>, vector<1x128x128xbf16>
    %31 = vector.shape_cast %30 : vector<1x128x128xbf16> to vector<128x128xbf16>
    %cst_21 = arith.constant dense<0.000000e+00> : vector<208x128xf32>
    %32 = tpu.matmul %29, %31, %cst_21 {dimension_numbers = #tpu.dot_dimension_numbers<[1], [0], [0], [1], [0, 0, 1, 1], [], []>} : vector<208x128xbf16>, vector<128x128xbf16>, vector<208x128xf32> -> vector<208x128xf32>
    %33 = arith.addf %28, %32 : vector<208x128xf32>
    %34 = vector.extract_strided_slice %2 {offsets = [40, 0], sizes = [208, 128], strides = [1, 1]} : vector<256x128xbf16> to vector<208x128xbf16>
    %c6 = arith.constant 6 : index
    %c0_22 = arith.constant 0 : index
    %c0_23 = arith.constant 0 : index
    %35 = vector.load %arg4[%c6, %c0_22, %c0_23] : memref<9x128x128xbf16, #tpu.memory_space<vmem>>, vector<1x128x128xbf16>
    %36 = vector.shape_cast %35 : vector<1x128x128xbf16> to vector<128x128xbf16>
    %cst_24 = arith.constant dense<0.000000e+00> : vector<208x128xf32>
    %37 = tpu.matmul %34, %36, %cst_24 {dimension_numbers = #tpu.dot_dimension_numbers<[1], [0], [0], [1], [0, 0, 1, 1], [], []>} : vector<208x128xbf16>, vector<128x128xbf16>, vector<208x128xf32> -> vector<208x128xf32>
    %38 = arith.addf %33, %37 : vector<208x128xf32>
    %39 = vector.extract_strided_slice %2 {offsets = [41, 0], sizes = [208, 128], strides = [1, 1]} : vector<256x128xbf16> to vector<208x128xbf16>
    %c7 = arith.constant 7 : index
    %c0_25 = arith.constant 0 : index
    %c0_26 = arith.constant 0 : index
    %40 = vector.load %arg4[%c7, %c0_25, %c0_26] : memref<9x128x128xbf16, #tpu.memory_space<vmem>>, vector<1x128x128xbf16>
    %41 = vector.shape_cast %40 : vector<1x128x128xbf16> to vector<128x128xbf16>
    %cst_27 = arith.constant dense<0.000000e+00> : vector<208x128xf32>
    %42 = tpu.matmul %39, %41, %cst_27 {dimension_numbers = #tpu.dot_dimension_numbers<[1], [0], [0], [1], [0, 0, 1, 1], [], []>} : vector<208x128xbf16>, vector<128x128xbf16>, vector<208x128xf32> -> vector<208x128xf32>
    %43 = arith.addf %38, %42 : vector<208x128xf32>
    %44 = vector.extract_strided_slice %2 {offsets = [42, 0], sizes = [208, 128], strides = [1, 1]} : vector<256x128xbf16> to vector<208x128xbf16>
    %c8 = arith.constant 8 : index
    %c0_28 = arith.constant 0 : index
    %c0_29 = arith.constant 0 : index
    %45 = vector.load %arg4[%c8, %c0_28, %c0_29] : memref<9x128x128xbf16, #tpu.memory_space<vmem>>, vector<1x128x128xbf16>
    %46 = vector.shape_cast %45 : vector<1x128x128xbf16> to vector<128x128xbf16>
    %cst_30 = arith.constant dense<0.000000e+00> : vector<208x128xf32>
    %47 = tpu.matmul %44, %46, %cst_30 {dimension_numbers = #tpu.dot_dimension_numbers<[1], [0], [0], [1], [0, 0, 1, 1], [], []>} : vector<208x128xbf16>, vector<128x128xbf16>, vector<208x128xf32> -> vector<208x128xf32>
    %48 = arith.addf %43, %47 : vector<208x128xf32>
    %c0_31 = arith.constant 0 : index
    %c0_32 = arith.constant 0 : index
    %49 = vector.load %arg5[%c0_31, %c0_32] : memref<1x128xf32, #tpu.memory_space<vmem>>, vector<1x128xf32>
    %50 = vector.broadcast %49 : vector<1x128xf32> to vector<208x128xf32>
    %51 = arith.addf %48, %50 : vector<208x128xf32>
    %cst_33 = arith.constant 0.000000e+00 : f32
    %52 = vector.broadcast %cst_33 : f32 to vector<208x128xf32>
    %53 = arith.maximumf %51, %52 : vector<208x128xf32>
    %c0_34 = arith.constant 0 : index
    %c0_35 = arith.constant 0 : index
    %c0_36 = arith.constant 0 : index
    %54 = vector.load %arg3[%c0_34, %c0_35, %c0_36] : memref<1x208x1xf32, #tpu.memory_space<vmem>>, vector<1x208x1xf32>
    %55 = vector.shape_cast %54 : vector<1x208x1xf32> to vector<208x1xf32>
    %56 = vector.broadcast %55 : vector<208x1xf32> to vector<208x128xf32>
    %57 = arith.mulf %53, %56 : vector<208x128xf32>
    %58 = arith.truncf %57 : vector<208x128xf32> to vector<208x128xbf16>
    %cst_37 = arith.constant 0.000000e+00 : f32
    %59 = vector.broadcast %cst_37 : f32 to vector<160x128xf32>
    %60 = vector.extract_strided_slice %58 {offsets = [0, 0], sizes = [160, 128], strides = [1, 1]} : vector<208x128xbf16> to vector<160x128xbf16>
    %c0_38 = arith.constant 0 : index
    %c0_39 = arith.constant 0 : index
    %c0_40 = arith.constant 0 : index
    %61 = vector.load %arg6[%c0_38, %c0_39, %c0_40] : memref<9x128x128xbf16, #tpu.memory_space<vmem>>, vector<1x128x128xbf16>
    %62 = vector.shape_cast %61 : vector<1x128x128xbf16> to vector<128x128xbf16>
    %cst_41 = arith.constant dense<0.000000e+00> : vector<160x128xf32>
    %63 = tpu.matmul %60, %62, %cst_41 {dimension_numbers = #tpu.dot_dimension_numbers<[1], [0], [0], [1], [0, 0, 1, 1], [], []>} : vector<160x128xbf16>, vector<128x128xbf16>, vector<160x128xf32> -> vector<160x128xf32>
    %64 = arith.addf %59, %63 : vector<160x128xf32>
    %65 = vector.extract_strided_slice %58 {offsets = [1, 0], sizes = [160, 128], strides = [1, 1]} : vector<208x128xbf16> to vector<160x128xbf16>
    %c1_42 = arith.constant 1 : index
    %c0_43 = arith.constant 0 : index
    %c0_44 = arith.constant 0 : index
    %66 = vector.load %arg6[%c1_42, %c0_43, %c0_44] : memref<9x128x128xbf16, #tpu.memory_space<vmem>>, vector<1x128x128xbf16>
    %67 = vector.shape_cast %66 : vector<1x128x128xbf16> to vector<128x128xbf16>
    %cst_45 = arith.constant dense<0.000000e+00> : vector<160x128xf32>
    %68 = tpu.matmul %65, %67, %cst_45 {dimension_numbers = #tpu.dot_dimension_numbers<[1], [0], [0], [1], [0, 0, 1, 1], [], []>} : vector<160x128xbf16>, vector<128x128xbf16>, vector<160x128xf32> -> vector<160x128xf32>
    %69 = arith.addf %64, %68 : vector<160x128xf32>
    %70 = vector.extract_strided_slice %58 {offsets = [2, 0], sizes = [160, 128], strides = [1, 1]} : vector<208x128xbf16> to vector<160x128xbf16>
    %c2_46 = arith.constant 2 : index
    %c0_47 = arith.constant 0 : index
    %c0_48 = arith.constant 0 : index
    %71 = vector.load %arg6[%c2_46, %c0_47, %c0_48] : memref<9x128x128xbf16, #tpu.memory_space<vmem>>, vector<1x128x128xbf16>
    %72 = vector.shape_cast %71 : vector<1x128x128xbf16> to vector<128x128xbf16>
    %cst_49 = arith.constant dense<0.000000e+00> : vector<160x128xf32>
    %73 = tpu.matmul %70, %72, %cst_49 {dimension_numbers = #tpu.dot_dimension_numbers<[1], [0], [0], [1], [0, 0, 1, 1], [], []>} : vector<160x128xbf16>, vector<128x128xbf16>, vector<160x128xf32> -> vector<160x128xf32>
    %74 = arith.addf %69, %73 : vector<160x128xf32>
    %75 = vector.extract_strided_slice %58 {offsets = [20, 0], sizes = [160, 128], strides = [1, 1]} : vector<208x128xbf16> to vector<160x128xbf16>
    %c3_50 = arith.constant 3 : index
    %c0_51 = arith.constant 0 : index
    %c0_52 = arith.constant 0 : index
    %76 = vector.load %arg6[%c3_50, %c0_51, %c0_52] : memref<9x128x128xbf16, #tpu.memory_space<vmem>>, vector<1x128x128xbf16>
    %77 = vector.shape_cast %76 : vector<1x128x128xbf16> to vector<128x128xbf16>
    %cst_53 = arith.constant dense<0.000000e+00> : vector<160x128xf32>
    %78 = tpu.matmul %75, %77, %cst_53 {dimension_numbers = #tpu.dot_dimension_numbers<[1], [0], [0], [1], [0, 0, 1, 1], [], []>} : vector<160x128xbf16>, vector<128x128xbf16>, vector<160x128xf32> -> vector<160x128xf32>
    %79 = arith.addf %74, %78 : vector<160x128xf32>
    %80 = vector.extract_strided_slice %58 {offsets = [21, 0], sizes = [160, 128], strides = [1, 1]} : vector<208x128xbf16> to vector<160x128xbf16>
    %c4_54 = arith.constant 4 : index
    %c0_55 = arith.constant 0 : index
    %c0_56 = arith.constant 0 : index
    %81 = vector.load %arg6[%c4_54, %c0_55, %c0_56] : memref<9x128x128xbf16, #tpu.memory_space<vmem>>, vector<1x128x128xbf16>
    %82 = vector.shape_cast %81 : vector<1x128x128xbf16> to vector<128x128xbf16>
    %cst_57 = arith.constant dense<0.000000e+00> : vector<160x128xf32>
    %83 = tpu.matmul %80, %82, %cst_57 {dimension_numbers = #tpu.dot_dimension_numbers<[1], [0], [0], [1], [0, 0, 1, 1], [], []>} : vector<160x128xbf16>, vector<128x128xbf16>, vector<160x128xf32> -> vector<160x128xf32>
    %84 = arith.addf %79, %83 : vector<160x128xf32>
    %85 = vector.extract_strided_slice %58 {offsets = [22, 0], sizes = [160, 128], strides = [1, 1]} : vector<208x128xbf16> to vector<160x128xbf16>
    %c5_58 = arith.constant 5 : index
    %c0_59 = arith.constant 0 : index
    %c0_60 = arith.constant 0 : index
    %86 = vector.load %arg6[%c5_58, %c0_59, %c0_60] : memref<9x128x128xbf16, #tpu.memory_space<vmem>>, vector<1x128x128xbf16>
    %87 = vector.shape_cast %86 : vector<1x128x128xbf16> to vector<128x128xbf16>
    %cst_61 = arith.constant dense<0.000000e+00> : vector<160x128xf32>
    %88 = tpu.matmul %85, %87, %cst_61 {dimension_numbers = #tpu.dot_dimension_numbers<[1], [0], [0], [1], [0, 0, 1, 1], [], []>} : vector<160x128xbf16>, vector<128x128xbf16>, vector<160x128xf32> -> vector<160x128xf32>
    %89 = arith.addf %84, %88 : vector<160x128xf32>
    %90 = vector.extract_strided_slice %58 {offsets = [40, 0], sizes = [160, 128], strides = [1, 1]} : vector<208x128xbf16> to vector<160x128xbf16>
    %c6_62 = arith.constant 6 : index
    %c0_63 = arith.constant 0 : index
    %c0_64 = arith.constant 0 : index
    %91 = vector.load %arg6[%c6_62, %c0_63, %c0_64] : memref<9x128x128xbf16, #tpu.memory_space<vmem>>, vector<1x128x128xbf16>
    %92 = vector.shape_cast %91 : vector<1x128x128xbf16> to vector<128x128xbf16>
    %cst_65 = arith.constant dense<0.000000e+00> : vector<160x128xf32>
    %93 = tpu.matmul %90, %92, %cst_65 {dimension_numbers = #tpu.dot_dimension_numbers<[1], [0], [0], [1], [0, 0, 1, 1], [], []>} : vector<160x128xbf16>, vector<128x128xbf16>, vector<160x128xf32> -> vector<160x128xf32>
    %94 = arith.addf %89, %93 : vector<160x128xf32>
    %95 = vector.extract_strided_slice %58 {offsets = [41, 0], sizes = [160, 128], strides = [1, 1]} : vector<208x128xbf16> to vector<160x128xbf16>
    %c7_66 = arith.constant 7 : index
    %c0_67 = arith.constant 0 : index
    %c0_68 = arith.constant 0 : index
    %96 = vector.load %arg6[%c7_66, %c0_67, %c0_68] : memref<9x128x128xbf16, #tpu.memory_space<vmem>>, vector<1x128x128xbf16>
    %97 = vector.shape_cast %96 : vector<1x128x128xbf16> to vector<128x128xbf16>
    %cst_69 = arith.constant dense<0.000000e+00> : vector<160x128xf32>
    %98 = tpu.matmul %95, %97, %cst_69 {dimension_numbers = #tpu.dot_dimension_numbers<[1], [0], [0], [1], [0, 0, 1, 1], [], []>} : vector<160x128xbf16>, vector<128x128xbf16>, vector<160x128xf32> -> vector<160x128xf32>
    %99 = arith.addf %94, %98 : vector<160x128xf32>
    %100 = vector.extract_strided_slice %58 {offsets = [42, 0], sizes = [160, 128], strides = [1, 1]} : vector<208x128xbf16> to vector<160x128xbf16>
    %c8_70 = arith.constant 8 : index
    %c0_71 = arith.constant 0 : index
    %c0_72 = arith.constant 0 : index
    %101 = vector.load %arg6[%c8_70, %c0_71, %c0_72] : memref<9x128x128xbf16, #tpu.memory_space<vmem>>, vector<1x128x128xbf16>
    %102 = vector.shape_cast %101 : vector<1x128x128xbf16> to vector<128x128xbf16>
    %cst_73 = arith.constant dense<0.000000e+00> : vector<160x128xf32>
    %103 = tpu.matmul %100, %102, %cst_73 {dimension_numbers = #tpu.dot_dimension_numbers<[1], [0], [0], [1], [0, 0, 1, 1], [], []>} : vector<160x128xbf16>, vector<128x128xbf16>, vector<160x128xf32> -> vector<160x128xf32>
    %104 = arith.addf %99, %103 : vector<160x128xf32>
    %c0_74 = arith.constant 0 : index
    %c0_75 = arith.constant 0 : index
    %105 = vector.load %arg7[%c0_74, %c0_75] : memref<1x128xf32, #tpu.memory_space<vmem>>, vector<1x128xf32>
    %106 = vector.broadcast %105 : vector<1x128xf32> to vector<160x128xf32>
    %107 = arith.addf %104, %106 : vector<160x128xf32>
    %108 = vector.extract_strided_slice %1 {offsets = [42, 0], sizes = [160, 128], strides = [1, 1]} : vector<256x128xf32> to vector<160x128xf32>
    %cst_76 = arith.constant 1.000000e+00 : f32
    %109 = vector.broadcast %cst_76 : f32 to vector<160x128xf32>
    %110 = arith.mulf %107, %109 : vector<160x128xf32>
    %111 = arith.addf %110, %108 : vector<160x128xf32>
    %c0_77 = arith.constant 0 : index
    %c0_78 = arith.constant 0 : index
    %c0_79 = arith.constant 0 : index
    %c0_80 = arith.constant 0 : index
    %112 = vector.load %arg8[%c0_77, %c0_78, %c0_79, %c0_80] : memref<1x1x160x128xf32, #tpu.memory_space<vmem>>, vector<1x1x160x128xf32>
    %113 = vector.shape_cast %112 : vector<1x1x160x128xf32> to vector<160x128xf32>
    %114 = vector.shape_cast %111 : vector<160x128xf32> to vector<1x1x160x128xf32>
    tpu.vector_store %arg8[%c0_77, %c0_78, %c0_79, %c0_80], %114 {strides = array<i32>} : memref<1x1x160x128xf32, #tpu.memory_space<vmem>>, vector<1x1x160x128xf32>,
    return
  }
  func.func @transform_0(%arg0: i32, %arg1: i32) -> (i32, i32, i32, i32) {
    %c0_i32 = arith.constant 0 : i32
    %c0_i32_0 = arith.constant 0 : i32
    %c0_i32_1 = arith.constant 0 : i32
    return %arg0, %arg1, %c0_i32, %c0_i32_0 : i32, i32, i32, i32
  }
  func.func @transform_1(%arg0: i32, %arg1: i32) -> (i32, i32, i32) {
    %c0_i32 = arith.constant 0 : i32
    %c0_i32_0 = arith.constant 0 : i32
    %c0_i32_1 = arith.constant 0 : i32
    return %arg1, %c0_i32, %c0_i32_0 : i32, i32, i32
  }
  func.func @transform_2(%arg0: i32, %arg1: i32) -> (i32, i32, i32) {
    %c0_i32 = arith.constant 0 : i32
    %c0_i32_0 = arith.constant 0 : i32
    %c0_i32_1 = arith.constant 0 : i32
    %c0_i32_2 = arith.constant 0 : i32
    return %c0_i32, %c0_i32_0, %c0_i32_1 : i32, i32, i32
  }
  func.func @transform_3(%arg0: i32, %arg1: i32) -> (i32, i32) {
    %c0_i32 = arith.constant 0 : i32
    %c0_i32_0 = arith.constant 0 : i32
    %c0_i32_1 = arith.constant 0 : i32
    return %c0_i32, %c0_i32_0 : i32, i32
  }
  func.func @transform_4(%arg0: i32, %arg1: i32) -> (i32, i32, i32) {
    %c0_i32 = arith.constant 0 : i32
    %c0_i32_0 = arith.constant 0 : i32
    %c0_i32_1 = arith.constant 0 : i32
    %c0_i32_2 = arith.constant 0 : i32
    return %c0_i32, %c0_i32_0, %c0_i32_1 : i32, i32, i32
  }
  func.func @transform_5(%arg0: i32, %arg1: i32) -> (i32, i32) {
    %c0_i32 = arith.constant 0 : i32
    %c0_i32_0 = arith.constant 0 : i32
    %c0_i32_1 = arith.constant 0 : i32
    return %c0_i32, %c0_i32_0 : i32, i32
  }
  func.func @transform_6(%arg0: i32, %arg1: i32) -> (i32, i32, i32, i32) {
    %c0_i32 = arith.constant 0 : i32
    %c0_i32_0 = arith.constant 0 : i32
    %c0_i32_1 = arith.constant 0 : i32
    return %arg0, %arg1, %c0_i32, %c0_i32_0 : i32, i32, i32, i32
  }
}

</mosaic_0001>

<bundles_post_ra>
// kernel: resblock_forward.1
= control target key start
LH: loop header
LB: loop body
LE: loop exit
PB: predicated region body
PF: predicated region fallthrough
CT: control target
= control target key end

     0   :  { %s5812_s21 = smov 0   ;;  %s5814_s22 = smov 0   ;;  %s8269_s0 = inlined_call_operand.vmem [shape: f32[2,2,256,128], index: 0, kind: input, shape index: {}]   ;;  %s8270_s1 = inlined_call_operand.vmem [shape: f32[2,208,1], index: 1, kind: input, shape index: {}]   ;;  %s8271_s2 = inlined_call_operand.vmem [shape: bf16[9,128,128], index: 2, kind: input, shape index: {}]   ;;  %s8272_s3 = inlined_call_operand.vmem [shape: f32[1,128], index: 3, kind: input, shape index: {}]   ;;  %s8273_s4 = inlined_call_operand.vmem [shape: bf16[9,128,128], index: 4, kind: input, shape index: {}]   ;;  %s8274_s5 = inlined_call_operand.vmem [shape: f32[1,128], index: 5, kind: input, shape index: {}]   ;;  %s8275_s6 = inlined_call_operand.vmem [shape: f32[2,2,160,128], index: 6, kind: output, shape index: {}]  }
   0x1   :  { %s5816_s23 = smov 0   ;;  %s5818_s24 = smov 0  }
   0x2   :  { %s5820_s25 = smov 0  }
   0x3 LB: > { %s25_s26 = sadd.s32 1, %s5766_s23  ;;  %s28_s27 = sadd.s32 1, %s5770_s24  ;;  %s5774_s25 = sphi %s5820_s25, %s16_s25   ;;  %s5770_s24 = sphi %s5818_s24, %s8479_s24   ;;  %s5766_s23 = sphi %s5816_s23, %s8478_s23   ;;  %s5762_s22 = sphi %s5814_s22, %s8477_s22   ;;  %s5758_s21 = sphi %s5812_s21, %s8476_s21  }
   0x4   : > { %p26_p0 = scmp.ge.s32.totalorder %s25_s26, 2  ;;  %p4657_p1 = scmp.ge.s32.totalorder %s5774_s25, 1 }
   0x5   : > { %p242_p2 = scmp.lt.s32.totalorder %s5774_s25, 5 }
   0x6   : > { %s8481_s26 = smov (%p26_p0, %s25_s26), 0  ;;  %s8483_s27 = smov (!%p26_p0, %s28_s27), %s5770_s24 }
   0x7   : > { %p243_p3 = pnand %p4657_p1, %p242_p2  ;;  %p30_p4 = scmp.ge.s32.totalorder %s8483_s27, 2 }
   0x9   : > { %s8485_s27 = smov (%p30_p4, %s8483_s27), 0  ;;  %246 = sbr.rel (%p243_p3) target bundleno = 1271 (0x4f7), region = 44 }
   0xe   : > { %v5512_v0 = vld [vmem:[%s8271_s2 + $0x78] sm:$0xff]  ;;  %p285_p5 = scmp.lt.s32.totalorder %s5762_s22, 1  ;;  %p287_p6 = scmp.lt.s32.totalorder %s5758_s21, 1  ;;  %v5511_v2 = vld [vmem:[%s8271_s2 + $0x70] sm:$0xff]  ;;  %v5510_v5 = vld [vmem:[%s8271_s2 + $0x68] sm:$0xff]  ;;  %vm869_vm1 = vcmask 1046528  }
   0xf   : > { %v5504_v1 = vld [vmem:[%s8271_s2 + $0x38] sm:$0xff]  ;;  %643 = vmatpush.bf16.msra.mxu0 %v5512_v0  ;;  %v5503_v3 = vld [vmem:[%s8271_s2 + $0x30] sm:$0xff]  ;;  %v5502_v6 = vld [vmem:[%s8271_s2 + $0x28] sm:$0xff]  ;;  %vm473_vm0 = vsmask.f32 7424  ;;  %vm1081_vm2 = vcmask 1045504  }
  0x10   : > { %778 = vmatpush.bf16.msra.mxu1 %v5504_v1  ;;  %s8487_s22 = smov (!%p285_p5, %s5762_s22), 1  ;;  %5641 = vmatpush.bf16.msra.mxu3 %v5504_v1  ;;  %s8489_s21 = smov (!%p287_p6, %s5758_s21), 1  ;;  %v5862_v4 = vld [vmem:[%s8271_s2 + $0xb8] sm:$0xff]  ;;  %v5875_v7 = vld [vmem:[%s8271_s2 + $0xb0] sm:$0xff]  ;;  %v5509_v11 = vld [vmem:[%s8271_s2 + $0x60] sm:$0xff]  ;;  %vm1531_vm4 = vcmask 1044480  }
  0x11   : > { %s4659_s12 = sshll.u32 %s8487_s22, 6  ;;  %s4658_s15 = sshll.u32 %s8489_s21, 5  ;;  %5649 = vmatpush.bf16.msra.mxu2 %v5862_v4  ;;  %v5501_v12 = vld [vmem:[%s8271_s2 + $0x20] sm:$0xff]  ;;  %v5896_v18 = vld [vmem:[%s8271_s2 + $0xa8] sm:$0xff]  ;;  %v5508_v21 = vld [vmem:[%s8271_s2 + $0x58] sm:$0xff] }
  0x12   : > { %s291_s20 = sadd.s32 %s4659_s12, %s4658_s15  ;;  %v5500_v22 = vld [vmem:[%s8271_s2 + $0x18] sm:$0xff]  ;;  %v5910_v26 = vld [vmem:[%s8271_s2 + $0xa0] sm:$0xff]  ;;  %v5507_v27 = vld [vmem:[%s8271_s2 + $0x50] sm:$0xff]  ;;  %vm1287_vm3 = vsmask.f32 5376  ;;  %s5665_s10 = smul.u32 208, %s8489_s21 }
  0x13   : > { %644 = vmatpush.bf16.msra.mxu0 %v5511_v2  ;;  %s4660_s28 = sshll.u32 %s291_s20, 3  ;;  %v5499_v28 = vld [vmem:[%s8271_s2 + $0x10] sm:$0xff]  ;;  %v5929_v35 = vld [vmem:[%s8271_s2 + $0x98] sm:$0xff]  ;;  %v5506_v43 = vld [vmem:[%s8271_s2 + $0x48] sm:$0xff]  ;;  %s5667_s19 = smul.u32 40, %s8487_s22 }
  0x14   : > { %779 = vmatpush.bf16.msra.mxu1 %v5503_v3  ;;  %5642 = vmatpush.bf16.msra.mxu3 %v5503_v3  ;;  %s5880_s9 = scalar_lea.vmem %s8269_s0, %s4660_s28  ;;  %v5498_v44 = vld [vmem:[%s8271_s2 + $0x8] sm:$0xff]  ;;  %v5945_v49 = vld [vmem:[%s8271_s2 + $0x90] sm:$0xff]  ;;  %v5505_v54 = vld [vmem:[%s8271_s2 + $0x40] sm:$0xff]  ;;  %s6768_s15 = scalar_lea.vmem %s8270_s1, %s5665_s10 }
  0x15   : > { %v308_v8 = vld [vmem:[%s5880_s9] sm:$0xff]  ;;  %v309_v9 = vld [vmem:[%s5880_s9 + $0x8] sm:$0xff]  ;;  %v310_v10 = vld [vmem:[%s5880_s9 + $0x10] sm:$0xff]  ;;  %5651 = vmatpush.bf16.msra.mxu2 %v5875_v7 }
  0x16   : > { %v311_v13 = vld [vmem:[%s5880_s9 + $0x18] sm:$0xff]  ;;  %v340_v14 = vpack.c.bf16 %v308_v8, %v308_v8  ;;  %v341_v15 = vpack.c.bf16 %v309_v9, %v309_v9  ;;  %v342_v16 = vpack.c.bf16 %v310_v10, %v310_v10  ;;  %v326_v29 = vld [vmem:[%s5880_s9 + $0x90] sm:$0xff]  ;;  %v312_v33 = vld [vmem:[%s5880_s9 + $0x20] sm:$0xff] }
  0x17   : > { %645 = vmatpush.bf16.msra.mxu0 %v5510_v5  ;;  %v343_v17 = vpack.c.bf16 %v311_v13, %v311_v13  ;;  %v327_v32 = vld [vmem:[%s5880_s9 + $0x98] sm:$0xff]  ;;  %v314_v34 = vld [vmem:[%s5880_s9 + $0x30] sm:$0xff]  ;;  %v313_v36 = vld [vmem:[%s5880_s9 + $0x28] sm:$0xff]  ;;  %v358_v40 = vpack.c.bf16 %v326_v29, %v326_v29  ;;  %v344_v42 = vpack.c.bf16 %v312_v33, %v312_v33 }
  0x18   : > { %780 = vmatpush.bf16.msra.mxu1 %v5502_v6  ;;  %5643 = vmatpush.bf16.msra.mxu3 %v5502_v6  ;;  %v432_v19 = vunpack.c.l.b16 %v340_v14  ;;  %v433_v20 = vunpack.c.l.b16 %v341_v15  ;;  %v434_v23 = vunpack.c.l.b16 %v342_v16  ;;  %v315_v37 = vld [vmem:[%s5880_s9 + $0x38] sm:$0xff]  ;;  %v346_v38 = vpack.c.bf16 %v314_v34, %v314_v34  ;;  %v5497_v55 = vld [vmem:[%s8271_s2] sm:$0xff]  ;;  %v5969_v60 = vld [vmem:[%s8271_s2 + $0x88] sm:$0xff] }
  0x19   : > { %v435_v24 = vunpack.c.l.b16 %v343_v17  ;;  %5653 = vmatpush.bf16.msra.mxu2 %v5896_v18  ;;  %v347_v39 = vpack.c.bf16 %v315_v37, %v315_v37  ;;  %v359_v41 = vpack.c.bf16 %v327_v32, %v327_v32  ;;  %v345_v48 = vpack.c.bf16 %v313_v36, %v313_v36  ;;  %v5988_v1 = vld [vmem:[%s8271_s2 + $0x80] sm:$0xff]  ;;  %v317_v6 = vld [vmem:[%s5880_s9 + $0x48] sm:$0xff]  ;;  %v331_v29 = vld [vmem:[%s5880_s9 + $0xb8] sm:$0xff] }
  0x1a   : > { %v5904_v25 = vpack.c.b16 %v433_v20, %v432_v19  ;;  %v5947_v50 = vunpack.c.l.b16 %v346_v38  ;;  %v5951_v52 = vunpack.c.l.b16 %v358_v40  ;;  %v436_v58 = vunpack.c.l.b16 %v344_v42  ;;  %v316_v5 = vld [vmem:[%s5880_s9 + $0x40] sm:$0xff]  ;;  %v329_v9 = vld [vmem:[%s5880_s9 + $0xa8] sm:$0xff] }
  0x1b   : > { %646 = vmatpush.bf16.msra.mxu0 %v5509_v11  ;;  %v5919_v30 = vpack.c.b16 %v435_v24, %v434_v23  ;;  %v5949_v51 = vunpack.c.l.b16 %v347_v39  ;;  %v5953_v53 = vunpack.c.l.b16 %v359_v41  ;;  %v5963_v59 = vunpack.c.l.b16 %v345_v48  ;;  %v328_v8 = vld [vmem:[%s5880_s9 + $0xa0] sm:$0xff] }
  0x1c   : > { %781 = vmatpush.bf16.msra.mxu1 %v5501_v12  ;;  %5644 = vmatpush.bf16.msra.mxu3 %v5501_v12  ;;  %v477_v31 = vshll.u32 %v5904_v25, 16  ;;  %v475_v45 = vshrl.u32 %v5904_v25, 16  ;;  %v349_v11 = vpack.c.bf16 %v317_v6, %v317_v6  ;;  %v360_v14 = vpack.c.bf16 %v328_v8, %v328_v8 }
  0x1d   : > { %5655 = vmatpush.bf16.msra.mxu2 %v5910_v26  ;;  %v8297_v47 = vshll.u32 %v5919_v30, 16  ;;  %v5973_v61 = vpack.c.b16 %v5949_v51, %v5947_v50  ;;  %v5978_v63 = vpack.c.b16 %v5953_v53, %v5951_v52  ;;  %v5981_v0 = vpack.c.b16 %v5963_v59, %v436_v58  ;;  %v321_v58 = vld [vmem:[%s5880_s9 + $0x68] sm:$0xff] }
  0x1e   : > { %v479_v46 = vrot.slane %v477_v31, 1  ;;  %v8296_v12 = vshrl.u32 %v5919_v30, 16  ;;  %v361_v15 = vpack.c.bf16 %v329_v9, %v329_v9  ;;  %v6011_v17 = vunpack.c.l.b16 %v349_v11  ;;  %v5526_v9 = vld [vmem:[%s8271_s2 + $0xe8] sm:$0xff] }
  0x1f   : > { %647 = vmatpush.bf16.msra.mxu0 %v5508_v21  ;;  %v484_v57 = vrot.slane %v8297_v47, 1  ;;  %8326 = vst [vmem:[#allocation2_spill] sm:$0xff] %v5978_v63  ;;  %v8291_v2 = vrot.slane %v5981_v0, 1  ;;  %v875_v3 = vrot.slane %v5973_v61, 1  ;;  %v8293_v13 = vshll.u32 %v5981_v0, 16 }
  0x20   : > { %782 = vmatpush.bf16.msra.mxu1 %v5500_v22  ;;  %5645 = vmatpush.bf16.msra.mxu3 %v5500_v22  ;;  %v480_v56 = vor.u32 %v479_v46, %v475_v45  ;;  %v6017_v20 = vunpack.c.l.b16 %v360_v14  ;;  %v6019_v21 = vunpack.c.l.b16 %v361_v15  ;;  %v8292_v34 = vshrl.u32 %v5981_v0, 16 }
  0x21   : > { %5657 = vmatpush.bf16.msra.mxu2 %v5929_v35  ;;  %v876_v10 = vsel %vm869_vm1, %v8291_v2, %v875_v3  ;;  %v492_v19 = vrot.slane %v8293_v13, 1  ;;  %v363_v37 = vpack.c.bf16 %v331_v29, %v331_v29  ;;  %v322_v29 = vld [vmem:[%s5880_s9 + $0x70] sm:$0xff] }
  0x22   : > { %v485_v62 = vsel %vm473_vm0, %v480_v56, %v484_v57  ;;  %8327 = vst [vmem:[#allocation3_spill] sm:$0xff] %v6017_v20  ;;  %v6030_v23 = vpack.c.b16 %v6019_v21, %v6017_v20  ;;  %v333_v56 = vld [vmem:[%s5880_s9 + $0xc8] sm:$0xff] }
  0x23   : > { %648 = vmatpush.bf16.msra.mxu0 %v5507_v27  ;;  %8328 = vst [vmem:[#allocation4_spill] sm:$0xff] %v6019_v21  ;;  %v318_v27 = vld [vmem:[%s5880_s9 + $0x50] sm:$0xff]  ;;  %v496_v40 = vor.u32 %v8292_v34, %v492_v19  ;;  %v365_v8 = vpack.c.bf16 %v333_v56, %v333_v56 }
  0x24   : > { %783 = vmatpush.bf16.msra.mxu1 %v5499_v28  ;;  %5646 = vmatpush.bf16.msra.mxu3 %v5499_v28  ;;  %v319_v28 = vld [vmem:[%s5880_s9 + $0x58] sm:$0xff]  ;;  %v350_v32 = vpack.c.bf16 %v318_v27, %v318_v27 }
  0x25   : > { %5659 = vmatpush.bf16.msra.mxu2 %v5945_v49  ;;  %v351_v33 = vpack.c.bf16 %v319_v28, %v319_v28 }
  0x26   : > { %v6048_v38 = vunpack.c.l.b16 %v350_v32  ;;  %v323_v32 = vld [vmem:[%s5880_s9 + $0x78] sm:$0xff] }
  0x27   : > { %649 = vmatpush.bf16.msra.mxu0 %v5506_v43  ;;  %v6050_v39 = vunpack.c.l.b16 %v351_v33  ;;  %v6058_v43 = vunpack.c.l.b16 %v363_v37  ;;  %v355_v37 = vpack.c.bf16 %v323_v32, %v323_v32 }
  0x28   : > { %784 = vmatpush.bf16.msra.mxu1 %v5498_v44  ;;  %5647 = vmatpush.bf16.msra.mxu3 %v5498_v44 }
  0x29   : > { %5661 = vmatpush.bf16.msra.mxu2 %v5969_v60  ;;  %8330 = vst [vmem:[#allocation6_spill] sm:$0xff] %v6058_v43  ;;  %v6063_v44 = vpack.c.b16 %v6050_v39, %v6048_v38 }
  0x2b   : > { %650 = vmatpush.bf16.msra.mxu0 %v5505_v54  ;;  %v879_v48 = vrot.slane %v6063_v44, 1  ;;  %v332_v54 = vld [vmem:[%s5880_s9 + $0xc0] sm:$0xff] }
  0x2c   : > { %785 = vmatpush.bf16.msra.mxu1 %v5497_v55  ;;  %5648 = vmatpush.bf16.msra.mxu3 %v5497_v55  ;;  %v320_v55 = vld [vmem:[%s5880_s9 + $0x60] sm:$0xff]  ;;  %v364_v6 = vpack.c.bf16 %v332_v54, %v332_v54  ;;  %v6133_v54 = vunpack.c.l.b16 %v355_v37 }
  0x2d   : > { %5663 = vmatpush.bf16.msra.mxu2 %v5988_v1 }
  0x2e   : > { %651 = vmatmul.bf16.vlgmr.msra.gmra.mxu0 %v485_v62  ;;  %v352_v62 = vpack.c.bf16 %v320_v55, %v320_v55  ;;  %v6098_v15 = vunpack.c.l.b16 %v364_v6 }
  0x2f   : > { %958 = vmatpush.bf16.msrb.mxu0 %v5862_v4  ;;  %786 = vmatmul.bf16.vlgmr.msra.gmra.mxu1 %v5904_v25 }
  0x30   : > { %5650 = vmatpush.bf16.msrb.mxu3 %v5862_v4  ;;  %v348_v4 = vpack.c.bf16 %v316_v5, %v316_v5  ;;  %976 = vmatmul.bf16.vlgmr.msra.gmra.mxu2 %v876_v10  ;;  %v6090_v10 = vunpack.c.l.b16 %v352_v62  ;;  %8331 = vst [vmem:[#allocation7_spill] sm:$0xff] %v6098_v15 }
  0x31   : > { %831 = vmatmul.bf16.vlgmr.msra.gmra.mxu3 %v5978_v63 }
  0x32   : > { %v6009_v16 = vunpack.c.l.b16 %v348_v4 }
  0x33   : > { %959 = vmatpush.bf16.msrb.mxu0 %v5875_v7 }
  0x34   : > { %5652 = vmatpush.bf16.msrb.mxu3 %v5875_v7  ;;  %v488_v7 = vor.u32 %v8296_v12, %v484_v57  ;;  %v5527_v57 = vld [vmem:[%s8271_s2 + $0xf0] sm:$0xff] }
  0x36   : > { %v493_v22 = vsel %vm473_vm0, %v488_v7, %v492_v19  ;;  %v6100_v7 = vunpack.c.l.b16 %v365_v8  ;;  %v5525_v19 = vld [vmem:[%s8271_s2 + $0xe0] sm:$0xff] }
  0x37   : > { %960 = vmatpush.bf16.msrb.mxu0 %v5896_v18 }
  0x38   : > { %5654 = vmatpush.bf16.msrb.mxu3 %v5896_v18  ;;  %v6024_v18 = vpack.c.b16 %v6011_v17, %v6009_v16  ;;  %8332 = vst [vmem:[#allocation8_spill] sm:$0xff] %v6100_v7  ;;  %v6112_v27 = vpack.c.b16 %v6100_v7, %v6098_v15  ;;  %v5552_v7 = vld [vmem:[%s8271_s2 + $0x1b8] sm:$0xff] }
  0x39   : > { %1815 = vmatpush.bf16.msrb.mxu2 %v5552_v7  ;;  %v5535_v7 = vld [vmem:[%s8271_s2 + $0x130] sm:$0xff] }
  0x3a   : > { %v877_v24 = vrot.slane %v6024_v18, 1  ;;  %v8287_v5 = vshll.u32 %v6024_v18, 16  ;;  %8333 = vst [vmem:[#allocation9_spill] sm:$0xff] %v6112_v27 }
  0x3b   : > { %961 = vmatpush.bf16.msrb.mxu0 %v5910_v26 }
  0x3c   : > { %5656 = vmatpush.bf16.msrb.mxu3 %v5910_v26  ;;  %v330_v26 = vld [vmem:[%s5880_s9 + $0xb0] sm:$0xff]  ;;  %v878_v31 = vsel %vm869_vm1, %v875_v3, %v877_v24  ;;  %v8290_v3 = vshrl.u32 %v5973_v61, 16  ;;  %v508_v14 = vrot.slane %v8287_v5, 1  ;;  %v8294_v5 = vshrl.u32 %v6030_v23, 16 }
  0x3d   : > { %v362_v36 = vpack.c.bf16 %v330_v26, %v330_v26  ;;  %v5524_v26 = vld [vmem:[%s8271_s2 + $0xd8] sm:$0xff] }
  0x3e   : > { %656 = vmatmul.bf16.gmra.mxu0 %v493_v22 }
  0x3f   : > { %962 = vmatpush.bf16.msrb.mxu0 %v5929_v35  ;;  %791 = vmatmul.bf16.gmra.mxu1 %v5919_v30  ;;  %v6056_v42 = vunpack.c.l.b16 %v362_v36  ;;  %v354_v36 = vpack.c.bf16 %v322_v29, %v322_v29 }
  0x40   : > { %5658 = vmatpush.bf16.msrb.mxu3 %v5929_v35  ;;  %v8289_v35 = vshll.u32 %v5973_v61, 16  ;;  %981 = vmatmul.bf16.gmra.mxu2 %v878_v31  ;;  %v5523_v31 = vld [vmem:[%s8271_s2 + $0xd0] sm:$0xff] }
  0x41   : > { %836 = vmatmul.bf16.gmra.mxu3 %v6030_v23  ;;  %8329 = vst [vmem:[#allocation5_spill] sm:$0xff] %v6056_v42  ;;  %v6069_v46 = vpack.c.b16 %v6058_v43, %v6056_v42  ;;  %v8350_v43 = vshrl.u32 %v5981_v0, 16 }
  0x42   : > { %v500_v41 = vrot.slane %v8289_v35, 1 }
  0x43   : > { %963 = vmatpush.bf16.msrb.mxu0 %v5945_v49  ;;  %v891_v56 = vrot.slane %v6069_v46, 1  ;;  %v8300_v47 = vshrl.u32 %v6069_v46, 16 }
  0x44   : > { %5660 = vmatpush.bf16.msrb.mxu3 %v5945_v49  ;;  %v501_v45 = vsel %vm473_vm0, %v496_v40, %v500_v41  ;;  %v5528_v49 = vld [vmem:[%s8271_s2 + $0xf8] sm:$0xff]  ;;  %v504_v11 = vor.u32 %v8290_v3, %v500_v41  ;;  %v8288_v40 = vshrl.u32 %v6024_v18, 16  ;;  %v8283_v41 = vshll.u32 %v6063_v44, 16 }
  0x46   : > { %v516_v55 = vrot.slane %v8283_v41, 1 }
  0x47   : > { %964 = vmatpush.bf16.msrb.mxu0 %v5969_v60 }
  0x48   : > { %5662 = vmatpush.bf16.msrb.mxu3 %v5969_v60  ;;  %v880_v60 = vsel %vm869_vm1, %v877_v24, %v879_v48  ;;  %v509_v24 = vsel %vm473_vm0, %v504_v11, %v508_v14  ;;  %v324_v11 = vld [vmem:[%s5880_s9 + $0x80] sm:$0xff] }
  0x4b   : > { %965 = vmatpush.bf16.msrb.mxu0 %v5988_v1 }
  0x4c   : > { %5664 = vmatpush.bf16.msrb.mxu3 %v5988_v1  ;;  %v353_v1 = vpack.c.bf16 %v321_v58, %v321_v58  ;;  %v5521_v58 = vld [vmem:[%s8271_s2 + $0xc0] sm:$0xff] }
  0x4e   : > { %661 = vmatmul.bf16.gmra.mxu0 %v501_v45  ;;  %v6092_v4 = vunpack.c.l.b16 %v353_v1  ;;  %v5522_v45 = vld [vmem:[%s8271_s2 + $0xc8] sm:$0xff] }
  0x4f   : > { %796 = vmatmul.bf16.gmra.mxu1 %v5981_v0 }
  0x50   : > { %1170 = vmatpush.bf16.msra.mxu3 %v5528_v49  ;;  %986 = vmatmul.bf16.gmra.mxu2 %v880_v60  ;;  %v6107_v22 = vpack.c.b16 %v6092_v4, %v6090_v10  ;;  %v6131_v49 = vunpack.c.l.b16 %v354_v36  ;;  %v334_v60 = vld [vmem:[%s5880_s9 + $0xd0] sm:$0xff] }
  0x51   : > { %841 = vmatmul.bf16.gmra.mxu3 %v6069_v46  ;;  %v366_v8 = vpack.c.bf16 %v334_v60, %v334_v60 }
  0x52   : > { %v881_v28 = vrot.slane %v6107_v22, 1  ;;  %v6147_v62 = vpack.c.b16 %v6133_v54, %v6131_v49  ;;  %v8281_v32 = vshll.u32 %v6107_v22, 16 }
  0x54   : > { %1171 = vmatpush.bf16.msra.mxu3 %v5527_v57  ;;  %v882_v33 = vsel %vm869_vm1, %v879_v48, %v881_v28  ;;  %v512_v48 = vor.u32 %v8288_v40, %v508_v14  ;;  %v893_v57 = vrot.slane %v6112_v27, 1  ;;  %v325_v14 = vld [vmem:[%s5880_s9 + $0x88] sm:$0xff]  ;;  %v8295_v40 = vshll.u32 %v6069_v46, 16 }
  0x55   : > { %v357_v29 = vpack.c.bf16 %v325_v14, %v325_v14 }
  0x56   : > { %v517_v1 = vsel %vm473_vm0, %v512_v48, %v516_v55  ;;  %v894_v6 = vsel %vm869_vm1, %v891_v56, %v893_v57 }
  0x57   : > { %v6168_v37 = vunpack.c.l.b16 %v357_v29 }
  0x58   : > { %1172 = vmatpush.bf16.msra.mxu3 %v5526_v9  ;;  %v883_v9 = vrot.slane %v6147_v62, 1 }
  0x5c   : > { %1173 = vmatpush.bf16.msra.mxu3 %v5525_v19  ;;  %v6157_v19 = vunpack.c.l.b16 %v366_v8  ;;  %v8282_v8 = vshrl.u32 %v6107_v22, 16 }
  0x5e   : > { %666 = vmatmul.bf16.gmra.mxu0 %v509_v24  ;;  %v884_v24 = vsel %vm869_vm1, %v881_v28, %v883_v9  ;;  %v524_v28 = vrot.slane %v8281_v32, 1 }
  0x5f   : > { %801 = vmatmul.bf16.gmra.mxu1 %v5973_v61 }
  0x60   : > { %1174 = vmatpush.bf16.msra.mxu3 %v5524_v26  ;;  %991 = vmatmul.bf16.gmra.mxu2 %v882_v33  ;;  %v356_v26 = vpack.c.bf16 %v324_v11, %v324_v11  ;;  %v6164_v33 = vpack.c.b16 %v6157_v19, %v6157_v19  ;;  %v8277_v11 = vshll.u32 %v6147_v62, 16  ;;  %v528_v14 = vor.u32 %v8282_v8, %v524_v28 }
  0x61   : > { %846 = vmatmul.bf16.gmra.mxu3 %v6112_v27 }
  0x62   : > { %v6166_v36 = vunpack.c.l.b16 %v356_v26  ;;  %v895_v48 = vrot.slane %v6164_v33, 1  ;;  %v1083_v26 = vrot.slane %v5981_v0, 2 }
  0x64   : > { %1175 = vmatpush.bf16.msra.mxu3 %v5523_v31  ;;  %v8284_v31 = vshrl.u32 %v6063_v44, 16 }
  0x68   : > { %1176 = vmatpush.bf16.msra.mxu3 %v5522_v45  ;;  %v520_v45 = vor.u32 %v8284_v31, %v516_v55 }
  0x6a   : > { %v525_v60 = vsel %vm473_vm0, %v520_v45, %v524_v28  ;;  %v887_v45 = vrot.slane %v5978_v63, 1 }
  0x6c   : > { %1177 = vmatpush.bf16.msra.mxu3 %v5521_v58  ;;  %v6177_v58 = vpack.c.b16 %v6168_v37, %v6166_v36 }
  0x6e   : > { %671 = vmatmul.bf16.gmra.mxu0 %v517_v1  ;;  %v896_v1 = vsel %vm869_vm1, %v893_v57, %v895_v48  ;;  %v1082_v57 = vrot.slane %v5919_v30, 2  ;;  %v8278_v48 = vshrl.u32 %v6147_v62, 16 }
  0x6f   : > { %806 = vmatmul.bf16.gmra.mxu1 %v6024_v18 }
  0x70   : > { %996 = vmatmul.bf16.gmra.mxu2 %v884_v24  ;;  %v532_v24 = vrot.slane %v8277_v11, 1 }
  0x71   : > { %1021 = vmatmul.bf16.vlgmr.msrb.gmra.mxu3 %v894_v6  ;;  %v885_v6 = vrot.slane %v6177_v58, 1 }
  0x72   : > { %v533_v29 = vsel %vm473_vm0, %v528_v14, %v532_v24  ;;  %v1085_v14 = vrot.slane %v5973_v61, 2 }
  0x73   : > { %v886_v55 = vsel %vm869_vm1, %v883_v9, %v885_v6  ;;  %v1084_v9 = vsel %vm1081_vm2, %v1082_v57, %v1083_v26  ;;  %v888_v28 = vsel %vm869_vm1, %v885_v6, %v887_v45 }
  0x7e   : > { %676 = vmatmul.bf16.gmra.mxu0 %v525_v60  ;;  %v8276_v60 = vshll.u32 %v6177_v58, 16 }
  0x7f   : > { %811 = vmatmul.bf16.gmra.mxu1 %v6063_v44 }
  0x80   : > { %1001 = vmatmul.bf16.gmra.mxu2 %v886_v55  ;;  %v540_v55 = vrot.slane %v8276_v60, 1 }
  0x81   : > { %1026 = vmatmul.bf16.gmra.mxu3 %v896_v1  ;;  %v536_v1 = vor.u32 %v8278_v48, %v532_v24  ;;  %v8279_v24 = vshll.u32 %v5978_v63, 16 }
  0x83   : > { %v541_v57 = vsel %vm473_vm0, %v536_v1, %v540_v55  ;;  %v548_v1 = vrot.slane %v8279_v24, 1 }
  0x8e   : > { %681 = vmatmul.bf16.gmra.mxu0 %v533_v29  ;;  %v1086_v29 = vsel %vm1081_vm2, %v1083_v26, %v1085_v14  ;;  %v1087_v26 = vrot.slane %v6024_v18, 2 }
  0x8f   : > { %816 = vmatmul.bf16.gmra.mxu1 %v6107_v22 }
  0x90   : > { %1006 = vmatmul.bf16.gmra.mxu2 %v888_v28  ;;  %v8280_v28 = vshrl.u32 %v6177_v58, 16 }
  0x91   : > { %1178 = vmatmul.bf16.vlgmr.msra.gmra.mxu3 %v1084_v9  ;;  %v889_v9 = vrot.slane %v6030_v23, 1 }
  0x92   : > { %v544_v60 = vor.u32 %v8280_v28, %v540_v55 }
  0x93   : > { %v890_v6 = vsel %vm869_vm1, %v887_v45, %v889_v9  ;;  %v1088_v45 = vsel %vm1081_vm2, %v1085_v14, %v1087_v26  ;;  %v892_v55 = vsel %vm869_vm1, %v889_v9, %v891_v56  ;;  %v1089_v56 = vrot.slane %v6063_v44, 2 }
  0x94   : > { %v549_v48 = vsel %vm473_vm0, %v544_v60, %v548_v1  ;;  %v8286_v60 = vshrl.u32 %v5978_v63, 16 }
  0x95   : > { %v1090_v31 = vsel %vm1081_vm2, %v1087_v26, %v1089_v56  ;;  %v564_v26 = vrot.slane %v8295_v40, 1 }
  0x9e   : > { %686 = vmatmul.bf16.gmra.mxu0 %v541_v57 }
  0x9f   : > { %821 = vmatmul.bf16.gmra.mxu1 %v6147_v62 }
  0xa0   : > { %1011 = vmatmul.bf16.gmra.mxu2 %v890_v6 }
  0xa1   : > { %1183 = vmatmul.bf16.gmra.mxu3 %v1086_v29 }
  0xab   : > { %v652_v11 = vpop.f32.mrf.mxu0 }
  0xac   : > { %v787_v57 = vpop.f32.mrf.mxu1 }
  0xad   : > { %v6217_v29 = vadd.f32 %v787_v57, %v652_v11  ;;  %v8285_v11 = vshll.u32 %v6030_v23, 16 }
  0xae   : > { %691 = vmatmul.bf16.gmra.mxu0 %v549_v48  ;;  %v552_v48 = vor.u32 %v8286_v60, %v548_v1 }
  0xaf   : > { %8334 = vst [vmem:[#allocation10_spill] sm:$0xff] %v6217_v29  ;;  %826 = vmatmul.bf16.gmra.mxu1 %v6177_v58  ;;  %v556_v14 = vrot.slane %v8285_v11, 1 }
  0xb0   : > { %1016 = vmatmul.bf16.gmra.mxu2 %v892_v55 }
  0xb1   : > { %1188 = vmatmul.bf16.gmra.mxu3 %v1088_v45  ;;  %v557_v8 = vsel %vm473_vm0, %v552_v48, %v556_v14 }
  0xb3   : > { %v6226_v24 = vpop.f32.mrf.mxu0  ;;  %v977_v57 = vpop.f32.mrf.mxu2 }
  0xb4   : > { %v6224_v6 = vpop.f32.mrf.mxu3  ;;  %8335 = vst [vmem:[#allocation11_spill] sm:$0xff] %v6226_v24  ;;  %v6228_v28 = vpop.f32.mrf.mxu1  ;;  %v1097_v24 = vrot.slane %v5978_v63, 2 }
  0xb5   : > { %8336 = vst [vmem:[#allocation12_spill] sm:$0xff] %v6228_v28  ;;  %v1291_v28 = vrot.slane %v8350_v43, 2  ;;  %v5529_v43 = vld [vmem:[%s8271_s2 + $0x100] sm:$0xff] }
  0xbb   : > { %v657_v45 = vpop.f32.mrf.mxu0  ;;  %v6243_v55 = vpop.f32.mrf.mxu2 }
  0xbc   : > { %v6237_v9 = vpop.f32.mrf.mxu3  ;;  %v792_v32 = vpop.f32.mrf.mxu1 }
  0xbd   : > { %8337 = vst [vmem:[#allocation13_spill] sm:$0xff] %v6237_v9  ;;  %v6240_v41 = vadd.f32 %v792_v32, %v657_v45  ;;  %v560_v32 = vor.u32 %v8294_v5, %v556_v14 }
  0xbe   : > { %696 = vmatmul.bf16.gmra.mxu0 %v557_v8 }
  0xbf   : > { %8338 = vst [vmem:[#allocation14_spill] sm:$0xff] %v6240_v41  ;;  %v565_v3 = vsel %vm473_vm0, %v560_v32, %v564_v26  ;;  %v5541_v41 = vld [vmem:[%s8271_s2 + $0x160] sm:$0xff] }
  0xc1   : > { %1193 = vmatmul.bf16.gmra.mxu3 %v1090_v31  ;;  %v1091_v31 = vrot.slane %v6107_v22, 2 }
  0xc3   : > { %v6247_v11 = vpop.f32.mrf.mxu0  ;;  %v982_v8 = vpop.f32.mrf.mxu2  ;;  %v1092_v34 = vsel %vm1081_vm2, %v1089_v56, %v1091_v31 }
  0xc4   : > { %v6245_v1 = vpop.f32.mrf.mxu3  ;;  %8339 = vst [vmem:[#allocation15_spill] sm:$0xff] %v6247_v11  ;;  %v6249_v60 = vpop.f32.mrf.mxu1 }
  0xc5   : > { %8340 = vst [vmem:[#allocation16_spill] sm:$0xff] %v6249_v60 }
  0xcb   : > { %v662_v45 = vpop.f32.mrf.mxu0  ;;  %v6264_v14 = vpop.f32.mrf.mxu2 }
  0xcc   : > { %v6258_v48 = vpop.f32.mrf.mxu3  ;;  %v797_v35 = vpop.f32.mrf.mxu1 }
  0xcd   : > { %8341 = vst [vmem:[#allocation17_spill] sm:$0xff] %v6258_v48  ;;  %v798_v2 = vadd.f32 %v797_v35, %v662_v45  ;;  %v8299_v48 = vshll.u32 %v6112_v27, 16  ;;  %v568_v35 = vor.u32 %v8300_v47, %v564_v26 }
  0xce   : > { %701 = vmatmul.bf16.gmra.mxu0 %v565_v3 }
  0xcf   : > { %v6262_v13 = vadd.f32 %v977_v57, %v798_v2  ;;  %v572_v2 = vrot.slane %v8299_v48, 1  ;;  %v5536_v48 = vld [vmem:[%s8271_s2 + $0x138] sm:$0xff] }
  0xd0   : > { %1414 = vmatpush.bf16.msra.mxu0 %v5536_v48  ;;  %v8301_v48 = vshrl.u32 %v6112_v27, 16 }
  0xd1   : > { %1198 = vmatmul.bf16.gmra.mxu3 %v1092_v34  ;;  %v1093_v34 = vrot.slane %v6147_v62, 2  ;;  %v573_v45 = vsel %vm473_vm0, %v568_v35, %v572_v2  ;;  %v5551_v35 = vld [vmem:[%s8271_s2 + $0x1b0] sm:$0xff] }
  0xd2   : > { %1816 = vmatpush.bf16.msrb.mxu2 %v5551_v35  ;;  %v576_v35 = vor.u32 %v8301_v48, %v572_v2  ;;  %v5533_v2 = vld [vmem:[%s8271_s2 + $0x120] sm:$0xff] }
  0xd3   : > { %v6268_v40 = vpop.f32.mrf.mxu0  ;;  %v987_v3 = vpop.f32.mrf.mxu2  ;;  %v1094_v9 = vsel %vm1081_vm2, %v1091_v31, %v1093_v34  ;;  %v5544_v31 = vld [vmem:[%s8271_s2 + $0x178] sm:$0xff] }
  0xd4   : > { %v6266_v5 = vpop.f32.mrf.mxu3  ;;  %v6270_v12 = vpop.f32.mrf.mxu1  ;;  %1620 = vmatpush.bf16.msrb.mxu1 %v5544_v31  ;;  %1415 = vmatpush.bf16.msra.mxu0 %v5535_v7  ;;  %v5534_v31 = vld [vmem:[%s8271_s2 + $0x128] sm:$0xff]  ;;  %v1095_v7 = vrot.slane %v6177_v58, 2 }
  0xd5   : > { %8342 = vst [vmem:[#allocation18_spill] sm:$0xff] %v6266_v5 }
  0xd6   : > { %v1096_v11 = vsel %vm1081_vm2, %v1093_v34, %v1095_v7  ;;  %v1098_v21 = vsel %vm1081_vm2, %v1095_v7, %v1097_v24 }
  0xd8   : > { %1416 = vmatpush.bf16.msra.mxu0 %v5534_v31 }
  0xdb   : > { %v667_v56 = vpop.f32.mrf.mxu0  ;;  %v6291_v47 = vpop.f32.mrf.mxu2 }
  0xdc   : > { %v6279_v57 = vpop.f32.mrf.mxu3  ;;  %v802_v32 = vpop.f32.mrf.mxu1  ;;  %1417 = vmatpush.bf16.msra.mxu0 %v5533_v2  ;;  %v5539_v2 = vld [vmem:[%s8271_s2 + $0x150] sm:$0xff] }
  0xdd   : > { %8343 = vst [vmem:[#allocation19_spill] sm:$0xff] %v6279_v57  ;;  %v803_v5 = vadd.f32 %v802_v32, %v667_v56  ;;  %v578_v56 = vshll.u32 %v6164_v33, 16  ;;  %v5543_v32 = vld [vmem:[%s8271_s2 + $0x170] sm:$0xff]  ;;  %v5542_v57 = vld [vmem:[%s8271_s2 + $0x168] sm:$0xff] }
  0xde   : > { %706 = vmatmul.bf16.gmra.mxu0 %v573_v45  ;;  %v5550_v45 = vld [vmem:[%s8271_s2 + $0x1a8] sm:$0xff]  ;;  %1621 = vmatpush.bf16.msrb.mxu1 %v5543_v32  ;;  %v5549_v32 = vld [vmem:[%s8271_s2 + $0x1a0] sm:$0xff] }
  0xdf   : > { %v6286_v26 = vadd.f32 %v982_v8, %v803_v5  ;;  %1817 = vmatpush.bf16.msrb.mxu2 %v5550_v45 }
  0xe1   : > { %1203 = vmatmul.bf16.gmra.mxu3 %v1094_v9 }
  0xe2   : > { %1622 = vmatpush.bf16.msrb.mxu1 %v5542_v57  ;;  %v5548_v57 = vld [vmem:[%s8271_s2 + $0x198] sm:$0xff] }
  0xe3   : > { %v6304_v9 = vpop.f32.mrf.mxu0  ;;  %v6321_v33 = vpop.f32.mrf.mxu2  ;;  %1818 = vmatpush.bf16.msrb.mxu2 %v5549_v32 }
  0xe4   : > { %v6299_v5 = vpop.f32.mrf.mxu3  ;;  %v6306_v8 = vpop.f32.mrf.mxu1 }
  0xe5   : > { %8344 = vst [vmem:[#allocation20_spill] sm:$0xff] %v6299_v5  ;;  %v580_v5 = vrot.slane %v578_v56, 1 }
  0xe6   : > { %1623 = vmatpush.bf16.msrb.mxu1 %v5541_v41  ;;  %v5531_v41 = vld [vmem:[%s8271_s2 + $0x110] sm:$0xff] }
  0xe7   : > { %v581_v31 = vsel %vm473_vm0, %v576_v35, %v580_v5  ;;  %v5532_v5 = vld [vmem:[%s8271_s2 + $0x118] sm:$0xff]  ;;  %1819 = vmatpush.bf16.msrb.mxu2 %v5548_v57 }
  0xe8   : > { %1418 = vmatpush.bf16.msra.mxu0 %v5532_v5  ;;  %v5560_v57 = vld [vmem:[%s8271_s2 + $0x1f8] sm:$0xff]  ;;  %v8347_v5 = vshll.u32 %v5919_v30, 16 }
  0xe9   : > { %2104 = vmatpush.bf16.msrb.mxu3 %v5560_v57  ;;  %v6402_v57 = vpack.c.b16 %v5947_v50, %v5963_v59  ;;  %v1532_v59 = vrot.slane %v5919_v30, 3 }
  0xeb   : > { %v672_v56 = vpop.f32.mrf.mxu0  ;;  %v6348_v34 = vpop.f32.mrf.mxu2 }
  0xec   : > { %v6330_v45 = vpop.f32.mrf.mxu3  ;;  %v807_v48 = vpop.f32.mrf.mxu1  ;;  %1419 = vmatpush.bf16.msra.mxu0 %v5531_v41  ;;  %v871_v41 = vrot.slane %v5919_v30, 1 }
  0xed   : > { %8345 = vst [vmem:[#allocation21_spill] sm:$0xff] %v6330_v45  ;;  %v808_v60 = vadd.f32 %v807_v48, %v672_v56  ;;  %v5540_v48 = vld [vmem:[%s8271_s2 + $0x158] sm:$0xff]  ;;  %v5546_v56 = vld [vmem:[%s8271_s2 + $0x188] sm:$0xff]  ;;  %v8348_v45 = vshrl.u32 %v5919_v30, 16 }
  0xee   : > { %711 = vmatmul.bf16.gmra.mxu0 %v581_v31  ;;  %1624 = vmatpush.bf16.msrb.mxu1 %v5540_v48  ;;  %v5530_v31 = vld [vmem:[%s8271_s2 + $0x108] sm:$0xff]  ;;  %v1289_v48 = vrot.slane %v8347_v5, 3 }
  0xef   : > { %v6343_v32 = vadd.f32 %v987_v3, %v808_v60  ;;  %v5547_v60 = vld [vmem:[%s8271_s2 + $0x190] sm:$0xff] }
  0xf0   : > { %1820 = vmatpush.bf16.msrb.mxu2 %v5547_v60  ;;  %v870_v60 = vrot.slane %v5904_v25, 1  ;;  %1420 = vmatpush.bf16.msra.mxu0 %v5530_v31  ;;  %v5538_v25 = vld [vmem:[%s8271_s2 + $0x148] sm:$0xff] }
  0xf1   : > { %1208 = vmatmul.bf16.gmra.mxu3 %v1096_v11 }
  0xf2   : > { %1625 = vmatpush.bf16.msrb.mxu1 %v5539_v2  ;;  %v8349_v2 = vshll.u32 %v5981_v0, 16  ;;  %v872_v31 = vsel %vm869_vm1, %v870_v60, %v871_v41 }
  0xf3   : > { %v6361_v11 = vpop.f32.mrf.mxu0 }
  0xf4   : > { %v6356_v3 = vpop.f32.mrf.mxu3  ;;  %v6363_v35 = vpop.f32.mrf.mxu1  ;;  %1821 = vmatpush.bf16.msrb.mxu2 %v5546_v56  ;;  %v1292_v15 = vrot.slane %v8349_v2, 3  ;;  %v5545_v56 = vld [vmem:[%s8271_s2 + $0x180] sm:$0xff]  ;;  %1421 = vmatpush.bf16.msra.mxu0 %v5529_v43  ;;  %v6438_v43 = vpack.c.b16 %v6009_v16, %v5949_v51 }
  0xf5   : > { %8346 = vst [vmem:[#allocation22_spill] sm:$0xff] %v6356_v3  ;;  %v1288_v3 = vrot.slane %v8348_v45, 2  ;;  %v997_v45 = vpop.f32.mrf.mxu2 }
  0xf6   : > { %1626 = vmatpush.bf16.msrb.mxu1 %v5538_v25  ;;  %v5537_v25 = vld [vmem:[%s8271_s2 + $0x140] sm:$0xff]  ;;  %v6408_v63 = vor.u32 %v1292_v15, %v1291_v28  ;;  %v1533_v15 = vrot.slane %v5981_v0, 3 }
  0xf8   : > { %1822 = vmatpush.bf16.msrb.mxu2 %v5545_v56  ;;  %v8354_v56 = vrot.slane %v5981_v0, 1  ;;  %v5559_v0 = vld [vmem:[%s8271_s2 + $0x1f0] sm:$0xff] }
  0xf9   : > { %2105 = vmatpush.bf16.msrb.mxu3 %v5559_v0 }
  0xfa   : > { %1627 = vmatpush.bf16.msrb.mxu1 %v5537_v25 }
  0xfb   : > { %v677_v2 = vpop.f32.mrf.mxu0  ;;  %1823 = vmatmul.bf16.vlgmr.msrb.gmra.mxu2 %v6402_v57 }
  0xfc   : > { %v6394_v5 = vpop.f32.mrf.mxu3  ;;  %v812_v29 = vpop.f32.mrf.mxu1 }
  0xfd   : > { %8351 = vst [vmem:[#allocation23_spill] sm:$0xff] %v6394_v5  ;;  %v813_v42 = vadd.f32 %v812_v29, %v677_v2  ;;  %v1290_v5 = vor.u32 %v1289_v48, %v1288_v3  ;;  %v5568_v29 = vld [vmem:[%s8271_s2 + $0x238] sm:$0xff]  ;;  %v6428_v30 = vpop.f32.mrf.mxu2 }
  0xfe   : > { %966 = vmatmul.bf16.vlgmr.msrb.gmra.mxu0 %v872_v31 }
  0xff   : > { %v6411_v20 = vadd.f32 %v6321_v33, %v813_v42  ;;  %v1294_v50 = vsel %vm1287_vm3, %v1290_v5, %v6408_v63  ;;  %2309 = vmatpush.bf16.msrb.mxu0 %v5568_v29  ;;  %v1534_v42 = vsel %vm1531_vm4, %v1532_v59, %v1533_v15  ;;  %v874_v5 = vsel %vm869_vm1, %v871_v41, %v8354_v56 }
 0x100   : > { %1628 = vmatmul.bf16.vlgmr.msrb.gmra.mxu1 %v1534_v42  ;;  %v1535_v29 = vrot.slane %v5973_v61, 3  ;;  %v1101_v42 = vrot.slane %v6069_v46, 2 }
 0x101   : > { %1213 = vmatmul.bf16.gmra.mxu3 %v1098_v21  ;;  %v1099_v21 = vrot.slane %v6030_v23, 2 }
 0x102   : > { %v1536_v41 = vsel %vm1531_vm4, %v1533_v15, %v1535_v29 }
 0x103   : > { %v6424_v33 = vpop.f32.mrf.mxu0  ;;  %v1100_v31 = vsel %vm1081_vm2, %v1097_v24, %v1099_v21 }
 0x104   : > { %v6422_v28 = vpop.f32.mrf.mxu3  ;;  %v6426_v7 = vpop.f32.mrf.mxu1 }
 0x105   : > { %8352 = vst [vmem:[#allocation24_spill] sm:$0xff] %v6422_v28  ;;  %v1002_v59 = vpop.f32.mrf.mxu2 }
 0x10b   : > { %v682_v48 = vpop.f32.mrf.mxu0  ;;  %1828 = vmatmul.bf16.gmra.mxu2 %v6438_v43 }
 0x10c   : > { %v6431_v3 = vpop.f32.mrf.mxu3  ;;  %v817_v60 = vpop.f32.mrf.mxu1 }
 0x10d   : > { %8353 = vst [vmem:[#allocation25_spill] sm:$0xff] %v6431_v3  ;;  %v818_v2 = vadd.f32 %v817_v60, %v682_v48  ;;  %v6459_v48 = vpop.f32.mrf.mxu2 }
 0x10e   : > { %971 = vmatmul.bf16.gmra.mxu0 %v874_v5  ;;  %v6465_v5 = vpack.c.b16 %v6048_v38, %v6011_v17 }
 0x10f   : > { %v6441_v25 = vadd.f32 %v997_v45, %v818_v2  ;;  %v5567_v45 = vld [vmem:[%s8271_s2 + $0x230] sm:$0xff] }
 0x110   : > { %1633 = vmatmul.bf16.gmra.mxu1 %v1536_v41  ;;  %2310 = vmatpush.bf16.msrb.mxu0 %v5567_v45  ;;  %v1537_v41 = vrot.slane %v6024_v18, 3 }
 0x111   : > { %1218 = vmatmul.bf16.gmra.mxu3 %v1100_v31  ;;  %v1102_v31 = vsel %vm1081_vm2, %v1099_v21, %v1101_v42  ;;  %v8358_v21 = vshrl.u32 %v5973_v61, 16 }
 0x112   : > { %v1538_v45 = vsel %vm1531_vm4, %v1535_v29, %v1537_v41  ;;  %v1103_v29 = vrot.slane %v6112_v27, 2 }
 0x113   : > { %v6451_v16 = vpop.f32.mrf.mxu0 }
 0x114   : > { %v6449_v51 = vpop.f32.mrf.mxu3  ;;  %v6453_v24 = vpop.f32.mrf.mxu1 }
 0x115   : > { %8355 = vst [vmem:[#allocation26_spill] sm:$0xff] %v6449_v51  ;;  %v1007_v28 = vpop.f32.mrf.mxu2  ;;  %v1539_v51 = vrot.slane %v6063_v44, 3 }
 0x11b   : > { %v687_v15 = vpop.f32.mrf.mxu0  ;;  %1833 = vmatmul.bf16.gmra.mxu2 %v6465_v5 }
 0x11c   : > { %v6461_v60 = vpop.f32.mrf.mxu3  ;;  %v822_v56 = vpop.f32.mrf.mxu1 }
 0x11d   : > { %8356 = vst [vmem:[#allocation27_spill] sm:$0xff] %v6461_v60  ;;  %v823_v2 = vadd.f32 %v822_v56, %v687_v15  ;;  %v5558_v56 = vld [vmem:[%s8271_s2 + $0x1e8] sm:$0xff]  ;;  %v6500_v27 = vpop.f32.mrf.mxu2 }
 0x11e   : > { %1422 = vmatmul.bf16.vlgmr.msra.gmra.mxu0 %v1294_v50  ;;  %v8359_v50 = vshll.u32 %v5973_v61, 16  ;;  %2106 = vmatpush.bf16.msrb.mxu3 %v5558_v56 }
 0x11f   : > { %v6468_v0 = vadd.f32 %v1002_v59, %v823_v2  ;;  %v1295_v59 = vrot.slane %v8358_v21, 2 }
 0x120   : > { %1638 = vmatmul.bf16.gmra.mxu1 %v1538_v45  ;;  %v1296_v15 = vrot.slane %v8359_v50, 3  ;;  %v6497_v50 = vpack.c.b16 %v6090_v10, %v6050_v39  ;;  %v1540_v10 = vsel %vm1531_vm4, %v1537_v41, %v1539_v51  ;;  %v5566_v41 = vld [vmem:[%s8271_s2 + $0x228] sm:$0xff] }
 0x121   : > { %1223 = vmatmul.bf16.gmra.mxu3 %v1102_v31  ;;  %v335_v31 = vld [vmem:[%s5880_s9 + $0xd8] sm:$0xff]  ;;  %2311 = vmatpush.bf16.msrb.mxu0 %v5566_v41  ;;  %v6547_v41 = vpack.c.b16 %v6131_v49, %v6092_v4 }
 0x122   : > { %v1297_v2 = vor.u32 %v1296_v15, %v1295_v59  ;;  %v1104_v15 = vsel %vm1081_vm2, %v1101_v42, %v1103_v29  ;;  %v367_v56 = vpack.c.bf16 %v335_v31, %v335_v31  ;;  %v8362_v31 = vshrl.u32 %v6024_v18, 16 }
 0x123   : > { %v6475_v17 = vpop.f32.mrf.mxu0 }
 0x124   : > { %v6473_v3 = vpop.f32.mrf.mxu3  ;;  %v6477_v38 = vpop.f32.mrf.mxu1  ;;  %v1298_v61 = vsel %vm1287_vm3, %v6408_v63, %v1297_v2  ;;  %v5556_v63 = vld [vmem:[%s8271_s2 + $0x1d8] sm:$0xff]  ;;  %v6509_v39 = vunpack.c.l.b16 %v367_v56  ;;  %v5554_v56 = vld [vmem:[%s8271_s2 + $0x1c8] sm:$0xff] }
 0x125   : > { %8357 = vst [vmem:[#allocation28_spill] sm:$0xff] %v6473_v3  ;;  %v5557_v3 = vld [vmem:[%s8271_s2 + $0x1e0] sm:$0xff] }
 0x126   : > { %2107 = vmatpush.bf16.msrb.mxu3 %v5557_v3 }
 0x12a   : > { %2108 = vmatpush.bf16.msrb.mxu3 %v5556_v63  ;;  %v1012_v63 = vpop.f32.mrf.mxu2 }
 0x12b   : > { %v692_v60 = vpop.f32.mrf.mxu0  ;;  %1838 = vmatmul.bf16.gmra.mxu2 %v6497_v50 }
 0x12c   : > { %v6488_v45 = vpop.f32.mrf.mxu3  ;;  %v827_v21 = vpop.f32.mrf.mxu1 }
 0x12d   : > { %8360 = vst [vmem:[#allocation29_spill] sm:$0xff] %v6488_v45  ;;  %v828_v59 = vadd.f32 %v827_v21, %v692_v60  ;;  %v1299_v21 = vrot.slane %v8362_v31, 2  ;;  %v336_v31 = vld [vmem:[%s5880_s9 + $0xe0] sm:$0xff] }
 0x12e   : > { %1427 = vmatmul.bf16.gmra.mxu0 %v1298_v61  ;;  %v8363_v61 = vshll.u32 %v6024_v18, 16 }
 0x12f   : > { %v6502_v45 = vadd.f32 %v1007_v28, %v828_v59  ;;  %v5555_v28 = vld [vmem:[%s8271_s2 + $0x1d0] sm:$0xff] }
 0x130   : > { %1643 = vmatmul.bf16.gmra.mxu1 %v1540_v10  ;;  %v1300_v59 = vrot.slane %v8363_v61, 3  ;;  %2109 = vmatpush.bf16.msrb.mxu3 %v5555_v28  ;;  %v5553_v28 = vld [vmem:[%s8271_s2 + $0x1c0] sm:$0xff] }
 0x131   : > { %1228 = vmatmul.bf16.gmra.mxu3 %v1104_v15  ;;  %v6529_v15 = vpack.c.b16 %v6509_v39, %v6157_v19 }
 0x132   : > { %v1301_v18 = vor.u32 %v1300_v59, %v1299_v21  ;;  %v6558_v4 = vpop.f32.mrf.mxu2 }
 0x133   : > { %v6518_v60 = vpop.f32.mrf.mxu0  ;;  %v1105_v10 = vrot.slane %v6529_v15, 2 }
 0x134   : > { %v1189_v3 = vpop.f32.mrf.mxu3  ;;  %2110 = vmatpush.bf16.msrb.mxu3 %v5554_v56  ;;  %v1541_v56 = vrot.slane %v6107_v22, 3 }
 0x135   : > { %v6516_v42 = vadd.f32 %v1189_v3, %v6262_v13  ;;  %v800_v13 = vadd.f32 %v6270_v12, %v6268_v40  ;;  %v1302_v40 = vsel %vm1287_vm3, %v1297_v2, %v1301_v18  ;;  %v1106_v59 = vsel %vm1081_vm2, %v1103_v29, %v1105_v10 }
 0x136   : > { %v1542_v2 = vsel %vm1531_vm4, %v1539_v51, %v1541_v56  ;;  %v805_v51 = vadd.f32 %v6306_v8, %v6304_v9  ;;  %v5565_v8 = vld [vmem:[%s8271_s2 + $0x220] sm:$0xff] }
 0x137   : > { %8361 = vst [vmem:[#allocation30_spill] sm:$0xff] %v6516_v42  ;;  %v1037_v3 = vadd.f32 %v6243_v55, %v800_v13  ;;  %v368_v55 = vpack.c.bf16 %v336_v31, %v336_v31  ;;  %2312 = vmatpush.bf16.msrb.mxu0 %v5565_v8 }
 0x138   : > { %2111 = vmatpush.bf16.msrb.mxu3 %v5553_v28 }
 0x13b   : > { %v697_v12 = vpop.f32.mrf.mxu0  ;;  %1843 = vmatmul.bf16.gmra.mxu2 %v6547_v41 }
 0x13c   : > { %v1191_v61 = vpop.f32.mrf.mxu3  ;;  %v833_v21 = vadd.f32 %v6224_v6, %v697_v12 }
 0x13d   : > { %v6542_v42 = vadd.f32 %v1191_v61, %v1037_v3  ;;  %v6555_v3 = vunpack.c.l.b16 %v368_v55  ;;  %v8365_v61 = vshll.u32 %v6063_v44, 16 }
 0x13e   : > { %v6551_v13 = vadd.f32 %v1012_v63, %v833_v21  ;;  %1432 = vmatmul.bf16.gmra.mxu0 %v1302_v40  ;;  %v8364_v63 = vshrl.u32 %v6063_v44, 16 }
 0x13f   : > { %v1304_v28 = vrot.slane %v8365_v61, 3  ;;  %v6571_v12 = vpack.c.b16 %v6555_v3, %v6555_v3 }
 0x140   : > { %1648 = vmatmul.bf16.gmra.mxu1 %v1542_v2  ;;  %v1303_v31 = vrot.slane %v8364_v63, 2  ;;  %v6582_v63 = vpack.c.b16 %v6166_v36, %v6133_v54  ;;  %v1938_v54 = vshll.u32 %v6402_v57, 16 }
 0x141   : > { %1233 = vmatmul.bf16.gmra.mxu3 %v1106_v59  ;;  %v1107_v21 = vrot.slane %v6571_v12, 2 }
 0x142   : > { %v1305_v40 = vor.u32 %v1304_v28, %v1303_v31  ;;  %v1543_v31 = vrot.slane %v6147_v62, 3  ;;  %v8366_v28 = vshrl.u32 %v6107_v22, 16 }
 0x143   : > { %v6563_v29 = vpop.f32.mrf.mxu0  ;;  %v1108_v9 = vsel %vm1081_vm2, %v1105_v10, %v1107_v21  ;;  %v8367_v21 = vshll.u32 %v6107_v22, 16 }
 0x144   : > { %v1194_v49 = vpop.f32.mrf.mxu3  ;;  %v1306_v44 = vsel %vm1287_vm3, %v1301_v18, %v1305_v40  ;;  %v1544_v36 = vsel %vm1531_vm4, %v1541_v56, %v1543_v31  ;;  %v810_v56 = vadd.f32 %v6363_v35, %v6361_v11  ;;  %v1545_v11 = vrot.slane %v6177_v58, 3 }
 0x145   : > { %v6561_v6 = vadd.f32 %v1194_v49, %v6286_v26  ;;  %v1039_v26 = vadd.f32 %v6264_v14, %v805_v51  ;;  %v1017_v49 = vpop.f32.mrf.mxu2  ;;  %v1307_v51 = vrot.slane %v8366_v28, 2 }
 0x14b   : > { %v702_v2 = vpop.f32.mrf.mxu0  ;;  %1848 = vmatmul.bf16.gmra.mxu2 %v6582_v63 }
 0x14c   : > { %v1196_v59 = vpop.f32.mrf.mxu3  ;;  %v838_v61 = vadd.f32 %v6245_v1, %v702_v2  ;;  %v1940_v2 = vrot.slane %v1938_v54, 1  ;;  %v6616_v54 = vpack.c.b16 %v5951_v52, %v6168_v37  ;;  %v8368_v52 = vshrl.u32 %v6147_v62, 16 }
 0x14d   : > { %v6577_v55 = vadd.f32 %v1196_v59, %v1039_v26  ;;  %v1308_v26 = vrot.slane %v8367_v21, 3  ;;  %v1936_v59 = vshrl.u32 %v6402_v57, 16  ;;  %v8369_v21 = vshll.u32 %v6147_v62, 16 }
 0x14e   : > { %v6589_v14 = vadd.f32 %v1017_v49, %v838_v61  ;;  %1437 = vmatmul.bf16.gmra.mxu0 %v1306_v44  ;;  %v1943_v49 = vshll.u32 %v6438_v43, 16  ;;  %v1311_v37 = vrot.slane %v8368_v52, 2 }
 0x14f   : > { %v1309_v44 = vor.u32 %v1308_v26, %v1307_v51  ;;  %v1941_v61 = vor.u32 %v1940_v2, %v1936_v59  ;;  %v1312_v26 = vrot.slane %v8369_v21, 3  ;;  %v1947_v59 = vshrl.u32 %v6438_v43, 16 }
 0x150   : > { %1653 = vmatmul.bf16.gmra.mxu1 %v1544_v36  ;;  %v1951_v2 = vshll.u32 %v6465_v5, 16 }
 0x151   : > { %1238 = vmatmul.bf16.gmra.mxu3 %v1108_v9  ;;  %v1041_v9 = vadd.f32 %v6291_v47, %v810_v56  ;;  %v1310_v22 = vsel %vm1287_vm3, %v1305_v40, %v1309_v44  ;;  %v1546_v47 = vsel %vm1531_vm4, %v1543_v31, %v1545_v11  ;;  %v5564_v31 = vld [vmem:[%s8271_s2 + $0x218] sm:$0xff] }
 0x152   : > { %2313 = vmatpush.bf16.msrb.mxu0 %v5564_v31  ;;  %v1959_v31 = vshll.u32 %v6497_v50, 16 }
 0x153   : > { %v6598_v10 = vpop.f32.mrf.mxu0 }
 0x154   : > { %v1199_v1 = vpop.f32.mrf.mxu3 }
 0x155   : > { %v6596_v18 = vadd.f32 %v1199_v1, %v6343_v32  ;;  %v1945_v32 = vrot.slane %v1943_v49, 1  ;;  %v1313_v49 = vor.u32 %v1312_v26, %v1311_v37  ;;  %v8374_v26 = vshll.u32 %v6177_v58, 16 }
 0x157   : > { %v1946_v28 = vsel %vm473_vm0, %v1941_v61, %v1945_v32  ;;  %v1949_v56 = vor.u32 %v1947_v59, %v1945_v32  ;;  %v1953_v61 = vrot.slane %v1951_v2, 1  ;;  %v1316_v59 = vrot.slane %v8374_v26, 3 }
 0x158   : > { %v1955_v2 = vshrl.u32 %v6465_v5, 16 }
 0x159   : > { %v1954_v52 = vsel %vm473_vm0, %v1949_v56, %v1953_v61 }
 0x15a   : > { %v1957_v56 = vor.u32 %v1955_v2, %v1953_v61  ;;  %v8379_v61 = vld [vmem:[#allocation12_spill] sm:$0xff] }
 0x15b   : > { %v6611_v1 = vpop.f32.mrf.mxu0  ;;  %1853 = vmatmul.bf16.gmra.mxu2 %v6616_v54 }
 0x15c   : > { %v1201_v8 = vpop.f32.mrf.mxu3 }
 0x15d   : > { %v6609_v36 = vadd.f32 %v1201_v8, %v1041_v9 }
 0x15e   : > { %1442 = vmatmul.bf16.gmra.mxu0 %v1310_v22 }
 0x160   : > { %1658 = vmatmul.bf16.gmra.mxu1 %v1546_v47  ;;  %v8370_v47 = vld [vmem:[#allocation3_spill] sm:$0xff] }
 0x161   : > { %2112 = vmatmul.bf16.vlgmr.msrb.gmra.mxu3 %v1946_v28  ;;  %v1314_v28 = vsel %vm1287_vm3, %v1309_v44, %v1313_v49 }
 0x163   : > { %v6625_v40 = vpop.f32.mrf.mxu0 }
 0x164   : > { %v1204_v35 = vpop.f32.mrf.mxu3 }
 0x165   : > { %v6623_v51 = vadd.f32 %v1204_v35, %v6411_v20  ;;  %v815_v20 = vadd.f32 %v6426_v7, %v6424_v33  ;;  %v6646_v35 = vpack.c.b16 %v8370_v47, %v5953_v53  ;;  %v8371_v33 = vld [vmem:[#allocation2_spill] sm:$0xff]  ;;  %v8373_v53 = vshrl.u32 %v6177_v58, 16  ;;  %v8375_v58 = vld [vmem:[#allocation4_spill] sm:$0xff] }
 0x166   : > { %v1547_v7 = vrot.slane %v8371_v33, 3 }
 0x167   : > { %v1043_v9 = vadd.f32 %v6348_v34, %v815_v20  ;;  %v1315_v21 = vrot.slane %v8373_v53, 2  ;;  %v8377_v53 = vld [vmem:[#allocation10_spill] sm:$0xff] }
 0x168   : > { %v1548_v34 = vsel %vm1531_vm4, %v1545_v11, %v1547_v7  ;;  %v820_v11 = vadd.f32 %v6453_v24, %v6451_v16  ;;  %v1549_v16 = vrot.slane %v6030_v23, 3  ;;  %v5563_v24 = vld [vmem:[%s8271_s2 + $0x210] sm:$0xff] }
 0x169   : > { %v1317_v20 = vor.u32 %v1316_v59, %v1315_v21  ;;  %2314 = vmatpush.bf16.msrb.mxu0 %v5563_v24 }
 0x16b   : > { %v6641_v22 = vpop.f32.mrf.mxu0  ;;  %1858 = vmatmul.bf16.gmra.mxu2 %v6646_v35 }
 0x16c   : > { %v1206_v8 = vpop.f32.mrf.mxu3 }
 0x16d   : > { %v6639_v62 = vadd.f32 %v1206_v8, %v1043_v9  ;;  %v1961_v9 = vrot.slane %v1959_v31, 1 }
 0x16e   : > { %1447 = vmatmul.bf16.gmra.mxu0 %v1314_v28 }
 0x170   : > { %1663 = vmatmul.bf16.gmra.mxu1 %v1548_v34  ;;  %v8376_v34 = vld [vmem:[#allocation5_spill] sm:$0xff] }
 0x171   : > { %2117 = vmatmul.bf16.gmra.mxu3 %v1954_v52  ;;  %v1318_v52 = vsel %vm1287_vm3, %v1313_v49, %v1317_v20  ;;  %v8378_v49 = vld [vmem:[#allocation11_spill] sm:$0xff] }
 0x172   : > { %v790_v21 = vadd.f32 %v8379_v61, %v8378_v49  ;;  %v8382_v61 = vld [vmem:[#allocation6_spill] sm:$0xff] }
 0x173   : > { %v6655_v44 = vpop.f32.mrf.mxu0 }
 0x174   : > { %v1209_v32 = vpop.f32.mrf.mxu3 }
 0x175   : > { %v6653_v37 = vadd.f32 %v1209_v32, %v6441_v25  ;;  %v1045_v25 = vadd.f32 %v6428_v30, %v820_v11  ;;  %v6671_v32 = vpack.c.b16 %v8376_v34, %v8375_v58  ;;  %v1550_v30 = vsel %vm1531_vm4, %v1547_v7, %v1549_v16 }
 0x176   : > { %v8380_v11 = vshrl.u32 %v8371_v33, 16 }
 0x177   : > { %8372 = vst [vmem:[#allocation3_spill] sm:$0xff] %v6653_v37  ;;  %v1962_v37 = vsel %vm473_vm0, %v1957_v56, %v1961_v9 }
 0x178   : > { %v1319_v56 = vrot.slane %v8380_v11, 2 }
 0x17b   : > { %v967_v47 = vpop.f32.mrf.mxu0  ;;  %1863 = vmatmul.bf16.gmra.mxu2 %v6671_v32 }
 0x17c   : > { %v1211_v8 = vpop.f32.mrf.mxu3  ;;  %v1032_v26 = vadd.f32 %v967_v47, %v8377_v53  ;;  %v1967_v47 = vshll.u32 %v6547_v41, 16 }
 0x17d   : > { %v6666_v28 = vadd.f32 %v1211_v8, %v1045_v25  ;;  %v1963_v8 = vshrl.u32 %v6497_v50, 16 }
 0x17e   : > { %1452 = vmatmul.bf16.gmra.mxu0 %v1318_v52  ;;  %v825_v52 = vadd.f32 %v6477_v38, %v6475_v17  ;;  %v1969_v53 = vrot.slane %v1967_v47, 1 }
 0x17f   : > { %v1965_v34 = vor.u32 %v1963_v8, %v1961_v9  ;;  %v829_v9 = vpop.f32.mrf.mxu1  ;;  %v6711_v8 = vpop.f32.mrf.mxu2 }
 0x180   : > { %1668 = vmatmul.bf16.gmra.mxu1 %v1550_v30 }
 0x181   : > { %2122 = vmatmul.bf16.gmra.mxu3 %v1962_v37  ;;  %v8381_v37 = vshll.u32 %v8371_v33, 16  ;;  %v1970_v17 = vsel %vm473_vm0, %v1965_v34, %v1969_v53  ;;  %v8388_v34 = vshrl.u32 %v6030_v23, 16 }
 0x183   : > { %v969_v31 = vpop.f32.mrf.mxu0  ;;  %v1320_v7 = vrot.slane %v8381_v37, 3 }
 0x184   : > { %v1214_v59 = vpop.f32.mrf.mxu3  ;;  %v1033_v25 = vadd.f32 %v969_v31, %v790_v21  ;;  %v8383_v21 = vld [vmem:[#allocation7_spill] sm:$0xff]  ;;  %v8384_v31 = vld [vmem:[#allocation14_spill] sm:$0xff] }
 0x185   : > { %v6684_v2 = vadd.f32 %v1214_v59, %v6468_v0  ;;  %v1321_v58 = vor.u32 %v1320_v7, %v1319_v56  ;;  %v1047_v0 = vadd.f32 %v6459_v48, %v825_v52  ;;  %v6700_v59 = vpack.c.b16 %v8383_v21, %v8382_v61  ;;  %v8385_v56 = vld [vmem:[#allocation15_spill] sm:$0xff] }
 0x186   : > { %v1551_v48 = vrot.slane %v6069_v46, 3  ;;  %v1975_v61 = vshll.u32 %v6582_v63, 16  ;;  %v830_v21 = vadd.f32 %v829_v9, %v6518_v60  ;;  %v8391_v60 = vld [vmem:[#allocation8_spill] sm:$0xff] }
 0x187   : > { %v1322_v33 = vsel %vm1287_vm3, %v1317_v20, %v1321_v58  ;;  %v8386_v20 = vld [vmem:[#allocation16_spill] sm:$0xff] }
 0x188   : > { %v1552_v38 = vsel %vm1531_vm4, %v1549_v16, %v1551_v48  ;;  %v795_v37 = vadd.f32 %v8386_v20, %v8385_v56  ;;  %v1971_v16 = vshrl.u32 %v6547_v41, 16  ;;  %v1629_v56 = vpop.f32.mrf.mxu1 }
 0x18b   : > { %v972_v49 = vpop.f32.mrf.mxu0  ;;  %1868 = vmatmul.bf16.gmra.mxu2 %v6700_v59 }
 0x18c   : > { %v1216_v30 = vpop.f32.mrf.mxu3  ;;  %v6703_v11 = vadd.f32 %v972_v49, %v8384_v31 }
 0x18d   : > { %v6695_v24 = vadd.f32 %v1216_v30, %v1047_v0  ;;  %v1323_v0 = vrot.slane %v8388_v34, 2  ;;  %v8389_v30 = vshll.u32 %v6030_v23, 16 }
 0x18e   : > { %1457 = vmatmul.bf16.gmra.mxu0 %v1322_v33 }
 0x18f   : > { %v1324_v49 = vrot.slane %v8389_v30, 3  ;;  %v5562_v30 = vld [vmem:[%s8271_s2 + $0x208] sm:$0xff] }
 0x190   : > { %1673 = vmatmul.bf16.gmra.mxu1 %v1552_v38  ;;  %v1977_v38 = vrot.slane %v1975_v61, 1  ;;  %2315 = vmatpush.bf16.msrb.mxu0 %v5562_v30 }
 0x191   : > { %2127 = vmatmul.bf16.gmra.mxu3 %v1970_v17  ;;  %v1325_v31 = vor.u32 %v1324_v49, %v1323_v0  ;;  %v1973_v17 = vor.u32 %v1971_v16, %v1969_v53  ;;  %v6735_v53 = vpack.c.b16 %v6157_v19, %v8391_v60 }
 0x193   : > { %v974_v52 = vpop.f32.mrf.mxu0 }
 0x194   : > { %v1219_v7 = vpop.f32.mrf.mxu3  ;;  %v6720_v33 = vadd.f32 %v974_v52, %v795_v37  ;;  %v1326_v37 = vsel %vm1287_vm3, %v1321_v58, %v1325_v31  ;;  %v1824_v52 = vpop.f32.mrf.mxu2 }
 0x195   : > { %v6714_v47 = vadd.f32 %v1219_v7, %v6502_v45  ;;  %v1049_v45 = vadd.f32 %v6500_v27, %v830_v21  ;;  %v8390_v7 = vld [vmem:[#allocation26_spill] sm:$0xff]  ;;  %v1978_v27 = vsel %vm473_vm0, %v1973_v17, %v1977_v38  ;;  %v8393_v21 = vld [vmem:[#allocation27_spill] sm:$0xff] }
 0x196   : > { %v1244_v34 = vadd.f32 %v8390_v7, %v1032_v26  ;;  %v8392_v26 = vld [vmem:[#allocation9_spill] sm:$0xff]  ;;  %v1245_v19 = vadd.f32 %v8393_v21, %v1033_v25 }
 0x197   : > { %8387 = vst [vmem:[#allocation2_spill] sm:$0xff] %v6714_v47  ;;  %v1553_v49 = vrot.slane %v8392_v26, 3  ;;  %v5576_v25 = vld [vmem:[%s8273_s4 + $0x38] sm:$0xff] }
 0x198   : > { %3018 = vmatpush.bf16.msra.mxu2 %v5576_v25 }
 0x199   : > { %v1554_v16 = vsel %vm1531_vm4, %v1551_v48, %v1553_v49  ;;  %v1983_v48 = vshll.u32 %v6616_v54, 16 }
 0x19b   : > { %v1423_v23 = vpop.f32.mrf.mxu0  ;;  %1873 = vmatmul.bf16.gmra.mxu2 %v6735_v53 }
 0x19c   : > { %v1221_v20 = vpop.f32.mrf.mxu3  ;;  %v1488_v9 = vadd.f32 %v1423_v23, %v1244_v34  ;;  %v8395_v34 = vshll.u32 %v6069_v46, 16  ;;  %v1826_v60 = vpop.f32.mrf.mxu2 }
 0x19d   : > { %v6727_v47 = vadd.f32 %v1221_v20, %v1049_v45  ;;  %v8394_v20 = vshrl.u32 %v6069_v46, 16 }
 0x19e   : > { %v1694_v0 = vadd.f32 %v1629_v56, %v1488_v9  ;;  %1462 = vmatmul.bf16.gmra.mxu0 %v1326_v37  ;;  %v1631_v56 = vpop.f32.mrf.mxu1  ;;  %v1328_v23 = vrot.slane %v8395_v34, 3 }
 0x19f   : > { %v1327_v7 = vrot.slane %v8394_v20, 2 }
 0x1a0   : > { %v6740_v58 = vadd.f32 %v1824_v52, %v1694_v0  ;;  %1678 = vmatmul.bf16.gmra.mxu1 %v1554_v16  ;;  %v1979_v52 = vshrl.u32 %v6582_v63, 16  ;;  %v1985_v16 = vrot.slane %v1983_v48, 1 }
 0x1a1   : > { %2132 = vmatmul.bf16.gmra.mxu3 %v1978_v27  ;;  %v1329_v27 = vor.u32 %v1328_v23, %v1327_v7  ;;  %v2465_v23 = vld [vmem:[%s6768_s15] sm:$0xff] }
 0x1a2   : > { %v1981_v46 = vor.u32 %v1979_v52, %v1977_v38  ;;  %v8398_v52 = vld [vmem:[#allocation29_spill] sm:$0xff] }
 0x1a3   : > { %v1425_v17 = vpop.f32.mrf.mxu0  ;;  %v1330_v20 = vsel %vm1287_vm3, %v1325_v31, %v1329_v27  ;;  %v2467_v31 = vld [vmem:[%s6768_s15 + $0x10] sm:$0xff]  ;;  %v1247_v48 = vadd.f32 %v8398_v52, %v6720_v33  ;;  %v5561_v33 = vld [vmem:[%s8271_s2 + $0x200] sm:$0xff] }
 0x1a4   : > { %v1224_v61 = vpop.f32.mrf.mxu3  ;;  %v1489_v37 = vadd.f32 %v1425_v17, %v1245_v19  ;;  %v8397_v19 = vld [vmem:[#allocation28_spill] sm:$0xff]  ;;  %v1986_v34 = vsel %vm473_vm0, %v1981_v46, %v1985_v16  ;;  %2316 = vmatpush.bf16.msrb.mxu0 %v5561_v33 }
 0x1a5   : > { %v6745_v45 = vadd.f32 %v1224_v61, %v6551_v13  ;;  %v8396_v13 = vld [vmem:[#allocation13_spill] sm:$0xff]  ;;  %v1246_v17 = vadd.f32 %v8397_v19, %v6703_v11  ;;  %v1555_v11 = vrot.slane %v6529_v15, 3  ;;  %v5575_v33 = vld [vmem:[%s8273_s4 + $0x30] sm:$0xff] }
 0x1a6   : > { %v835_v30 = vadd.f32 %v8396_v13, %v6563_v29  ;;  %v1695_v9 = vadd.f32 %v1631_v56, %v1489_v37  ;;  %v5584_v61 = vld [vmem:[%s8273_s4 + $0x78] sm:$0xff]  ;;  %v5776_v37 = vmov 0   ;;  %3019 = vmatpush.bf16.msra.mxu2 %v5575_v33 }
 0x1a7   : > { %2901 = vmatpush.bf16.msra.mxu1 %v5584_v61  ;;  %5709 = vset.pattern.permute.xlu0 %v5776_v37  ;;  %v1987_v61 = vshrl.u32 %v6616_v54, 16 }
 0x1a8   : > { %v6759_v0 = vadd.f32 %v1826_v60, %v1695_v9  ;;  %v1051_v21 = vadd.f32 %v6558_v4, %v835_v30  ;;  %v6777_v4 = vpack.c.b16 %v6555_v3, %v6509_v39  ;;  %5710 = vset.pattern.permute.xlu1 %v5776_v37  ;;  %2493 = vperm.xlu0 %5709, %v2465_v23   ;;  %v8399_v30 = vshrl.u32 %v8392_v26, 16 }
 0x1a9   : > { %2503 = vperm.xlu1 %5710, %v2467_v31   ;;  %v1556_v39 = vsel %vm1531_vm4, %v1553_v49, %v1555_v11  ;;  %5711 = vset.pattern.permute.xlu2 %v5776_v37  ;;  %v8400_v9 = vshll.u32 %v8392_v26, 16  ;;  %v1989_v37 = vor.u32 %v1987_v61, %v1985_v16  ;;  %v2471_v61 = vld [vmem:[%s6768_s15 + $0x30] sm:$0xff] }
 0x1aa   : > { %v1331_v60 = vrot.slane %v8399_v30, 2 }
 0x1ab   : > { %v1428_v56 = vpop.f32.mrf.mxu0  ;;  %1878 = vmatmul.bf16.gmra.mxu2 %v6777_v4  ;;  %v1332_v46 = vrot.slane %v8400_v9, 3 }
 0x1ac   : > { %v1226_v29 = vpop.f32.mrf.mxu3  ;;  %v6779_v7 = vadd.f32 %v1428_v56, %v1246_v17  ;;  %v2468_v17 = vld [vmem:[%s6768_s15 + $0x18] sm:$0xff]  ;;  %v337_v56 = vld [vmem:[%s5880_s9 + $0xe8] sm:$0xff] }
 0x1ad   : > { %v6772_v38 = vadd.f32 %v1226_v29, %v1051_v21  ;;  %v1991_v21 = vshll.u32 %v6646_v35, 16  ;;  %v2466_v29 = vld [vmem:[%s6768_s15 + $0x8] sm:$0xff]  ;;  %v1333_v26 = vor.u32 %v1332_v46, %v1331_v60  ;;  %v8402_v60 = vld [vmem:[#allocation30_spill] sm:$0xff] }
 0x1ae   : > { %1467 = vmatmul.bf16.gmra.mxu0 %v1330_v20  ;;  %v338_v20 = vld [vmem:[%s5880_s9 + $0xf0] sm:$0xff] }
 0x1af   : > { %v370_v23 = vpack.c.bf16 %v338_v20, %v338_v20  ;;  %v1993_v31 = vrot.slane %v1991_v21, 1  ;;  %v1334_v30 = vsel %vm1287_vm3, %v1329_v27, %v1333_v26  ;;  %v8403_v21 = vld [vmem:[#allocation18_spill] sm:$0xff]  ;;  %v1557_v27 = vrot.slane %v6571_v12, 3 }
 0x1b0   : > { %1683 = vmatmul.bf16.gmra.mxu1 %v1556_v39  ;;  %2498 = vperm.xlu0 %5709, %v2466_v29   ;;  %v1336_v29 = vshrl.u32 %v6529_v15, 16 }
 0x1b1   : > { %2137 = vmatmul.bf16.gmra.mxu3 %v1986_v34  ;;  %v369_v34 = vpack.c.bf16 %v337_v56, %v337_v56  ;;  %2508 = vperm.xlu1 %5710, %v2468_v17   ;;  %v1740_v52 = vunpack.c.l.b16 %v370_v23  ;;  %v1994_v16 = vsel %vm473_vm0, %v1989_v37, %v1993_v31  ;;  %v8404_v17 = vld [vmem:[#allocation22_spill] sm:$0xff] }
 0x1b2   : > { %v1338_v37 = vrot.slane %v1336_v29, 2 }
 0x1b3   : > { %v1430_v13 = vpop.f32.mrf.mxu0 }
 0x1b4   : > { %v1229_v3 = vpop.f32.mrf.mxu3  ;;  %v6796_v49 = vadd.f32 %v1430_v13, %v1247_v48 }
 0x1b5   : > { %v6790_v25 = vadd.f32 %v1229_v3, %v6589_v14  ;;  %v8401_v14 = vld [vmem:[#allocation17_spill] sm:$0xff]  ;;  %v1739_v3 = vunpack.c.l.b16 %v369_v34 }
 0x1b6   : > { %v840_v19 = vadd.f32 %v8401_v14, %v6598_v10  ;;  %v1339_v14 = vshll.u32 %v6529_v15, 16  ;;  %v5583_v15 = vld [vmem:[%s8273_s4 + $0x70] sm:$0xff] }
 0x1b7   : > { %v6813_v9 = vpack.c.b16 %v1740_v52, %v1739_v3  ;;  %v1995_v52 = vshrl.u32 %v6646_v35, 16  ;;  %2902 = vmatpush.bf16.msra.mxu1 %v5583_v15 }
 0x1b8   : > { %v1053_v39 = vadd.f32 %v6711_v8, %v840_v19  ;;  %v843_v8 = vadd.f32 %v8403_v21, %v6611_v1  ;;  %2523 = vperm.xlu0 %5709, %v2471_v61   ;;  %v2472_v19 = vld [vmem:[%s6768_s15 + $0x38] sm:$0xff]  ;;  %v1558_v1 = vsel %vm1531_vm4, %v1555_v11, %v1557_v27  ;;  %v1999_v11 = vshll.u32 %v6671_v32, 16 }
 0x1b9   : > { %2528 = vperm.xlu1 %5710, %v2472_v19   ;;  %v1997_v61 = vor.u32 %v1995_v52, %v1993_v31 }
 0x1ba   : > { %v1054_v56 = vadd.f32 %v8404_v17, %v843_v8  ;;  %v2001_v21 = vrot.slane %v1999_v11, 1  ;;  %v8406_v8 = vld [vmem:[#allocation23_spill] sm:$0xff]  ;;  %v8407_v17 = vld [vmem:[#allocation20_spill] sm:$0xff] }
 0x1bb   : > { %v1433_v10 = vpop.f32.mrf.mxu0  ;;  %1883 = vmatmul.bf16.gmra.mxu2 %v6813_v9  ;;  %v848_v31 = vadd.f32 %v8407_v17, %v6641_v22 }
 0x1bc   : > { %v1231_v48 = vpop.f32.mrf.mxu3  ;;  %v6816_v46 = vadd.f32 %v1433_v10, %v8402_v60  ;;  %v8405_v10 = vld [vmem:[#allocation19_spill] sm:$0xff]  ;;  %v2475_v60 = vld [vmem:[%s6768_s15 + $0x50] sm:$0xff] }
 0x1bd   : > { %v6810_v13 = vadd.f32 %v1231_v48, %v1053_v39  ;;  %v1341_v39 = vrot.slane %v1339_v14, 3  ;;  %v2474_v48 = vld [vmem:[%s6768_s15 + $0x48] sm:$0xff] }
 0x1be   : > { %1472 = vmatmul.bf16.gmra.mxu0 %v1334_v30  ;;  %v845_v30 = vadd.f32 %v8405_v10, %v6625_v40  ;;  %v2002_v40 = vsel %vm473_vm0, %v1997_v61, %v2001_v21  ;;  %v2007_v10 = vshll.u32 %v6700_v59, 16  ;;  %v2481_v61 = vld [vmem:[%s6768_s15 + $0x80] sm:$0xff] }
 0x1c0   : > { %1688 = vmatmul.bf16.gmra.mxu1 %v1558_v1  ;;  %2538 = vperm.xlu0 %5709, %v2474_v48   ;;  %v2477_v1 = vld [vmem:[%s6768_s15 + $0x60] sm:$0xff]  ;;  %v2003_v48 = vshrl.u32 %v6671_v32, 16 }
 0x1c1   : > { %2142 = vmatmul.bf16.gmra.mxu3 %v1994_v16  ;;  %v1342_v16 = vor.u32 %v1341_v39, %v1338_v37  ;;  %2543 = vperm.xlu1 %5710, %v2475_v60  }
 0x1c3   : > { %v1435_v23 = vpop.f32.mrf.mxu0  ;;  %v1343_v14 = vsel %vm1287_vm3, %v1333_v26, %v1342_v16  ;;  %v8408_v26 = vld [vmem:[#allocation24_spill] sm:$0xff] }
 0x1c4   : > { %v1234_v20 = vpop.f32.mrf.mxu3  ;;  %v6838_v3 = vadd.f32 %v1435_v23, %v6542_v42  ;;  %v1055_v42 = vadd.f32 %v8406_v8, %v845_v30  ;;  %v2478_v23 = vld [vmem:[%s6768_s15 + $0x68] sm:$0xff]  ;;  %v2480_v30 = vld [vmem:[%s6768_s15 + $0x78] sm:$0xff] }
 0x1c5   : > { %v6832_v34 = vadd.f32 %v1234_v20, %v1054_v56  ;;  %v1345_v56 = vshrl.u32 %v6571_v12, 16  ;;  %v1348_v20 = vshll.u32 %v6571_v12, 16  ;;  %v8409_v12 = vld [vmem:[#allocation21_spill] sm:$0xff] }
 0x1c6   : > { %v850_v60 = vadd.f32 %v8409_v12, %v6655_v44  ;;  %v2222_v12 = vrot.slane %v6438_v43, 1  ;;  %v2489_v43 = vld [vmem:[%s6768_s15 + $0xc0] sm:$0xff] }
 0x1c7   : > { %v1347_v52 = vrot.slane %v1345_v56, 2  ;;  %v1350_v11 = vrot.slane %v1348_v20, 3  ;;  %v5582_v56 = vld [vmem:[%s8273_s4 + $0x68] sm:$0xff]  ;;  %v2483_v20 = vld [vmem:[%s6768_s15 + $0x90] sm:$0xff] }
 0x1c8   : > { %2553 = vperm.xlu0 %5709, %v2477_v1   ;;  %2903 = vmatpush.bf16.msra.mxu1 %v5582_v56  ;;  %v2224_v56 = vrot.slane %v6465_v5, 1 }
 0x1c9   : > { %2558 = vperm.xlu1 %5710, %v2478_v23   ;;  %v1351_v8 = vor.u32 %v1350_v11, %v1347_v52  ;;  %v2469_v23 = vld [vmem:[%s6768_s15 + $0x20] sm:$0xff]  ;;  %v2015_v52 = vshll.u32 %v6735_v53, 16  ;;  %v2486_v11 = vld [vmem:[%s6768_s15 + $0xa8] sm:$0xff] }
 0x1ca   : > { %2513 = vperm.xlu2 %5711, %v2469_v23  }
 0x1cb   : > { %v1438_v29 = vpop.f32.mrf.mxu0  ;;  %v1352_v17 = vsel %vm1287_vm3, %v1342_v16, %v1351_v8 }
 0x1cc   : > { %v1236_v33 = vpop.f32.mrf.mxu3  ;;  %v6851_v19 = vadd.f32 %v1438_v29, %v6561_v6  ;;  %v1056_v6 = vadd.f32 %v8408_v26, %v848_v31  ;;  %v8410_v29 = vld [vmem:[#allocation25_spill] sm:$0xff] }
 0x1cd   : > { %v6847_v27 = vadd.f32 %v1236_v33, %v1055_v42  ;;  %v2005_v42 = vor.u32 %v2003_v48, %v2001_v21  ;;  %v2009_v33 = vrot.slane %v2007_v10, 1  ;;  %v2484_v26 = vld [vmem:[%s6768_s15 + $0x98] sm:$0xff]  ;;  %v2470_v48 = vld [vmem:[%s6768_s15 + $0x28] sm:$0xff]  ;;  %v2487_v10 = vld [vmem:[%s6768_s15 + $0xb0] sm:$0xff] }
 0x1ce   : > { %1477 = vmatmul.bf16.gmra.mxu0 %v1343_v14  ;;  %v1057_v14 = vadd.f32 %v8410_v29, %v850_v60  ;;  %v2017_v60 = vrot.slane %v2015_v52, 1  ;;  %v2490_v29 = vld [vmem:[%s6768_s15 + $0xc8] sm:$0xff]  ;;  %v2479_v52 = vld [vmem:[%s6768_s15 + $0x70] sm:$0xff] }
 0x1cf   : > { %v2010_v21 = vsel %vm473_vm0, %v2005_v42, %v2009_v33 }
 0x1d0   : > { %2568 = vperm.xlu0 %5709, %v2480_v30   ;;  %v2221_v30 = vrot.slane %v6402_v57, 1 }
 0x1d1   : > { %2147 = vmatmul.bf16.gmra.mxu3 %v2002_v40  ;;  %2573 = vperm.xlu1 %5710, %v2481_v61  }
 0x1d2   : > { %2518 = vperm.xlu2 %5711, %v2470_v48   ;;  %v2223_v42 = vsel %vm869_vm1, %v2221_v30, %v2222_v12  ;;  %v2027_v48 = vshrl.u32 %v6777_v4, 16  ;;  %v339_v30 = vld [vmem:[%s5880_s9 + $0xf8] sm:$0xff] }
 0x1d3   : > { %v1440_v15 = vpop.f32.mrf.mxu0 }
 0x1d4   : > { %v1239_v37 = vpop.f32.mrf.mxu3  ;;  %v6864_v22 = vadd.f32 %v1440_v15, %v6577_v55  ;;  %v5574_v55 = vld [vmem:[%s8273_s4 + $0x28] sm:$0xff]  ;;  %v2011_v15 = vshrl.u32 %v6700_v59, 16 }
 0x1d5   : > { %v6861_v39 = vadd.f32 %v1239_v37, %v1056_v6  ;;  %3020 = vmatpush.bf16.msra.mxu2 %v5574_v55 }
 0x1d8   : > { %2583 = vperm.xlu0 %5709, %v2483_v20  }
 0x1d9   : > { %2588 = vperm.xlu1 %5710, %v2484_v26   ;;  %v2225_v26 = vsel %vm869_vm1, %v2222_v12, %v2224_v56  ;;  %v2482_v12 = vld [vmem:[%s6768_s15 + $0x88] sm:$0xff] }
 0x1db   : > { %v1443_v44 = vpop.f32.mrf.mxu0 }
 0x1dc   : > { %v1241_v40 = vpop.f32.mrf.mxu3  ;;  %v6880_v31 = vadd.f32 %v1443_v44, %v6596_v18  ;;  %v2023_v44 = vshll.u32 %v6777_v4, 16 }
 0x1dd   : > { %v6876_v1 = vadd.f32 %v1241_v40, %v1057_v14 }
 0x1de   : > { %1482 = vmatmul.bf16.gmra.mxu0 %v1352_v17  ;;  %v5581_v17 = vld [vmem:[%s8273_s4 + $0x60] sm:$0xff]  ;;  %v2025_v23 = vrot.slane %v2023_v44, 1  ;;  %v2035_v44 = vshrl.u32 %v6813_v9, 16 }
 0x1df   : > { %2904 = vmatpush.bf16.msra.mxu1 %v5581_v17 }
 0x1e0   : > { %2598 = vperm.xlu0 %5709, %v2486_v11  }
 0x1e1   : > { %2152 = vmatmul.bf16.gmra.mxu3 %v2010_v21  ;;  %2603 = vperm.xlu1 %5710, %v2487_v10   ;;  %v2476_v21 = vld [vmem:[%s6768_s15 + $0x58] sm:$0xff]  ;;  %v2031_v10 = vshll.u32 %v6813_v9, 16 }
 0x1e3   : > { %v1445_v6 = vpop.f32.mrf.mxu0 }
 0x1e4   : > { %v2113_v18 = vpop.f32.mrf.mxu3  ;;  %v6893_v37 = vadd.f32 %v1445_v6, %v6609_v36 }
 0x1e5   : > { %v6890_v16 = vadd.f32 %v2113_v18, %v6740_v58  ;;  %v2013_v58 = vor.u32 %v2011_v15, %v2009_v33  ;;  %v2473_v33 = vld [vmem:[%s6768_s15 + $0x40] sm:$0xff]  ;;  %v8411_v18 = vld [vmem:[#allocation3_spill] sm:$0xff] }
 0x1e6   : > { %2533 = vperm.xlu2 %5711, %v2473_v33  }
 0x1e7   : > { %v2018_v57 = vsel %vm473_vm0, %v2013_v58, %v2017_v60  ;;  %v2226_v58 = vrot.slane %v6497_v50, 1  ;;  %v2485_v50 = vld [vmem:[%s6768_s15 + $0xa0] sm:$0xff] }
 0x1e8   : > { %2613 = vperm.xlu0 %5709, %v2489_v43  }
 0x1e9   : > { %2618 = vperm.xlu1 %5710, %v2490_v29   ;;  %v5572_v29 = vld [vmem:[%s8273_s4 + $0x18] sm:$0xff] }
 0x1eb   : > { %v1448_v8 = vpop.f32.mrf.mxu0 }
 0x1ec   : > { %v2115_v36 = vpop.f32.mrf.mxu3  ;;  %v6907_v55 = vadd.f32 %v1448_v8, %v6623_v51  ;;  %v2019_v51 = vshrl.u32 %v6735_v53, 16  ;;  %v371_v8 = vpack.c.bf16 %v339_v30, %v339_v30  ;;  %v5571_v30 = vld [vmem:[%s8273_s4 + $0x10] sm:$0xff] }
 0x1ed   : > { %v6903_v61 = vadd.f32 %v2115_v36, %v6759_v0  ;;  %v5573_v0 = vld [vmem:[%s8273_s4 + $0x20] sm:$0xff]  ;;  %v2033_v36 = vrot.slane %v2031_v10, 1 }
 0x1ee   : > { %2317 = vmatmul.bf16.vlgmr.msrb.gmra.mxu0 %v2223_v42  ;;  %3021 = vmatpush.bf16.msra.mxu2 %v5573_v0  ;;  %v2021_v20 = vor.u32 %v2019_v51, %v2017_v60  ;;  %v2029_v60 = vor.u32 %v2027_v48, %v2025_v23  ;;  %v1933_v33 = vunpack.c.l.b16 %v371_v8 }
 0x1ef   : > { %2548 = vperm.xlu2 %5711, %v2476_v21   ;;  %v2488_v21 = vld [vmem:[%s6768_s15 + $0xb8] sm:$0xff]  ;;  %s5666_s15 = smul.u32 20, %s8489_s21 }
 0x1f0   : > { %v2026_v15 = vsel %vm473_vm0, %v2021_v20, %v2025_v23  ;;  %v2228_v20 = vrot.slane %v6547_v41, 1  ;;  %v2037_v23 = vor.u32 %v2035_v44, %v2033_v36  ;;  %v6973_v41 = vpop.f32.mrf.mxu1 }
 0x1f1   : > { %2157 = vmatmul.bf16.gmra.mxu3 %v2018_v57  ;;  %v2227_v57 = vsel %vm869_vm1, %v2224_v56, %v2226_v58  ;;  %v6960_v56 = vpop.f32.mrf.mxu2  ;;  %s305_s20 = sadd.s32 %s5667_s19, %s5666_s15 }
 0x1f2   : > { %3022 = vmatpush.bf16.msra.mxu2 %v5572_v29  ;;  %s4662_s21 = sshll.u32 %s305_s20, 3 }
 0x1f3   : > { %v1450_v14 = vpop.f32.mrf.mxu0  ;;  %s8155_s7 = scalar_lea.vmem %s8275_s6, %s4662_s21 }
 0x1f4   : > { %v6917_v40 = vadd.f32 %v1450_v14, %v6639_v62  ;;  %v6949_v14 = vpack.c.b16 %v1933_v33, %v1933_v33 }
 0x1f6   : > { %v2039_v17 = vshll.u32 %v6949_v14, 16  ;;  %3023 = vmatpush.bf16.msra.mxu2 %v5571_v30 }
 0x1f7   : > { %2563 = vperm.xlu2 %5711, %v2479_v52  }
 0x1fb   : > { %v1453_v62 = vpop.f32.mrf.mxu0 }
 0x1fc   : > { %v6928_v6 = vadd.f32 %v1453_v62, %v8411_v18  ;;  %v2041_v62 = vrot.slane %v2039_v17, 1  ;;  %v2229_v18 = vsel %vm869_vm1, %v2226_v58, %v2228_v20  ;;  %v6979_v58 = vpop.f32.mrf.mxu3 }
 0x1fe   : > { %2322 = vmatmul.bf16.gmra.mxu0 %v2225_v26 }
 0x1ff   : > { %2578 = vperm.xlu2 %5711, %v2482_v12   ;;  %v2230_v12 = vrot.slane %v6582_v63, 1 }
 0x201   : > { %2162 = vmatmul.bf16.gmra.mxu3 %v2026_v15  ;;  %v8412_v15 = vld [vmem:[#allocation2_spill] sm:$0xff]  ;;  %v2231_v8 = vsel %vm869_vm1, %v2228_v20, %v2230_v12 }
 0x203   : > { %v1455_v11 = vpop.f32.mrf.mxu0 }
 0x204   : > { %v6933_v5 = vadd.f32 %v1455_v11, %v6666_v28  ;;  %v2034_v28 = vsel %vm473_vm0, %v2029_v60, %v2033_v36  ;;  %v6968_v11 = vpop.f32.mrf.mxu2 }
 0x207   : > { %2593 = vperm.xlu2 %5711, %v2485_v50   ;;  %v2232_v50 = vrot.slane %v6616_v54, 1  ;;  %v5570_v54 = vld [vmem:[%s8273_s4 + $0x8] sm:$0xff] }
 0x208   : > { %3024 = vmatpush.bf16.msra.mxu2 %v5570_v54 }
 0x20b   : > { %v1458_v42 = vpop.f32.mrf.mxu0 }
 0x20c   : > { %v6942_v43 = vadd.f32 %v1458_v42, %v6684_v2  ;;  %v5580_v2 = vld [vmem:[%s8273_s4 + $0x58] sm:$0xff]  ;;  %v6981_v60 = vpop.f32.mrf.mxu2 }
 0x20d   : > { %2905 = vmatpush.bf16.msra.mxu1 %v5580_v2 }
 0x20e   : > { %2327 = vmatmul.bf16.gmra.mxu0 %v2227_v57  ;;  %v6990_v57 = vpop.f32.mrf.mxu1 }
 0x20f   : > { %2608 = vperm.xlu2 %5711, %v2488_v21  }
 0x211   : > { %2167 = vmatmul.bf16.gmra.mxu3 %v2034_v28  ;;  %v6992_v28 = vpop.f32.mrf.mxu3 }
 0x213   : > { %v1460_v0 = vpop.f32.mrf.mxu0 }
 0x214   : > { %v6955_v51 = vadd.f32 %v1460_v0, %v6695_v24  ;;  %v2042_v24 = vsel %vm473_vm0, %v2037_v23, %v2041_v62  ;;  %v6997_v29 = vpop.f32.mrf.mxu2  ;;  %v5578_v62 = vld [vmem:[%s8273_s4 + $0x48] sm:$0xff] }
 0x216   : > { %v7000_v2 = vpop.f32.mrf.mxu1 }
 0x219   : > { %v7006_v17 = vpop.f32.mrf.mxu3 }
 0x21b   : > { %v1463_v26 = vpop.f32.mrf.mxu0 }
 0x21c   : > { %v6965_v52 = vadd.f32 %v1463_v26, %v8412_v15  ;;  %v7011_v21 = vpop.f32.mrf.mxu2  ;;  %v2234_v26 = vrot.slane %v6646_v35, 1 }
 0x21e   : > { %2332 = vmatmul.bf16.gmra.mxu0 %v2229_v18  ;;  %v7016_v23 = vpop.f32.mrf.mxu1 }
 0x221   : > { %2172 = vmatmul.bf16.gmra.mxu3 %v2042_v24  ;;  %v7025_v18 = vpop.f32.mrf.mxu3 }
 0x223   : > { %v1465_v48 = vpop.f32.mrf.mxu0 }
 0x224   : > { %v6971_v10 = vadd.f32 %v1465_v48, %v6727_v47  ;;  %v5579_v47 = vld [vmem:[%s8273_s4 + $0x50] sm:$0xff]  ;;  %v7027_v15 = vpop.f32.mrf.mxu2  ;;  %v2235_v48 = vsel %vm869_vm1, %v2232_v50, %v2234_v26 }
 0x225   : > { %2906 = vmatpush.bf16.msra.mxu1 %v5579_v47  ;;  %v2236_v47 = vrot.slane %v6671_v32, 1  ;;  %v5590_v32 = vld [vmem:[%s8273_s4 + $0xa8] sm:$0xff] }
 0x226   : > { %8413 = vst [vmem:[#allocation4_spill] sm:$0xff] %v6971_v10 }
 0x229   : > { %2907 = vmatpush.bf16.msra.mxu1 %v5578_v62 }
 0x22b   : > { %v1468_v36 = vpop.f32.mrf.mxu0 }
 0x22c   : > { %v6988_v42 = vadd.f32 %v1468_v36, %v6745_v45  ;;  %v2233_v45 = vsel %vm869_vm1, %v2230_v12, %v2232_v50  ;;  %v7033_v12 = vpop.f32.mrf.mxu1  ;;  %v7037_v36 = vpop.f32.mrf.mxu2 }
 0x22e   : > { %8414 = vst [vmem:[#allocation5_spill] sm:$0xff] %v6988_v42  ;;  %2337 = vmatmul.bf16.gmra.mxu0 %v2231_v8 }
 0x233   : > { %v1470_v63 = vpop.f32.mrf.mxu0 }
 0x234   : > { %v6995_v33 = vadd.f32 %v1470_v63, %v6772_v38  ;;  %v5592_v38 = vld [vmem:[%s8273_s4 + $0xb8] sm:$0xff]  ;;  %v7043_v63 = vpop.f32.mrf.mxu1  ;;  %v7054_v54 = vpop.f32.mrf.mxu2 }
 0x235   : > { %3173 = vmatpush.bf16.msra.mxu3 %v5592_v38 }
 0x236   : > { %8415 = vst [vmem:[#allocation10_spill] sm:$0xff] %v6995_v33 }
 0x23b   : > { %v1473_v0 = vpop.f32.mrf.mxu0 }
 0x23c   : > { %v7004_v44 = vadd.f32 %v1473_v0, %v6790_v25  ;;  %v2237_v0 = vsel %vm869_vm1, %v2234_v26, %v2236_v47  ;;  %v7065_v62 = vpop.f32.mrf.mxu1 }
 0x23e   : > { %8416 = vst [vmem:[#allocation11_spill] sm:$0xff] %v7004_v44  ;;  %2342 = vmatmul.bf16.gmra.mxu0 %v2233_v45 }
 0x243   : > { %v1475_v20 = vpop.f32.mrf.mxu0 }
 0x244   : > { %v7019_v25 = vadd.f32 %v1475_v20, %v6810_v13  ;;  %v7035_v13 = vpop.f32.mrf.mxu3  ;;  %v5589_v20 = vld [vmem:[%s8273_s4 + $0xa0] sm:$0xff] }
 0x246   : > { %8417 = vst [vmem:[#allocation12_spill] sm:$0xff] %v7019_v25 }
 0x24b   : > { %v1478_v24 = vpop.f32.mrf.mxu0 }
 0x24c   : > { %v7031_v30 = vadd.f32 %v1478_v24, %v6832_v34  ;;  %v5591_v34 = vld [vmem:[%s8273_s4 + $0xb0] sm:$0xff]  ;;  %v7049_v45 = vpop.f32.mrf.mxu3  ;;  %v5588_v24 = vld [vmem:[%s8273_s4 + $0x98] sm:$0xff] }
 0x24d   : > { %3174 = vmatpush.bf16.msra.mxu3 %v5591_v34  ;;  %v7078_v34 = vpop.f32.mrf.mxu2 }
 0x24e   : > { %8418 = vst [vmem:[#allocation6_spill] sm:$0xff] %v7031_v30  ;;  %2347 = vmatmul.bf16.gmra.mxu0 %v2235_v48  ;;  %v2240_v30 = vrot.slane %v6735_v53, 1 }
 0x251   : > { %3175 = vmatpush.bf16.msra.mxu3 %v5590_v32 }
 0x253   : > { %v1480_v8 = vpop.f32.mrf.mxu0 }
 0x254   : > { %v7040_v35 = vadd.f32 %v1480_v8, %v6847_v27  ;;  %v5569_v27 = vld [vmem:[%s8273_s4] sm:$0xff]  ;;  %v7073_v48 = vpop.f32.mrf.mxu3 }
 0x255   : > { %3025 = vmatpush.bf16.msra.mxu2 %v5569_v27  ;;  %3176 = vmatpush.bf16.msra.mxu3 %v5589_v20  ;;  %v5577_v8 = vld [vmem:[%s8273_s4 + $0x40] sm:$0xff]  ;;  %v7090_v20 = vpop.f32.mrf.mxu1 }
 0x256   : > { %8419 = vst [vmem:[#allocation7_spill] sm:$0xff] %v7040_v35  ;;  %2908 = vmatpush.bf16.msra.mxu1 %v5577_v8  ;;  %v2494_v8 = vpop.permute.xlu0 %2493 }
 0x259   : > { %3177 = vmatpush.bf16.msra.mxu3 %v5588_v24 }
 0x25b   : > { %v1483_v50 = vpop.f32.mrf.mxu0 }
 0x25c   : > { %v7052_v38 = vadd.f32 %v1483_v50, %v6861_v39  ;;  %v2238_v50 = vrot.slane %v6700_v59, 1  ;;  %v5586_v59 = vld [vmem:[%s8273_s4 + $0x88] sm:$0xff] }
 0x25e   : > { %8420 = vst [vmem:[#allocation14_spill] sm:$0xff] %v7052_v38  ;;  %2352 = vmatmul.bf16.gmra.mxu0 %v2237_v0  ;;  %v7087_v0 = vld [vmem:[%s8272_s3] ss:$0 sm:$0xff]  ;;  %v2239_v27 = vsel %vm869_vm1, %v2236_v47, %v2238_v50  ;;  %v7099_v38 = vpop.f32.mrf.mxu2  ;;  %v2499_v33 = vpop.permute.xlu0 %2498 }
 0x25f   : > { %v5585_v47 = vld [vmem:[%s8273_s4 + $0x80] sm:$0xff] }
 0x263   : > { %v1485_v39 = vpop.f32.mrf.mxu0 }
 0x264   : > { %v7068_v26 = vadd.f32 %v1485_v39, %v6876_v1  ;;  %v5587_v1 = vld [vmem:[%s8273_s4 + $0x90] sm:$0xff] }
 0x265   : > { %3178 = vmatpush.bf16.msra.mxu3 %v5587_v1 }
 0x266   : > { %8421 = vst [vmem:[#allocation15_spill] sm:$0xff] %v7068_v26  ;;  %v7097_v26 = vpop.f32.mrf.mxu3 }
 0x269   : > { %3179 = vmatpush.bf16.msra.mxu3 %v5586_v59 }
 0x26b   : > { %v2318_v32 = vpop.f32.mrf.mxu0 }
 0x26c   : > { %v2383_v39 = vadd.f32 %v2318_v32, %v6890_v16  ;;  %v1696_v16 = vadd.f32 %v6973_v41, %v6779_v7  ;;  %v7115_v7 = vpop.f32.mrf.mxu2  ;;  %v2241_v41 = vsel %vm869_vm1, %v2238_v50, %v2240_v30 }
 0x26d   : > { %3180 = vmatpush.bf16.msra.mxu3 %v5585_v47 }
 0x26e   : > { %v2413_v24 = vadd.f32 %v7087_v0, %v2383_v39  ;;  %2357 = vmatmul.bf16.gmra.mxu0 %v2239_v27  ;;  %v7107_v39 = vpop.f32.mrf.mxu1  ;;  %v1891_v25 = vadd.f32 %v6960_v56, %v1696_v16  ;;  %v7113_v42 = vpop.f32.mrf.mxu3 }
 0x270   : > { %v2439_v1 = vmax.f32 %v2413_v24, 0.0  ;;  %v2180_v24 = vadd.f32 %v6979_v58, %v1891_v25  ;;  %v5624_v58 = vld [vmem:[%s8273_s4 + $0x1b8] sm:$0xff] }
 0x271   : > { %3904 = vmatpush.bf16.msra.mxu0 %v5624_v58 }
 0x272   : > { %v2621_v27 = vmul.f32 %v2494_v8, %v2439_v1 }
 0x273   : > { %v2320_v35 = vpop.f32.mrf.mxu0 }
 0x274   : > { %v2384_v32 = vadd.f32 %v2320_v35, %v6903_v61  ;;  %v2647_v47 = vpack.c.bf16 %v2621_v27, %v2621_v27  ;;  %v1697_v35 = vadd.f32 %v6990_v57, %v6796_v49  ;;  %v5608_v49 = vld [vmem:[%s8273_s4 + $0x138] sm:$0xff] }
 0x275   : > { %3561 = vmatpush.bf16.msrb.mxu2 %v5608_v49 }
 0x276   : > { %v2414_v59 = vadd.f32 %v7087_v0, %v2384_v32  ;;  %v2727_v1 = vunpack.c.l.b16 %v2647_v47  ;;  %v7125_v25 = vpop.f32.mrf.mxu1 }
 0x278   : > { %v2440_v44 = vmax.f32 %v2414_v59, 0.0  ;;  %v1698_v59 = vadd.f32 %v7000_v2, %v6816_v46 }
 0x27a   : > { %v2622_v10 = vmul.f32 %v2499_v33, %v2440_v44  ;;  %v2504_v33 = vpop.permute.xlu1 %2503  ;;  %v1892_v44 = vadd.f32 %v6968_v11, %v1697_v35  ;;  %v5623_v11 = vld [vmem:[%s8273_s4 + $0x1b0] sm:$0xff]  ;;  %v5622_v35 = vld [vmem:[%s8273_s4 + $0x1a8] sm:$0xff] }
 0x27b   : > { %v2323_v61 = vpop.f32.mrf.mxu0  ;;  %3905 = vmatpush.bf16.msra.mxu0 %v5623_v11 }
 0x27c   : > { %v2648_v8 = vpack.c.bf16 %v2622_v10, %v2622_v10  ;;  %v2385_v53 = vadd.f32 %v2323_v61, %v2180_v24  ;;  %v5600_v10 = vld [vmem:[%s8273_s4 + $0xf8] sm:$0xff]  ;;  %v2181_v57 = vadd.f32 %v6992_v28, %v1892_v44  ;;  %v7142_v24 = vpop.f32.mrf.mxu3  ;;  %v7144_v61 = vpop.f32.mrf.mxu2  ;;  %v1699_v44 = vadd.f32 %v7016_v23, %v6838_v3 }
 0x27d   : > { %3354 = vmatpush.bf16.msrb.mxu1 %v5600_v10  ;;  %v5620_v3 = vld [vmem:[%s8273_s4 + $0x198] sm:$0xff] }
 0x27e   : > { %v2728_v56 = vunpack.c.l.b16 %v2648_v8  ;;  %v2415_v16 = vadd.f32 %v7087_v0, %v2385_v53  ;;  %2362 = vmatmul.bf16.gmra.mxu0 %v2241_v41  ;;  %v2242_v8 = vrot.slane %v6777_v4, 1  ;;  %v1893_v53 = vadd.f32 %v6981_v60, %v1698_v59  ;;  %v7152_v2 = vpop.f32.mrf.mxu1 }
 0x27f   : > { %3906 = vmatpush.bf16.msra.mxu0 %v5622_v35  ;;  %v1894_v23 = vadd.f32 %v6997_v29, %v1699_v44  ;;  %v5607_v35 = vld [vmem:[%s8273_s4 + $0x130] sm:$0xff]  ;;  %v1702_v4 = vadd.f32 %v7065_v62, %v6880_v31 }
 0x280   : > { %v7127_v50 = vpack.c.b16 %v2728_v56, %v2727_v1  ;;  %v2441_v32 = vmax.f32 %v2415_v16, 0.0  ;;  %v2182_v56 = vadd.f32 %v7006_v17, %v1893_v53  ;;  %v2243_v60 = vsel %vm869_vm1, %v2240_v30, %v2242_v8  ;;  %v2514_v30 = vpop.permute.xlu2 %2513  ;;  %3562 = vmatpush.bf16.msrb.mxu2 %v5607_v35 }
 0x281   : > { %v2183_v53 = vadd.f32 %v7025_v18, %v1894_v23  ;;  %v1700_v18 = vadd.f32 %v7033_v12, %v6851_v19  ;;  %v2244_v23 = vrot.slane %v6813_v9, 1  ;;  %v1704_v9 = vadd.f32 %v7107_v39, %v6907_v55 }
 0x282   : > { %3026 = vmatmul.bf16.vlgmr.msra.gmra.mxu2 %v7127_v50  ;;  %v2623_v28 = vmul.f32 %v2504_v33, %v2441_v32  ;;  %v2509_v46 = vpop.permute.xlu1 %2508  ;;  %v5621_v33 = vld [vmem:[%s8273_s4 + $0x1a0] sm:$0xff]  ;;  %v2762_v32 = vshll.u32 %v7127_v50, 16 }
 0x283   : > { %v2325_v27 = vpop.f32.mrf.mxu0  ;;  %3907 = vmatpush.bf16.msra.mxu0 %v5621_v33  ;;  %v5619_v33 = vld [vmem:[%s8273_s4 + $0x190] sm:$0xff] }
 0x284   : > { %v2386_v47 = vadd.f32 %v2325_v27, %v2181_v57  ;;  %v2649_v16 = vpack.c.bf16 %v2623_v28, %v2623_v28  ;;  %v7164_v17 = vpop.f32.mrf.mxu3 }
 0x286   : > { %v2416_v41 = vadd.f32 %v7087_v0, %v2386_v47  ;;  %v2729_v11 = vunpack.c.l.b16 %v2649_v16  ;;  %v7171_v47 = vpop.f32.mrf.mxu2 }
 0x287   : > { %3908 = vmatpush.bf16.msra.mxu0 %v5620_v3  ;;  %v5618_v3 = vld [vmem:[%s8273_s4 + $0x188] sm:$0xff] }
 0x288   : > { %v2442_v1 = vmax.f32 %v2416_v41, 0.0  ;;  %v2764_v41 = vrot.slane %v2762_v32, 1 }
 0x28a   : > { %v2624_v58 = vmul.f32 %v2509_v46, %v2442_v1  ;;  %v3094_v1 = vrot.slane %v7127_v50, 1  ;;  %v2760_v46 = vshrl.u32 %v7127_v50, 16 }
 0x28b   : > { %v2328_v49 = vpop.f32.mrf.mxu0  ;;  %3909 = vmatpush.bf16.msra.mxu0 %v5619_v33 }
 0x28c   : > { %v2650_v10 = vpack.c.bf16 %v2624_v58, %v2624_v58  ;;  %v2387_v57 = vadd.f32 %v2328_v49, %v2182_v56  ;;  %v7190_v49 = vpop.f32.mrf.mxu1  ;;  %v7211_v35 = vpop.f32.mrf.mxu3 }
 0x28e   : > { %v2730_v27 = vunpack.c.l.b16 %v2650_v10  ;;  %v2417_v59 = vadd.f32 %v7087_v0, %v2387_v57  ;;  %2367 = vmatmul.bf16.gmra.mxu0 %v2243_v60  ;;  %v2765_v10 = vor.u32 %v2764_v41, %v2760_v46  ;;  %v2519_v46 = vpop.permute.xlu2 %2518 }
 0x28f   : > { %3910 = vmatpush.bf16.msra.mxu0 %v5618_v3  ;;  %v2524_v3 = vpop.permute.xlu0 %2523 }
 0x290   : > { %v7173_v28 = vpack.c.b16 %v2730_v27, %v2729_v11  ;;  %v2443_v56 = vmax.f32 %v2417_v59, 0.0  ;;  %v5599_v59 = vld [vmem:[%s8273_s4 + $0xf0] sm:$0xff] }
 0x291   : > { %3355 = vmatpush.bf16.msrb.mxu1 %v5599_v59 }
 0x292   : > { %3031 = vmatmul.bf16.gmra.mxu2 %v7173_v28  ;;  %v3095_v29 = vrot.slane %v7173_v28, 1  ;;  %v2767_v16 = vshll.u32 %v7173_v28, 16  ;;  %v2771_v58 = vshrl.u32 %v7173_v28, 16  ;;  %v2625_v27 = vmul.f32 %v2514_v30, %v2443_v56 }
 0x293   : > { %v2330_v44 = vpop.f32.mrf.mxu0  ;;  %v1895_v30 = vadd.f32 %v7011_v21, %v1700_v18  ;;  %v2245_v18 = vsel %vm869_vm1, %v2242_v8, %v2244_v23  ;;  %v3275_v62 = vrot.slane %v7173_v28, 2 }
 0x294   : > { %v2388_v50 = vadd.f32 %v2330_v44, %v2183_v53  ;;  %v3096_v60 = vsel %vm869_vm1, %v3094_v1, %v3095_v29  ;;  %v2769_v57 = vrot.slane %v2767_v16, 1  ;;  %v7195_v32 = vrot.slane %v2771_v58, 2  ;;  %v7213_v1 = vpop.f32.mrf.mxu2  ;;  %v5617_v44 = vld [vmem:[%s8273_s4 + $0x180] sm:$0xff] }
 0x295   : > { %3181 = vmatmul.bf16.vlgmr.msra.gmra.mxu3 %v3096_v60  ;;  %v7197_v11 = vrot.slane %v2767_v16, 3  ;;  %v2184_v56 = vadd.f32 %v7035_v13, %v1895_v30  ;;  %v2651_v16 = vpack.c.bf16 %v2625_v27, %v2625_v27  ;;  %3911 = vmatpush.bf16.msra.mxu0 %v5617_v44  ;;  %v7226_v13 = vpop.f32.mrf.mxu1  ;;  %v3657_v30 = vrot.slane %v7173_v28, 3 }
 0x296   : > { %v2418_v19 = vadd.f32 %v7087_v0, %v2388_v50  ;;  %v2770_v12 = vsel %vm473_vm0, %v2765_v10, %v2769_v57  ;;  %v1701_v50 = vadd.f32 %v7043_v63, %v6864_v22  ;;  %v2773_v31 = vor.u32 %v2771_v58, %v2769_v57 }
 0x297   : > { %2909 = vmatmul.bf16.vlgmr.msra.gmra.mxu1 %v2770_v12  ;;  %v3452_v41 = vor.u32 %v7197_v11, %v7195_v32  ;;  %v2731_v27 = vunpack.c.l.b16 %v2651_v16 }
 0x298   : > { %v2444_v53 = vmax.f32 %v2418_v19, 0.0  ;;  %v1896_v59 = vadd.f32 %v7027_v15, %v1701_v50 }
 0x29a   : > { %v2626_v33 = vmul.f32 %v2519_v46, %v2444_v53  ;;  %v2185_v8 = vadd.f32 %v7049_v45, %v1896_v59  ;;  %v7236_v53 = vpop.f32.mrf.mxu3 }
 0x29b   : > { %v2333_v21 = vpop.f32.mrf.mxu0 }
 0x29c   : > { %v2652_v60 = vpack.c.bf16 %v2626_v33, %v2626_v33  ;;  %v2389_v10 = vadd.f32 %v2333_v21, %v2184_v56  ;;  %v7242_v33 = vpop.f32.mrf.mxu2 }
 0x29e   : > { %v2732_v19 = vunpack.c.l.b16 %v2652_v60  ;;  %v2419_v12 = vadd.f32 %v7087_v0, %v2389_v10  ;;  %2372 = vmatmul.bf16.gmra.mxu0 %v2245_v18 }
 0x2a0   : > { %v7230_v22 = vpack.c.b16 %v2732_v19, %v2731_v27  ;;  %v2445_v63 = vmax.f32 %v2419_v12, 0.0 }
 0x2a2   : > { %v2627_v46 = vmul.f32 %v2524_v3, %v2445_v63  ;;  %3036 = vmatmul.bf16.gmra.mxu2 %v7230_v22  ;;  %v3097_v56 = vrot.slane %v7230_v22, 1  ;;  %v2775_v15 = vshll.u32 %v7230_v22, 16  ;;  %v2779_v16 = vshrl.u32 %v7230_v22, 16 }
 0x2a3   : > { %v2335_v44 = vpop.f32.mrf.mxu0  ;;  %v3658_v45 = vrot.slane %v7230_v22, 3  ;;  %v3276_v50 = vrot.slane %v7230_v22, 2  ;;  %v2246_v3 = vrot.slane %v6949_v14, 1 }
 0x2a4   : > { %v2653_v21 = vpack.c.bf16 %v2627_v46, %v2627_v46  ;;  %v2390_v18 = vadd.f32 %v2335_v44, %v2185_v8  ;;  %v3098_v60 = vsel %vm869_vm1, %v3095_v29, %v3097_v56  ;;  %v2777_v10 = vrot.slane %v2775_v15, 1  ;;  %v5606_v29 = vld [vmem:[%s8273_s4 + $0x128] sm:$0xff] }
 0x2a5   : > { %3186 = vmatmul.bf16.gmra.mxu3 %v3098_v60  ;;  %v3454_v27 = vrot.slane %v2775_v15, 3  ;;  %v3453_v12 = vrot.slane %v2779_v16, 2  ;;  %v7255_v58 = vsel %vm1531_vm4, %v3657_v30, %v3658_v45  ;;  %v7260_v57 = vsel %vm1081_vm2, %v3275_v62, %v3276_v50  ;;  %v5598_v8 = vld [vmem:[%s8273_s4 + $0xe8] sm:$0xff]  ;;  %v7274_v15 = vpop.f32.mrf.mxu1  ;;  %3563 = vmatpush.bf16.msrb.mxu2 %v5606_v29  ;;  %v2529_v62 = vpop.permute.xlu1 %2528 }
 0x2a6   : > { %v2733_v59 = vunpack.c.l.b16 %v2653_v21  ;;  %v2420_v63 = vadd.f32 %v7087_v0, %v2390_v18  ;;  %v2778_v28 = vsel %vm473_vm0, %v2773_v31, %v2777_v10  ;;  %v1897_v46 = vadd.f32 %v7037_v36, %v1702_v4  ;;  %3356 = vmatpush.bf16.msrb.mxu1 %v5598_v8  ;;  %v7291_v60 = vpop.f32.mrf.mxu3 }
 0x2a7   : > { %2914 = vmatmul.bf16.gmra.mxu1 %v2778_v28  ;;  %v7271_v30 = vor.u32 %v3454_v27, %v3453_v12  ;;  %v1703_v36 = vadd.f32 %v7090_v20, %v6893_v37 }
 0x2a8   : > { %v7276_v44 = vpack.c.b16 %v2733_v59, %v2732_v19  ;;  %v2446_v31 = vmax.f32 %v2420_v63, 0.0  ;;  %v2186_v14 = vadd.f32 %v7073_v48, %v1897_v46  ;;  %v2247_v19 = vsel %vm869_vm1, %v2244_v23, %v2246_v3  ;;  %v7293_v63 = vpop.f32.mrf.mxu2  ;;  %v2534_v23 = vpop.permute.xlu2 %2533 }
 0x2a9   : > { %v7283_v21 = vsel %vm1287_vm3, %v3452_v41, %v7271_v30  ;;  %v1898_v48 = vadd.f32 %v7054_v54, %v1703_v36  ;;  %v2781_v46 = vor.u32 %v2779_v16, %v2777_v10 }
 0x2aa   : > { %v2628_v18 = vmul.f32 %v2529_v62, %v2446_v31 }
 0x2ab   : > { %v2338_v4 = vpop.f32.mrf.mxu0  ;;  %v2187_v20 = vadd.f32 %v7097_v26, %v1898_v48  ;;  %v4006_v26 = vshll.u32 %v7276_v44, 16 }
 0x2ac   : > { %v2654_v27 = vpack.c.bf16 %v2628_v18, %v2628_v18  ;;  %v2391_v12 = vadd.f32 %v2338_v4, %v2186_v14 }
 0x2ad   : > { %v7302_v28 = vpop.f32.mrf.mxu1 }
 0x2ae   : > { %v2734_v32 = vunpack.c.l.b16 %v2654_v27  ;;  %v2421_v11 = vadd.f32 %v7087_v0, %v2391_v12  ;;  %2377 = vmatmul.bf16.gmra.mxu0 %v2247_v19 }
 0x2b0   : > { %v7297_v41 = vpack.c.b16 %v2734_v32, %v2733_v59  ;;  %v2447_v37 = vmax.f32 %v2421_v11, 0.0  ;;  %v5605_v11 = vld [vmem:[%s8273_s4 + $0x120] sm:$0xff]  ;;  %v7340_v48 = vpop.f32.mrf.mxu2 }
 0x2b1   : > { %3564 = vmatpush.bf16.msrb.mxu2 %v5605_v11 }
 0x2b2   : > { %v2629_v29 = vmul.f32 %v2534_v23, %v2447_v37  ;;  %3041 = vmatmul.bf16.gmra.mxu2 %v7297_v41  ;;  %v3099_v8 = vrot.slane %v7297_v41, 1  ;;  %v2783_v3 = vshll.u32 %v7297_v41, 16  ;;  %v2787_v54 = vshrl.u32 %v7297_v41, 16 }
 0x2b3   : > { %v2340_v59 = vpop.f32.mrf.mxu0  ;;  %v3660_v31 = vrot.slane %v7297_v41, 3  ;;  %v3278_v55 = vrot.slane %v7297_v41, 2 }
 0x2b4   : > { %v2655_v39 = vpack.c.bf16 %v2629_v29, %v2629_v29  ;;  %v2392_v62 = vadd.f32 %v2340_v59, %v2187_v20  ;;  %v3100_v14 = vsel %vm869_vm1, %v3097_v56, %v3099_v8  ;;  %v2785_v18 = vrot.slane %v2783_v3, 1  ;;  %v7332_v56 = vpop.f32.mrf.mxu3  ;;  %v2539_v29 = vpop.permute.xlu0 %2538 }
 0x2b5   : > { %3191 = vmatmul.bf16.gmra.mxu3 %v3100_v14  ;;  %v3457_v36 = vrot.slane %v2787_v54, 2  ;;  %v3458_v16 = vrot.slane %v2783_v3, 3  ;;  %v7323_v10 = vsel %vm1531_vm4, %v3658_v45, %v3660_v31  ;;  %v7330_v4 = vsel %vm1081_vm2, %v3276_v50, %v3278_v55 }
 0x2b6   : > { %v2735_v19 = vunpack.c.l.b16 %v2655_v39  ;;  %v2422_v27 = vadd.f32 %v7087_v0, %v2392_v62  ;;  %v2786_v12 = vsel %vm473_vm0, %v2781_v46, %v2785_v18  ;;  %v1899_v45 = vadd.f32 %v7078_v34, %v1704_v9  ;;  %v7358_v62 = vpop.f32.mrf.mxu1 }
 0x2b7   : > { %2919 = vmatmul.bf16.gmra.mxu1 %v2786_v12  ;;  %v7342_v22 = vor.u32 %v3458_v16, %v3457_v36  ;;  %v4008_v50 = vrot.slane %v4006_v26, 1  ;;  %v4004_v34 = vshrl.u32 %v7276_v44, 16  ;;  %v4241_v59 = vrot.slane %v7276_v44, 1 }
 0x2b8   : > { %v2448_v37 = vmax.f32 %v2422_v27, 0.0  ;;  %v7344_v20 = vpack.c.b16 %v2735_v19, %v2734_v32  ;;  %v2188_v23 = vadd.f32 %v7113_v42, %v1899_v45  ;;  %v1705_v32 = vadd.f32 %v7125_v25, %v6917_v40 }
 0x2b9   : > { %v7350_v3 = vsel %vm1287_vm3, %v7271_v30, %v7342_v22  ;;  %v4009_v42 = vor.u32 %v4008_v50, %v4004_v34  ;;  %v2544_v34 = vpop.permute.xlu1 %2543 }
 0x2ba   : > { %v2630_v9 = vmul.f32 %v2539_v29, %v2448_v37  ;;  %v4242_v46 = vrot.slane %v7344_v20, 1  ;;  %v4011_v26 = vshll.u32 %v7344_v20, 16  ;;  %v1900_v40 = vadd.f32 %v7099_v38, %v1705_v32  ;;  %v5597_v37 = vld [vmem:[%s8273_s4 + $0xe0] sm:$0xff] }
 0x2bb   : > { %v2343_v39 = vpop.f32.mrf.mxu0  ;;  %3357 = vmatpush.bf16.msrb.mxu1 %v5597_v37  ;;  %v2789_v32 = vor.u32 %v2787_v54, %v2785_v18 }
 0x2bc   : > { %v2656_v14 = vpack.c.bf16 %v2630_v9, %v2630_v9  ;;  %v2393_v36 = vadd.f32 %v2343_v39, %v2188_v23  ;;  %v7363_v30 = vsel %vm869_vm1, %v4241_v59, %v4242_v46  ;;  %v4013_v16 = vrot.slane %v4011_v26, 1  ;;  %v7371_v25 = vpop.f32.mrf.mxu3  ;;  %v7378_v23 = vpop.f32.mrf.mxu2 }
 0x2bd   : > { %8422 = vst [vmem:[#allocation16_spill] sm:$0xff] %v7363_v30  ;;  %v2189_v29 = vadd.f32 %v7142_v24, %v1900_v40  ;;  %v1706_v59 = vadd.f32 %v7152_v2, %v6928_v6 }
 0x2be   : > { %v2736_v27 = vunpack.c.l.b16 %v2656_v14  ;;  %v2423_v12 = vadd.f32 %v7087_v0, %v2393_v36  ;;  %3912 = vmatmul.bf16.vlgmr.msra.gmra.mxu0 %v7276_v44  ;;  %v7368_v11 = vsel %vm473_vm0, %v4009_v42, %v4013_v16  ;;  %v7410_v18 = vpop.f32.mrf.mxu1 }
 0x2bf   : > { %8423 = vst [vmem:[#allocation26_spill] sm:$0xff] %v7368_v11 }
 0x2c0   : > { %v7373_v45 = vpack.c.b16 %v2736_v27, %v2735_v19  ;;  %v2449_v50 = vmax.f32 %v2423_v12, 0.0 }
 0x2c2   : > { %v2631_v44 = vmul.f32 %v2544_v34, %v2449_v50  ;;  %3046 = vmatmul.bf16.gmra.mxu2 %v7373_v45  ;;  %v3101_v9 = vrot.slane %v7373_v45, 1  ;;  %v2791_v38 = vshll.u32 %v7373_v45, 16  ;;  %v2795_v19 = vshrl.u32 %v7373_v45, 16 }
 0x2c3   : > { %v2345_v26 = vpop.f32.mrf.mxu0  ;;  %v3662_v24 = vrot.slane %v7373_v45, 3  ;;  %v3280_v39 = vrot.slane %v7373_v45, 2 }
 0x2c4   : > { %v2657_v42 = vpack.c.bf16 %v2631_v44, %v2631_v44  ;;  %v2394_v14 = vadd.f32 %v2345_v26, %v2189_v29  ;;  %v3102_v36 = vsel %vm869_vm1, %v3099_v8, %v3101_v9  ;;  %v2793_v12 = vrot.slane %v2791_v38, 1 }
 0x2c5   : > { %3196 = vmatmul.bf16.gmra.mxu3 %v3102_v36  ;;  %v3461_v40 = vrot.slane %v2795_v19, 2  ;;  %v3462_v6 = vrot.slane %v2791_v38, 3  ;;  %v7401_v2 = vsel %vm1531_vm4, %v3660_v31, %v3662_v24  ;;  %v7408_v54 = vsel %vm1081_vm2, %v3278_v55, %v3280_v39  ;;  %v2549_v38 = vpop.permute.xlu2 %2548 }
 0x2c6   : > { %v2737_v8 = vunpack.c.l.b16 %v2657_v42  ;;  %v2424_v50 = vadd.f32 %v7087_v0, %v2394_v14  ;;  %v2794_v37 = vsel %vm473_vm0, %v2789_v32, %v2793_v12  ;;  %v1901_v31 = vadd.f32 %v7115_v7, %v1706_v59  ;;  %v7426_v42 = vpop.f32.mrf.mxu3  ;;  %v7432_v59 = vpop.f32.mrf.mxu2 }
 0x2c7   : > { %2924 = vmatmul.bf16.gmra.mxu1 %v2794_v37  ;;  %v7414_v29 = vor.u32 %v3462_v6, %v3461_v40  ;;  %v4015_v55 = vshrl.u32 %v7344_v20, 16 }
 0x2c8   : > { %v2450_v34 = vmax.f32 %v2424_v50, 0.0  ;;  %v7417_v44 = vpack.c.b16 %v2737_v8, %v2736_v27  ;;  %v2190_v26 = vadd.f32 %v7164_v17, %v1901_v31  ;;  %v1707_v27 = vadd.f32 %v7190_v49, %v6933_v5 }
 0x2c9   : > { %v7422_v41 = vsel %vm1287_vm3, %v7342_v22, %v7414_v29  ;;  %v4017_v40 = vor.u32 %v4015_v55, %v4013_v16  ;;  %v7447_v16 = vpop.f32.mrf.mxu1  ;;  %v5596_v55 = vld [vmem:[%s8273_s4 + $0xd8] sm:$0xff] }
 0x2ca   : > { %v2632_v32 = vmul.f32 %v2549_v38, %v2450_v34  ;;  %v4244_v14 = vrot.slane %v7417_v44, 1  ;;  %v4019_v7 = vshll.u32 %v7417_v44, 16  ;;  %v1902_v49 = vadd.f32 %v7144_v61, %v1707_v27  ;;  %3358 = vmatpush.bf16.msrb.mxu1 %v5596_v55 }
 0x2cb   : > { %v2348_v36 = vpop.f32.mrf.mxu0  ;;  %v1708_v27 = vadd.f32 %v7226_v13, %v6942_v43 }
 0x2cc   : > { %v2658_v22 = vpack.c.bf16 %v2632_v32, %v2632_v32  ;;  %v2395_v6 = vadd.f32 %v2348_v36, %v2190_v26  ;;  %v7439_v17 = vsel %vm869_vm1, %v4242_v46, %v4244_v14  ;;  %v4021_v50 = vrot.slane %v4019_v7, 1  ;;  %v5604_v46 = vld [vmem:[%s8273_s4 + $0x118] sm:$0xff]  ;;  %v2554_v26 = vpop.permute.xlu0 %2553 }
 0x2cd   : > { %8424 = vst [vmem:[#allocation8_spill] sm:$0xff] %v7439_v17  ;;  %3565 = vmatpush.bf16.msrb.mxu2 %v5604_v46 }
 0x2ce   : > { %v2738_v37 = vunpack.c.l.b16 %v2658_v22  ;;  %v2425_v31 = vadd.f32 %v7087_v0, %v2395_v6  ;;  %3917 = vmatmul.bf16.gmra.mxu0 %v7344_v20  ;;  %v7444_v5 = vsel %vm473_vm0, %v4017_v40, %v4021_v50  ;;  %v2191_v20 = vadd.f32 %v7211_v35, %v1902_v49  ;;  %v7466_v6 = vpop.f32.mrf.mxu3 }
 0x2cf   : > { %8425 = vst [vmem:[#allocation9_spill] sm:$0xff] %v7444_v5  ;;  %v2797_v40 = vor.u32 %v2795_v19, %v2793_v12 }
 0x2d0   : > { %v7449_v34 = vpack.c.b16 %v2738_v37, %v2737_v8  ;;  %v2451_v38 = vmax.f32 %v2425_v31, 0.0 }
 0x2d2   : > { %v2633_v32 = vmul.f32 %v2554_v26, %v2451_v38  ;;  %3051 = vmatmul.bf16.gmra.mxu2 %v7449_v34  ;;  %v3103_v61 = vrot.slane %v7449_v34, 1  ;;  %v2799_v8 = vshll.u32 %v7449_v34, 16  ;;  %v2803_v7 = vshrl.u32 %v7449_v34, 16  ;;  %v7473_v26 = vpop.f32.mrf.mxu2 }
 0x2d3   : > { %v2350_v36 = vpop.f32.mrf.mxu0  ;;  %v3664_v22 = vrot.slane %v7449_v34, 3  ;;  %v3282_v35 = vrot.slane %v7449_v34, 2 }
 0x2d4   : > { %v2659_v31 = vpack.c.bf16 %v2633_v32, %v2633_v32  ;;  %v2396_v49 = vadd.f32 %v2350_v36, %v2191_v20  ;;  %v3104_v38 = vsel %vm869_vm1, %v3101_v9, %v3103_v61  ;;  %v2801_v55 = vrot.slane %v2799_v8, 1 }
 0x2d5   : > { %3201 = vmatmul.bf16.gmra.mxu3 %v3104_v38  ;;  %v3465_v43 = vrot.slane %v2803_v7, 2  ;;  %v3466_v13 = vrot.slane %v2799_v8, 3  ;;  %v7480_v19 = vsel %vm1531_vm4, %v3662_v24, %v3664_v22  ;;  %v7487_v12 = vsel %vm1081_vm2, %v3280_v39, %v3282_v35  ;;  %v2559_v38 = vpop.permute.xlu1 %2558 }
 0x2d6   : > { %v2739_v9 = vunpack.c.l.b16 %v2659_v31  ;;  %v2426_v46 = vadd.f32 %v7087_v0, %v2396_v49  ;;  %v2802_v20 = vsel %vm473_vm0, %v2797_v40, %v2801_v55  ;;  %v1903_v8 = vadd.f32 %v7171_v47, %v1708_v27  ;;  %v7502_v31 = vpop.f32.mrf.mxu1 }
 0x2d7   : > { %2929 = vmatmul.bf16.gmra.mxu1 %v2802_v20  ;;  %v7491_v32 = vor.u32 %v3466_v13, %v3465_v43  ;;  %v4023_v39 = vshrl.u32 %v7417_v44, 16 }
 0x2d8   : > { %v2452_v36 = vmax.f32 %v2426_v46, 0.0  ;;  %v7494_v24 = vpack.c.b16 %v2739_v9, %v2738_v37  ;;  %v2192_v40 = vadd.f32 %v7236_v53, %v1903_v8  ;;  %v1709_v37 = vadd.f32 %v7274_v15, %v6955_v51  ;;  %v7516_v8 = vpop.f32.mrf.mxu3 }
 0x2d9   : > { %v7499_v45 = vsel %vm1287_vm3, %v7414_v29, %v7491_v32  ;;  %v4025_v13 = vor.u32 %v4023_v39, %v4021_v50 }
 0x2da   : > { %v2634_v49 = vmul.f32 %v2559_v38, %v2452_v36  ;;  %v8311_v43 = vrot.slane %v7494_v24, 1  ;;  %v4027_v47 = vshll.u32 %v7494_v24, 16  ;;  %v1904_v15 = vadd.f32 %v7213_v1, %v1709_v37  ;;  %v7524_v50 = vpop.f32.mrf.mxu2 }
 0x2db   : > { %v2353_v27 = vpop.f32.mrf.mxu0 }
 0x2dc   : > { %v2660_v46 = vpack.c.bf16 %v2634_v49, %v2634_v49  ;;  %v2397_v20 = vadd.f32 %v2353_v27, %v2192_v40  ;;  %v7514_v29 = vsel %vm869_vm1, %v4244_v14, %v8311_v43  ;;  %v4029_v53 = vrot.slane %v4027_v47, 1  ;;  %v5603_v14 = vld [vmem:[%s8273_s4 + $0x110] sm:$0xff]  ;;  %v2564_v47 = vpop.permute.xlu2 %2563 }
 0x2dd   : > { %8426 = vst [vmem:[#allocation27_spill] sm:$0xff] %v7514_v29  ;;  %v2193_v49 = vadd.f32 %v7291_v60, %v1904_v15  ;;  %3566 = vmatpush.bf16.msrb.mxu2 %v5603_v14 }
 0x2de   : > { %v2740_v36 = vunpack.c.l.b16 %v2660_v46  ;;  %v2427_v38 = vadd.f32 %v7087_v0, %v2397_v20  ;;  %3922 = vmatmul.bf16.gmra.mxu0 %v7417_v44  ;;  %v7521_v51 = vsel %vm473_vm0, %v4025_v13, %v4029_v53  ;;  %v2805_v46 = vor.u32 %v2803_v7, %v2801_v55 }
 0x2df   : > { %8427 = vst [vmem:[#allocation13_spill] sm:$0xff] %v7521_v51 }
 0x2e0   : > { %v7526_v39 = vpack.c.b16 %v2740_v36, %v2739_v9  ;;  %v2453_v40 = vmax.f32 %v2427_v38, 0.0  ;;  %v1710_v9 = vadd.f32 %v7302_v28, %v6965_v52  ;;  %v7540_v38 = vpop.f32.mrf.mxu1 }
 0x2e2   : > { %v2635_v27 = vmul.f32 %v2564_v47, %v2453_v40  ;;  %3056 = vmatmul.bf16.gmra.mxu2 %v7526_v39  ;;  %v8314_v44 = vrot.slane %v7526_v39, 1  ;;  %v2807_v13 = vshll.u32 %v7526_v39, 16  ;;  %v2811_v1 = vshrl.u32 %v7526_v39, 16 }
 0x2e3   : > { %v2355_v37 = vpop.f32.mrf.mxu0  ;;  %v8313_v20 = vrot.slane %v7526_v39, 3  ;;  %v8312_v60 = vrot.slane %v7526_v39, 2 }
 0x2e4   : > { %v2661_v15 = vpack.c.bf16 %v2635_v27, %v2635_v27  ;;  %v2398_v40 = vadd.f32 %v2355_v37, %v2193_v49  ;;  %v3106_v47 = vsel %vm869_vm1, %v3103_v61, %v8314_v44  ;;  %v2809_v43 = vrot.slane %v2807_v13, 1  ;;  %v5595_v27 = vld [vmem:[%s8273_s4 + $0xd0] sm:$0xff]  ;;  %v7569_v37 = vpop.f32.mrf.mxu3 }
 0x2e5   : > { %3206 = vmatmul.bf16.gmra.mxu3 %v3106_v47  ;;  %v3469_v52 = vrot.slane %v2811_v1, 2  ;;  %v3470_v28 = vrot.slane %v2807_v13, 3  ;;  %v7552_v7 = vsel %vm1531_vm4, %v3664_v22, %v8313_v20  ;;  %v7559_v55 = vsel %vm1081_vm2, %v3282_v35, %v8312_v60  ;;  %3359 = vmatpush.bf16.msrb.mxu1 %v5595_v27 }
 0x2e6   : > { %v2741_v14 = vunpack.c.l.b16 %v2661_v15  ;;  %v2428_v61 = vadd.f32 %v7087_v0, %v2398_v40  ;;  %v2810_v49 = vsel %vm473_vm0, %v2805_v46, %v2809_v43  ;;  %v1905_v22 = vadd.f32 %v7242_v33, %v1710_v9  ;;  %v7573_v15 = vpop.f32.mrf.mxu2  ;;  %v2569_v40 = vpop.permute.xlu0 %2568 }
 0x2e7   : > { %2934 = vmatmul.bf16.gmra.mxu1 %v2810_v49  ;;  %v7566_v13 = vor.u32 %v3470_v28, %v3469_v52  ;;  %v4031_v47 = vshrl.u32 %v7494_v24, 16 }
 0x2e8   : > { %v2454_v34 = vmax.f32 %v2428_v61, 0.0  ;;  %v7571_v35 = vpack.c.b16 %v2741_v14, %v2740_v36  ;;  %v2194_v52 = vadd.f32 %v7332_v56, %v1905_v22  ;;  %v8428_v61 = vld [vmem:[#allocation4_spill] sm:$0xff]  ;;  %v7593_v22 = vpop.f32.mrf.mxu1 }
 0x2e9   : > { %v7578_v46 = vsel %vm1287_vm3, %v7491_v32, %v7566_v13  ;;  %v1711_v36 = vadd.f32 %v7358_v62, %v8428_v61  ;;  %v4033_v27 = vor.u32 %v4031_v47, %v4029_v53  ;;  %v8429_v32 = vrot.slane %v7494_v24, 1 }
 0x2ea   : > { %v2636_v28 = vmul.f32 %v2569_v40, %v2454_v34  ;;  %v8315_v33 = vrot.slane %v7571_v35, 1  ;;  %v4035_v9 = vshll.u32 %v7571_v35, 16 }
 0x2eb   : > { %v2358_v49 = vpop.f32.mrf.mxu0  ;;  %v1906_v53 = vadd.f32 %v7293_v63, %v1711_v36 }
 0x2ec   : > { %v2662_v60 = vpack.c.bf16 %v2636_v28, %v2636_v28  ;;  %v2399_v20 = vadd.f32 %v2358_v49, %v2194_v52  ;;  %v7591_v44 = vsel %vm869_vm1, %v8429_v32, %v8315_v33  ;;  %v4037_v56 = vrot.slane %v4035_v9, 1  ;;  %v2574_v28 = vpop.permute.xlu1 %2573  ;;  %v7604_v49 = vpop.f32.mrf.mxu3 }
 0x2ed   : > { %8430 = vst [vmem:[#allocation28_spill] sm:$0xff] %v7591_v44  ;;  %v2195_v61 = vadd.f32 %v7371_v25, %v1906_v53  ;;  %v2813_v32 = vor.u32 %v2811_v1, %v2809_v43  ;;  %v8438_v44 = vrot.slane %v7571_v35, 1 }
 0x2ee   : > { %v2742_v34 = vunpack.c.l.b16 %v2662_v60  ;;  %v2429_v40 = vadd.f32 %v7087_v0, %v2399_v20  ;;  %3927 = vmatmul.bf16.gmra.mxu0 %v7494_v24  ;;  %v7598_v62 = vsel %vm473_vm0, %v4033_v27, %v4037_v56  ;;  %v8432_v27 = vld [vmem:[#allocation5_spill] sm:$0xff] }
 0x2ef   : > { %8431 = vst [vmem:[#allocation29_spill] sm:$0xff] %v7598_v62  ;;  %v1712_v63 = vadd.f32 %v7410_v18, %v8432_v27  ;;  %v5616_v18 = vld [vmem:[%s8273_s4 + $0x178] sm:$0xff] }
 0x2f0   : > { %v7601_v47 = vpack.c.b16 %v2742_v34, %v2741_v14  ;;  %v2455_v52 = vmax.f32 %v2429_v40, 0.0  ;;  %v7612_v14 = vpop.f32.mrf.mxu2  ;;  %3736 = vmatpush.bf16.msrb.mxu3 %v5616_v18 }
 0x2f2   : > { %v2637_v9 = vmul.f32 %v2574_v28, %v2455_v52  ;;  %3061 = vmatmul.bf16.gmra.mxu2 %v7601_v47  ;;  %v8316_v20 = vrot.slane %v7601_v47, 1  ;;  %v2815_v24 = vshll.u32 %v7601_v47, 16  ;;  %v8317_v25 = vrot.slane %v7601_v47, 3 }
 0x2f3   : > { %v2360_v36 = vpop.f32.mrf.mxu0  ;;  %v8318_v40 = vrot.slane %v7601_v47, 2  ;;  %v8433_v28 = vrot.slane %v7526_v39, 1  ;;  %v8434_v43 = vshrl.u32 %v7601_v47, 16 }
 0x2f4   : > { %v2663_v53 = vpack.c.bf16 %v2637_v9, %v2637_v9  ;;  %v2400_v52 = vadd.f32 %v2360_v36, %v2195_v61  ;;  %v2817_v60 = vrot.slane %v2815_v24, 1  ;;  %v3474_v27 = vrot.slane %v2815_v24, 3  ;;  %v5602_v24 = vld [vmem:[%s8273_s4 + $0x108] sm:$0xff]  ;;  %v7669_v62 = vpop.f32.mrf.mxu3 }
 0x2f5   : > { %v3108_v33 = vsel %vm869_vm1, %v8433_v28, %v8316_v20  ;;  %v3473_v1 = vrot.slane %v8434_v43, 2  ;;  %v8435_v61 = vrot.slane %v7526_v39, 3  ;;  %v8436_v36 = vrot.slane %v7526_v39, 2  ;;  %3567 = vmatpush.bf16.msrb.mxu2 %v5602_v24 }
 0x2f6   : > { %3211 = vmatmul.bf16.gmra.mxu3 %v3108_v33  ;;  %v2743_v28 = vunpack.c.l.b16 %v2663_v53  ;;  %v2430_v20 = vadd.f32 %v7087_v0, %v2400_v52  ;;  %v2818_v43 = vsel %vm473_vm0, %v2813_v32, %v2817_v60  ;;  %v1907_v39 = vadd.f32 %v7340_v48, %v1712_v63  ;;  %v2579_v32 = vpop.permute.xlu2 %2578 }
 0x2f7   : > { %v7631_v9 = vsel %vm1531_vm4, %v8435_v61, %v8317_v25  ;;  %v7638_v33 = vsel %vm1081_vm2, %v8436_v36, %v8318_v40  ;;  %v5594_v61 = vld [vmem:[%s8273_s4 + $0xc8] sm:$0xff]  ;;  %2939 = vmatmul.bf16.gmra.mxu1 %v2818_v43  ;;  %v7648_v25 = vor.u32 %v3474_v27, %v3473_v1  ;;  %v7651_v36 = vpop.f32.mrf.mxu1  ;;  %v5615_v40 = vld [vmem:[%s8273_s4 + $0x170] sm:$0xff]  ;;  %v4039_v1 = vshrl.u32 %v7571_v35, 16  ;;  %v8437_v27 = vld [vmem:[#allocation10_spill] sm:$0xff] }
 0x2f8   : > { %v2456_v53 = vmax.f32 %v2430_v20, 0.0  ;;  %v7653_v52 = vpack.c.b16 %v2743_v28, %v2742_v34  ;;  %3360 = vmatpush.bf16.msrb.mxu1 %v5594_v61  ;;  %v2196_v48 = vadd.f32 %v7426_v42, %v1907_v39  ;;  %v1713_v43 = vadd.f32 %v7447_v16, %v8437_v27  ;;  %3737 = vmatpush.bf16.msrb.mxu3 %v5615_v40  ;;  %v5614_v16 = vld [vmem:[%s8273_s4 + $0x168] sm:$0xff] }
 0x2f9   : > { %v7661_v18 = vsel %vm1287_vm3, %v7566_v13, %v7648_v25  ;;  %v4041_v61 = vor.u32 %v4039_v1, %v4037_v56 }
 0x2fa   : > { %v2638_v63 = vmul.f32 %v2579_v32, %v2456_v53  ;;  %v8319_v20 = vrot.slane %v7653_v52, 1  ;;  %v4043_v34 = vshll.u32 %v7653_v52, 16  ;;  %v7678_v53 = vpop.f32.mrf.mxu2  ;;  %v5601_v32 = vld [vmem:[%s8273_s4 + $0x100] sm:$0xff]  ;;  %v8448_v29 = vrot.slane %v7653_v52, 1 }
 0x2fb   : > { %v2363_v24 = vpop.f32.mrf.mxu0  ;;  %3568 = vmatpush.bf16.msrb.mxu2 %v5601_v32 }
 0x2fc   : > { %v2664_v51 = vpack.c.bf16 %v2638_v63, %v2638_v63  ;;  %v2401_v13 = vadd.f32 %v2363_v24, %v2196_v48  ;;  %v7676_v42 = vsel %vm869_vm1, %v8438_v44, %v8319_v20  ;;  %v4045_v39 = vrot.slane %v4043_v34, 1  ;;  %3738 = vmatpush.bf16.msrb.mxu3 %v5614_v16  ;;  %v2584_v34 = vpop.permute.xlu0 %2583 }
 0x2fd   : > { %8439 = vst [vmem:[#allocation17_spill] sm:$0xff] %v7676_v42  ;;  %v1908_v44 = vadd.f32 %v7378_v23, %v1713_v43  ;;  %v8441_v43 = vld [vmem:[#allocation11_spill] sm:$0xff] }
 0x2fe   : > { %v2744_v40 = vunpack.c.l.b16 %v2664_v51  ;;  %v2431_v56 = vadd.f32 %v7087_v0, %v2401_v13  ;;  %3932 = vmatmul.bf16.gmra.mxu0 %v7571_v35  ;;  %v7689_v1 = vsel %vm473_vm0, %v4041_v61, %v4045_v39  ;;  %v5613_v0 = vld [vmem:[%s8273_s4 + $0x160] sm:$0xff]  ;;  %v1714_v61 = vadd.f32 %v7502_v31, %v8441_v43  ;;  %v5612_v31 = vld [vmem:[%s8273_s4 + $0x158] sm:$0xff] }
 0x2ff   : > { %8440 = vst [vmem:[#allocation30_spill] sm:$0xff] %v7689_v1  ;;  %v2197_v51 = vadd.f32 %v7466_v6, %v1908_v44  ;;  %v7698_v35 = vpop.f32.mrf.mxu1  ;;  %v8442_v6 = vshrl.u32 %v7601_v47, 16 }
 0x300   : > { %v7692_v48 = vpack.c.b16 %v2744_v40, %v2743_v28  ;;  %v2457_v63 = vmax.f32 %v2431_v56, 0.0  ;;  %3739 = vmatpush.bf16.msrb.mxu3 %v5613_v0 }
 0x301   : > { %v2821_v16 = vor.u32 %v8442_v6, %v2817_v60  ;;  %v7736_v6 = vpop.f32.mrf.mxu3 }
 0x302   : > { %v2639_v27 = vmul.f32 %v2584_v34, %v2457_v63  ;;  %3066 = vmatmul.bf16.gmra.mxu2 %v7692_v48  ;;  %v8322_v24 = vrot.slane %v7692_v48, 1  ;;  %v2823_v23 = vshll.u32 %v7692_v48, 16  ;;  %v8320_v56 = vrot.slane %v7692_v48, 3 }
 0x303   : > { %v2365_v13 = vpop.f32.mrf.mxu0  ;;  %v8321_v32 = vrot.slane %v7692_v48, 2  ;;  %v8443_v34 = vrot.slane %v7601_v47, 1  ;;  %v8444_v60 = vshrl.u32 %v7692_v48, 16 }
 0x304   : > { %v2665_v44 = vpack.c.bf16 %v2639_v27, %v2639_v27  ;;  %v2402_v63 = vadd.f32 %v2365_v13, %v2197_v51  ;;  %v2825_v28 = vrot.slane %v2823_v23, 1  ;;  %v3478_v43 = vrot.slane %v2823_v23, 3  ;;  %v7741_v23 = vld [vmem:[%s8272_s3] ss:$0 sm:$0xff]  ;;  %3740 = vmatpush.bf16.msrb.mxu3 %v5612_v31 }
 0x305   : > { %v3110_v20 = vsel %vm869_vm1, %v8443_v34, %v8322_v24  ;;  %v7715_v1 = vpop.f32.mrf.mxu2  ;;  %v3477_v0 = vrot.slane %v8444_v60, 2  ;;  %v8445_v51 = vrot.slane %v7601_v47, 3  ;;  %v8446_v13 = vrot.slane %v7601_v47, 2  ;;  %v2589_v24 = vpop.permute.xlu1 %2588 }
 0x306   : > { %3216 = vmatmul.bf16.gmra.mxu3 %v3110_v20  ;;  %v2745_v34 = vunpack.c.l.b16 %v2665_v44  ;;  %v2432_v60 = vadd.f32 %v7741_v23, %v2402_v63  ;;  %v1909_v47 = vadd.f32 %v7432_v59, %v1714_v61  ;;  %v5611_v44 = vld [vmem:[%s8273_s4 + $0x150] sm:$0xff] }
 0x307   : > { %v7727_v27 = vsel %vm1531_vm4, %v8445_v51, %v8320_v56  ;;  %v7734_v20 = vsel %vm1081_vm2, %v8446_v13, %v8321_v32  ;;  %v2826_v51 = vsel %vm473_vm0, %v2821_v16, %v2825_v28  ;;  %v7745_v56 = vor.u32 %v3478_v43, %v3477_v0  ;;  %v8447_v61 = vld [vmem:[#allocation12_spill] sm:$0xff]  ;;  %v7764_v42 = vpop.f32.mrf.mxu1 }
 0x308   : > { %2944 = vmatmul.bf16.gmra.mxu1 %v2826_v51  ;;  %v2458_v13 = vmax.f32 %v2432_v60, 0.0  ;;  %v7748_v32 = vpack.c.b16 %v2745_v34, %v2744_v40  ;;  %v4047_v16 = vshrl.u32 %v7653_v52, 16  ;;  %v2198_v31 = vadd.f32 %v7516_v8, %v1909_v47  ;;  %3741 = vmatpush.bf16.msrb.mxu3 %v5611_v44  ;;  %v5593_v44 = vld [vmem:[%s8273_s4 + $0xc0] sm:$0xff] }
 0x309   : > { %v7756_v63 = vsel %vm1287_vm3, %v7648_v25, %v7745_v56  ;;  %v1715_v43 = vadd.f32 %v7540_v38, %v8447_v61  ;;  %v5610_v38 = vld [vmem:[%s8273_s4 + $0x148] sm:$0xff]  ;;  %3361 = vmatpush.bf16.msrb.mxu1 %v5593_v44  ;;  %v5609_v61 = vld [vmem:[%s8273_s4 + $0x140] sm:$0xff] }
 0x30a   : > { %v2640_v0 = vmul.f32 %v2589_v24, %v2458_v13  ;;  %v8323_v59 = vrot.slane %v7748_v32, 1  ;;  %v4051_v40 = vshll.u32 %v7748_v32, 16  ;;  %v4049_v51 = vor.u32 %v4047_v16, %v4045_v39 }
 0x30b   : > { %v2368_v60 = vpop.f32.mrf.mxu0  ;;  %v1910_v16 = vadd.f32 %v7473_v26, %v1715_v43 }
 0x30c   : > { %v2666_v5 = vpack.c.bf16 %v2640_v0, %v2640_v0  ;;  %v2403_v25 = vadd.f32 %v2368_v60, %v2198_v31  ;;  %v7771_v8 = vsel %vm869_vm1, %v8448_v29, %v8323_v59  ;;  %v7773_v24 = vrot.slane %v4051_v40, 1  ;;  %3742 = vmatpush.bf16.msrb.mxu3 %v5610_v38  ;;  %v7790_v31 = vpop.f32.mrf.mxu3  ;;  %v2594_v40 = vpop.permute.xlu2 %2593 }
 0x30d   : > { %8449 = vst [vmem:[#allocation18_spill] sm:$0xff] %v7771_v8  ;;  %v7775_v47 = vpop.f32.mrf.mxu2 }
 0x30e   : > { %v2746_v39 = vunpack.c.l.b16 %v2666_v5  ;;  %v2433_v13 = vadd.f32 %v7741_v23, %v2403_v25  ;;  %3937 = vmatmul.bf16.gmra.mxu0 %v7653_v52  ;;  %v7787_v29 = vsel %vm473_vm0, %v4049_v51, %v7773_v24  ;;  %v2199_v52 = vadd.f32 %v7569_v37, %v1910_v16 }
 0x30f   : > { %8450 = vst [vmem:[#allocation22_spill] sm:$0xff] %v7787_v29  ;;  %v8453_v29 = vrot.slane %v7692_v48, 1 }
 0x310   : > { %v7792_v0 = vpack.c.b16 %v2746_v39, %v2745_v34  ;;  %v2459_v5 = vmax.f32 %v2433_v13, 0.0  ;;  %v8451_v34 = vld [vmem:[#allocation6_spill] sm:$0xff]  ;;  %v8452_v13 = vshrl.u32 %v7692_v48, 16  ;;  %3743 = vmatpush.bf16.msrb.mxu3 %v5609_v61  ;;  %v8454_v61 = vrot.slane %v7692_v48, 3 }
 0x311   : > { %v1716_v25 = vadd.f32 %v7593_v22, %v8451_v34 }
 0x312   : > { %v2641_v60 = vmul.f32 %v2594_v40, %v2459_v5  ;;  %3071 = vmatmul.bf16.gmra.mxu2 %v7792_v0  ;;  %v3111_v51 = vrot.slane %v7792_v0, 1  ;;  %v2831_v26 = vshll.u32 %v7792_v0, 16  ;;  %v2835_v43 = vshrl.u32 %v7792_v0, 16 }
 0x313   : > { %v2370_v38 = vpop.f32.mrf.mxu0  ;;  %v2829_v37 = vor.u32 %v8452_v13, %v2825_v28  ;;  %v8324_v44 = vrot.slane %v7792_v0, 3  ;;  %v8325_v16 = vrot.slane %v7792_v0, 2  ;;  %v1911_v13 = vadd.f32 %v7524_v50, %v1716_v25 }
 0x314   : > { %v2667_v5 = vpack.c.bf16 %v2641_v60, %v2641_v60  ;;  %v2404_v40 = vadd.f32 %v2370_v38, %v2199_v52  ;;  %v2910_v59 = vpop.f32.mrf.mxu1  ;;  %v3112_v8 = vsel %vm869_vm1, %v8453_v29, %v3111_v51  ;;  %v2833_v11 = vrot.slane %v2831_v26, 1 }
 0x315   : > { %v3028_v17 = vadd.f32 %v7715_v1, %v2910_v59  ;;  %v7812_v22 = vpop.f32.mrf.mxu2  ;;  %v3481_v34 = vrot.slane %v2835_v43, 2  ;;  %v3482_v28 = vrot.slane %v2831_v26, 3  ;;  %v7819_v60 = vsel %vm1531_vm4, %v8454_v61, %v8324_v44 }
 0x316   : > { %3221 = vmatmul.bf16.gmra.mxu3 %v3112_v8  ;;  %v2747_v52 = vunpack.c.l.b16 %v2667_v5  ;;  %v2434_v38 = vadd.f32 %v7741_v23, %v2404_v40  ;;  %v2834_v29 = vsel %vm473_vm0, %v2829_v37, %v2833_v11  ;;  %v8455_v59 = vrot.slane %v7692_v48, 2  ;;  %v2599_v40 = vpop.permute.xlu0 %2598 }
 0x317   : > { %v7824_v1 = vor.u32 %v3482_v28, %v3481_v34  ;;  %v2200_v37 = vadd.f32 %v7604_v49, %v1911_v13 }
 0x318   : > { %2949 = vmatmul.bf16.gmra.mxu1 %v2834_v29  ;;  %v7831_v8 = vsel %vm1081_vm2, %v8455_v59, %v8325_v16  ;;  %v2460_v26 = vmax.f32 %v2434_v38, 0.0  ;;  %v3182_v61 = vpop.f32.mrf.mxu3  ;;  %v2758_v44 = vpack.c.b16 %v2747_v52, %v2747_v52  ;;  %v7833_v5 = vpack.c.b16 %v2747_v52, %v2746_v39  ;;  %v8457_v38 = vld [vmem:[#allocation7_spill] sm:$0xff] }
 0x319   : > { %v7836_v30 = vadd.f32 %v3182_v61, %v3028_v17  ;;  %v7841_v50 = vsel %vm1287_vm3, %v7745_v56, %v7824_v1  ;;  %v1717_v29 = vadd.f32 %v7651_v36, %v8457_v38  ;;  %v2837_v59 = vor.u32 %v2835_v43, %v2833_v11 }
 0x31a   : > { %v2642_v25 = vmul.f32 %v2599_v40, %v2460_v26  ;;  %v3113_v48 = vrot.slane %v2758_v44, 1  ;;  %v2839_v34 = vshll.u32 %v2758_v44, 16  ;;  %v4254_v28 = vrot.slane %v7833_v5, 1 }
 0x31b   : > { %8456 = vst [vmem:[#allocation19_spill] sm:$0xff] %v7836_v30  ;;  %v2373_v39 = vpop.f32.mrf.mxu0  ;;  %v4055_v16 = vshrl.u32 %v7748_v32, 16  ;;  %v4059_v17 = vshll.u32 %v7833_v5, 16  ;;  %v8458_v36 = vrot.slane %v7748_v32, 1 }
 0x31c   : > { %v2668_v49 = vpack.c.bf16 %v2642_v25, %v2642_v25  ;;  %v2405_v13 = vadd.f32 %v2373_v39, %v2200_v37  ;;  %v2912_v61 = vpop.f32.mrf.mxu1  ;;  %v3114_v56 = vsel %vm869_vm1, %v3111_v51, %v3113_v48  ;;  %v2841_v30 = vrot.slane %v2839_v34, 1 }
 0x31d   : > { %v3030_v26 = vadd.f32 %v7775_v47, %v2912_v61  ;;  %v7850_v44 = vpop.f32.mrf.mxu2  ;;  %v7857_v11 = vsel %vm869_vm1, %v8458_v36, %v4254_v28  ;;  %v4057_v43 = vor.u32 %v4055_v16, %v7773_v24  ;;  %v7860_v40 = vrot.slane %v4059_v17, 1  ;;  %v5640_v24 = vld [vmem:[%s8273_s4 + $0x238] sm:$0xff]  ;;  %v2604_v16 = vpop.permute.xlu1 %2603 }
 0x31e   : > { %v3271_v37 = vunpack.c.l.b16 %v2668_v49  ;;  %v2435_v25 = vadd.f32 %v7741_v23, %v2405_v13  ;;  %3942 = vmatmul.bf16.gmra.mxu0 %v7748_v32  ;;  %v2842_v47 = vsel %vm473_vm0, %v2837_v59, %v2841_v30  ;;  %v1912_v51 = vadd.f32 %v7573_v15, %v1717_v29  ;;  %v5632_v32 = vld [vmem:[%s8273_s4 + $0x1f8] sm:$0xff]  ;;  %v8459_v49 = vld [vmem:[#allocation14_spill] sm:$0xff]  ;;  %4320 = vmatpush.bf16.msra.mxu2 %v5640_v24 }
 0x31f   : > { %v7868_v48 = vsel %vm473_vm0, %v4057_v43, %v7860_v40  ;;  %4145 = vmatpush.bf16.msra.mxu1 %v5632_v32  ;;  %v1718_v13 = vadd.f32 %v7698_v35, %v8459_v49  ;;  %v8461_v35 = vrot.slane %v7792_v0, 2 }
 0x320   : > { %v7870_v34 = vpack.c.b16 %v3271_v37, %v2747_v52  ;;  %v2461_v38 = vmax.f32 %v2435_v25, 0.0  ;;  %v3184_v39 = vpop.f32.mrf.mxu3  ;;  %v2201_v30 = vadd.f32 %v7669_v62, %v1912_v51 }
 0x321   : > { %v7879_v15 = vadd.f32 %v3184_v39, %v3030_v26  ;;  %v8460_v39 = vrot.slane %v7792_v0, 3 }
 0x322   : > { %v2643_v29 = vmul.f32 %v2604_v16, %v2461_v38  ;;  %3569 = vmatmul.bf16.vlgmr.msrb.gmra.mxu2 %v7283_v21  ;;  %v3486_v52 = vshrl.u32 %v7870_v34, 16  ;;  %v3489_v59 = vshll.u32 %v7870_v34, 16  ;;  %v3674_v17 = vrot.slane %v7870_v34, 3 }
 0x323   : > { %v2375_v61 = vpop.f32.mrf.mxu0  ;;  %v3292_v36 = vrot.slane %v7870_v34, 2 }
 0x324   : > { %v2669_v62 = vpack.c.bf16 %v2643_v29, %v2643_v29  ;;  %v2406_v26 = vadd.f32 %v2375_v61, %v2201_v30  ;;  %v2915_v43 = vpop.f32.mrf.mxu1  ;;  %v3488_v25 = vrot.slane %v3486_v52, 2  ;;  %v3491_v51 = vrot.slane %v3489_v59, 3 }
 0x325   : > { %v3033_v21 = vadd.f32 %v7812_v22, %v2915_v43  ;;  %v3037_v38 = vpop.f32.mrf.mxu2  ;;  %v7892_v32 = vsel %vm1531_vm4, %v8460_v39, %v3674_v17  ;;  %v7897_v24 = vsel %vm1081_vm2, %v8461_v35, %v3292_v36  ;;  %v1913_v29 = vadd.f32 %v7612_v14, %v1718_v13  ;;  %v5639_v22 = vld [vmem:[%s8273_s4 + $0x230] sm:$0xff]  ;;  %v8462_v43 = vld [vmem:[#allocation15_spill] sm:$0xff] }
 0x326   : > { %3226 = vmatmul.bf16.gmra.mxu3 %v3114_v56  ;;  %v3272_v34 = vunpack.c.l.b16 %v2669_v62  ;;  %v2436_v16 = vadd.f32 %v7741_v23, %v2406_v26  ;;  %v3492_v30 = vor.u32 %v3491_v51, %v3488_v25  ;;  %4321 = vmatpush.bf16.msra.mxu2 %v5639_v22  ;;  %v4063_v14 = vshrl.u32 %v7833_v5, 16  ;;  %v2609_v22 = vpop.permute.xlu2 %2608 }
 0x327   : > { %v2202_v49 = vadd.f32 %v7736_v6, %v1913_v29  ;;  %v1719_v25 = vadd.f32 %v7764_v42, %v8462_v43 }
 0x328   : > { %2954 = vmatmul.bf16.gmra.mxu1 %v2842_v47  ;;  %v3274_v56 = vpack.c.b16 %v3272_v34, %v3272_v34  ;;  %v3187_v52 = vpop.f32.mrf.mxu3  ;;  %v7904_v59 = vpack.c.b16 %v3272_v34, %v3271_v37  ;;  %v7908_v0 = vsel %vm1287_vm3, %v7824_v1, %v3492_v30  ;;  %v2462_v47 = vmax.f32 %v2436_v16, 0.0  ;;  %v5631_v1 = vld [vmem:[%s8273_s4 + $0x1f0] sm:$0xff] }
 0x329   : > { %v7911_v61 = vadd.f32 %v3187_v52, %v3033_v21  ;;  %v4065_v29 = vor.u32 %v4063_v14, %v7860_v40  ;;  %4146 = vmatpush.bf16.msra.mxu1 %v5631_v1  ;;  %v1914_v14 = vadd.f32 %v7678_v53, %v1719_v25  ;;  %v2614_v1 = vpop.permute.xlu0 %2613 }
 0x32a   : > { %v3495_v13 = vshrl.u32 %v3274_v56, 16  ;;  %v3498_v62 = vshll.u32 %v3274_v56, 16  ;;  %v3676_v26 = vrot.slane %v3274_v56, 3  ;;  %v3294_v51 = vrot.slane %v3274_v56, 2 }
 0x32b   : > { %v2378_v37 = vpop.f32.mrf.mxu0  ;;  %v4256_v6 = vrot.slane %v7904_v59, 1  ;;  %v4067_v21 = vshll.u32 %v7904_v59, 16 }
 0x32c   : > { %v2407_v39 = vadd.f32 %v2378_v37, %v2202_v49  ;;  %v2917_v35 = vpop.f32.mrf.mxu1  ;;  %v3497_v34 = vrot.slane %v3495_v13, 2  ;;  %v3500_v16 = vrot.slane %v3498_v62, 3  ;;  %v7924_v43 = vsel %vm1531_vm4, %v3674_v17, %v3676_v26 }
 0x32d   : > { %v3035_v52 = vadd.f32 %v7850_v44, %v2917_v35  ;;  %v3039_v42 = vpop.f32.mrf.mxu2  ;;  %v7927_v56 = vsel %vm1081_vm2, %v3292_v36, %v3294_v51  ;;  %v7932_v49 = vsel %vm869_vm1, %v4254_v28, %v4256_v6  ;;  %v2644_v13 = vmul.f32 %v2609_v22, %v2462_v47 }
 0x32e   : > { %v2437_v62 = vadd.f32 %v7741_v23, %v2407_v39  ;;  %3947 = vmatmul.bf16.gmra.mxu0 %v7833_v5  ;;  %v3501_v40 = vor.u32 %v3500_v16, %v3497_v34  ;;  %v4069_v44 = vrot.slane %v4067_v21, 1  ;;  %v2203_v47 = vadd.f32 %v7790_v31, %v1914_v14 }
 0x32f   : > { %v2670_v51 = vpack.c.bf16 %v2644_v13, %v2644_v13  ;;  %v2619_v13 = vpop.permute.xlu1 %2618  ;;  %v4071_v14 = vshrl.u32 %v7904_v59, 16 }
 0x330   : > { %v2463_v37 = vmax.f32 %v2437_v62, 0.0  ;;  %v3189_v17 = vpop.f32.mrf.mxu3  ;;  %v7938_v26 = vsel %vm1287_vm3, %v3492_v30, %v3501_v40  ;;  %v7941_v36 = vsel %vm473_vm0, %v4065_v29, %v4069_v44 }
 0x331   : > { %v7943_v28 = vadd.f32 %v3189_v17, %v3035_v52  ;;  %v3834_v30 = vunpack.c.l.b16 %v2670_v51 }
 0x332   : > { %v2645_v39 = vmul.f32 %v2614_v1, %v2463_v37  ;;  %3574 = vmatmul.bf16.gmra.mxu2 %v7350_v3 }
 0x333   : > { %v2380_v5 = vpop.f32.mrf.mxu0 }
 0x334   : > { %v2671_v21 = vpack.c.bf16 %v2645_v39, %v2645_v39  ;;  %v2408_v53 = vadd.f32 %v2380_v5, %v2203_v47  ;;  %v2920_v25 = vpop.f32.mrf.mxu1  ;;  %v5630_v39 = vld [vmem:[%s8273_s4 + $0x1e8] sm:$0xff] }
 0x335   : > { %v3038_v35 = vadd.f32 %v3037_v38, %v2920_v25  ;;  %v3042_v34 = vpop.f32.mrf.mxu2  ;;  %4147 = vmatpush.bf16.msra.mxu1 %v5630_v39 }
 0x336   : > { %3744 = vmatmul.bf16.vlgmr.msrb.gmra.mxu3 %v7255_v58  ;;  %v3835_v16 = vunpack.c.l.b16 %v2671_v21  ;;  %v2438_v29 = vadd.f32 %v7741_v23, %v2408_v53  ;;  %v5638_v58 = vld [vmem:[%s8273_s4 + $0x228] sm:$0xff] }
 0x337   : > { %4322 = vmatpush.bf16.msra.mxu2 %v5638_v58 }
 0x338   : > { %3362 = vmatmul.bf16.vlgmr.msrb.gmra.mxu1 %v7260_v57  ;;  %v2464_v22 = vmax.f32 %v2438_v29, 0.0  ;;  %v3192_v31 = vpop.f32.mrf.mxu3  ;;  %v3845_v52 = vpack.c.b16 %v3835_v16, %v3834_v30  ;;  %v4073_v57 = vor.u32 %v4071_v14, %v4069_v44 }
 0x339   : > { %v7950_v62 = vadd.f32 %v3192_v31, %v3038_v35 }
 0x33a   : > { %v2646_v3 = vmul.f32 %v2619_v13, %v2464_v22  ;;  %v4258_v40 = vrot.slane %v3845_v52, 1  ;;  %v4075_v38 = vshll.u32 %v3845_v52, 16  ;;  %v4079_v44 = vshrl.u32 %v3845_v52, 16 }
 0x33c   : > { %v2672_v37 = vpack.c.bf16 %v2646_v3, %v2646_v3  ;;  %v2922_v17 = vpop.f32.mrf.mxu1  ;;  %v7957_v23 = vsel %vm869_vm1, %v4256_v6, %v4258_v40  ;;  %v4077_v1 = vrot.slane %v4075_v38, 1 }
 0x33d   : > { %v3040_v47 = vadd.f32 %v3039_v42, %v2922_v17  ;;  %v3044_v51 = vpop.f32.mrf.mxu2 }
 0x33e   : > { %v4001_v5 = vunpack.c.l.b16 %v2672_v37  ;;  %3952 = vmatmul.bf16.gmra.mxu0 %v7904_v59  ;;  %v7964_v21 = vsel %vm473_vm0, %v4073_v57, %v4077_v1  ;;  %v4081_v29 = vor.u32 %v4079_v44, %v4077_v1 }
 0x340   : > { %v4002_v53 = vpack.c.b16 %v4001_v5, %v4001_v5  ;;  %v3194_v25 = vpop.f32.mrf.mxu3 }
 0x341   : > { %v7966_v6 = vadd.f32 %v3194_v25, %v3040_v47 }
 0x342   : > { %3579 = vmatmul.bf16.gmra.mxu2 %v7422_v41  ;;  %v4260_v42 = vrot.slane %v4002_v53, 1  ;;  %v4083_v35 = vshll.u32 %v4002_v53, 16  ;;  %v5636_v53 = vld [vmem:[%s8273_s4 + $0x218] sm:$0xff] }
 0x344   : > { %v2925_v30 = vpop.f32.mrf.mxu1  ;;  %v7970_v16 = vsel %vm869_vm1, %v4258_v40, %v4260_v42  ;;  %v4085_v22 = vrot.slane %v4083_v35, 1  ;;  %v5637_v40 = vld [vmem:[%s8273_s4 + $0x220] sm:$0xff] }
 0x345   : > { %v3043_v59 = vadd.f32 %v3042_v34, %v2925_v30  ;;  %v3047_v31 = vpop.f32.mrf.mxu2  ;;  %4323 = vmatpush.bf16.msra.mxu2 %v5637_v40 }
 0x346   : > { %3749 = vmatmul.bf16.gmra.mxu3 %v7323_v10  ;;  %v7974_v13 = vsel %vm473_vm0, %v4081_v29, %v4085_v22  ;;  %v5629_v10 = vld [vmem:[%s8273_s4 + $0x1e0] sm:$0xff] }
 0x347   : > { %4148 = vmatpush.bf16.msra.mxu1 %v5629_v10 }
 0x348   : > { %3367 = vmatmul.bf16.gmra.mxu1 %v7330_v4  ;;  %v3197_v3 = vpop.f32.mrf.mxu3 }
 0x349   : > { %v7977_v41 = vadd.f32 %v3197_v3, %v3043_v59  ;;  %4324 = vmatpush.bf16.msra.mxu2 %v5636_v53 }
 0x34c   : > { %v2927_v14 = vpop.f32.mrf.mxu1 }
 0x34d   : > { %v3045_v38 = vadd.f32 %v3044_v51, %v2927_v14  ;;  %v3049_v58 = vpop.f32.mrf.mxu2 }
 0x34e   : > { %3957 = vmatmul.bf16.gmra.mxu0 %v3845_v52 }
 0x350   : > { %v3199_v34 = vpop.f32.mrf.mxu3 }
 0x351   : > { %v7982_v37 = vadd.f32 %v3199_v34, %v3045_v38 }
 0x352   : > { %3584 = vmatmul.bf16.gmra.mxu2 %v7499_v45 }
 0x354   : > { %v2930_v4 = vpop.f32.mrf.mxu1 }
 0x355   : > { %v3048_v17 = vadd.f32 %v3047_v31, %v2930_v4  ;;  %v3052_v57 = vpop.f32.mrf.mxu2 }
 0x356   : > { %3754 = vmatmul.bf16.gmra.mxu3 %v7401_v2 }
 0x358   : > { %3372 = vmatmul.bf16.gmra.mxu1 %v7408_v54  ;;  %v3202_v1 = vpop.f32.mrf.mxu3  ;;  %v5628_v54 = vld [vmem:[%s8273_s4 + $0x1d8] sm:$0xff] }
 0x359   : > { %v7990_v52 = vadd.f32 %v3202_v1, %v3048_v17  ;;  %4149 = vmatpush.bf16.msra.mxu1 %v5628_v54 }
 0x35c   : > { %v2932_v47 = vpop.f32.mrf.mxu1 }
 0x35d   : > { %v3050_v51 = vadd.f32 %v3049_v58, %v2932_v47  ;;  %v3054_v39 = vpop.f32.mrf.mxu2  ;;  %v5627_v58 = vld [vmem:[%s8273_s4 + $0x1d0] sm:$0xff]  ;;  %v5634_v47 = vld [vmem:[%s8273_s4 + $0x208] sm:$0xff] }
 0x35e   : > { %4150 = vmatpush.bf16.msra.mxu1 %v5627_v58 }
 0x360   : > { %v3204_v5 = vpop.f32.mrf.mxu3 }
 0x361   : > { %v7992_v45 = vadd.f32 %v3204_v5, %v3050_v51 }
 0x362   : > { %3589 = vmatmul.bf16.gmra.mxu2 %v7578_v46 }
 0x364   : > { %v2935_v25 = vpop.f32.mrf.mxu1 }
 0x365   : > { %v3053_v2 = vadd.f32 %v3052_v57, %v2935_v25  ;;  %v3057_v42 = vpop.f32.mrf.mxu2 }
 0x366   : > { %3759 = vmatmul.bf16.gmra.mxu3 %v7480_v19 }
 0x368   : > { %3377 = vmatmul.bf16.gmra.mxu1 %v7487_v12  ;;  %v3207_v44 = vpop.f32.mrf.mxu3  ;;  %v5635_v12 = vld [vmem:[%s8273_s4 + $0x210] sm:$0xff] }
 0x369   : > { %v8003_v35 = vadd.f32 %v3207_v44, %v3053_v2  ;;  %4325 = vmatpush.bf16.msra.mxu2 %v5635_v12 }
 0x36c   : > { %v2937_v46 = vpop.f32.mrf.mxu1 }
 0x36d   : > { %v3055_v30 = vadd.f32 %v3054_v39, %v2937_v46  ;;  %v3059_v29 = vpop.f32.mrf.mxu2  ;;  %4326 = vmatpush.bf16.msra.mxu2 %v5634_v47 }
 0x370   : > { %v3209_v22 = vpop.f32.mrf.mxu3 }
 0x371   : > { %v8005_v59 = vadd.f32 %v3209_v22, %v3055_v30 }
 0x372   : > { %3594 = vmatmul.bf16.gmra.mxu2 %v7661_v18 }
 0x374   : > { %v2940_v19 = vpop.f32.mrf.mxu1 }
 0x375   : > { %v3058_v31 = vadd.f32 %v3057_v42, %v2940_v19  ;;  %v3062_v3 = vpop.f32.mrf.mxu2 }
 0x376   : > { %3764 = vmatmul.bf16.gmra.mxu3 %v7552_v7 }
 0x378   : > { %3382 = vmatmul.bf16.gmra.mxu1 %v7559_v55 }
 0x379   : > { %v3212_v14 = vpop.f32.mrf.mxu3 }
 0x37a   : > { %v8013_v38 = vadd.f32 %v3212_v14, %v3058_v31 }
 0x37c   : > { %v2942_v18 = vpop.f32.mrf.mxu1 }
 0x37d   : > { %v3060_v40 = vadd.f32 %v3059_v29, %v2942_v18  ;;  %v3064_v34 = vpop.f32.mrf.mxu2  ;;  %v5633_v29 = vld [vmem:[%s8273_s4 + $0x200] sm:$0xff] }
 0x37e   : > { %4327 = vmatpush.bf16.msra.mxu2 %v5633_v29 }
 0x381   : > { %v3214_v10 = vpop.f32.mrf.mxu3 }
 0x382   : > { %v8018_v7 = vadd.f32 %v3214_v10, %v3060_v40  ;;  %3599 = vmatmul.bf16.gmra.mxu2 %v7756_v63  ;;  %v5626_v63 = vld [vmem:[%s8273_s4 + $0x1c8] sm:$0xff] }
 0x383   : > { %4151 = vmatpush.bf16.msra.mxu1 %v5626_v63  ;;  %v8463_v10 = vld [vmem:[#allocation19_spill] sm:$0xff] }
 0x385   : > { %v2945_v55 = vpop.f32.mrf.mxu1  ;;  %v3067_v17 = vpop.f32.mrf.mxu2 }
 0x386   : > { %v3063_v4 = vadd.f32 %v3062_v3, %v2945_v55  ;;  %3769 = vmatmul.bf16.gmra.mxu3 %v7631_v9 }
 0x388   : > { %3387 = vmatmul.bf16.gmra.mxu1 %v7638_v33 }
 0x389   : > { %v3217_v57 = vpop.f32.mrf.mxu3 }
 0x38a   : > { %v8023_v1 = vadd.f32 %v3217_v57, %v3063_v4 }
 0x38d   : > { %v2947_v51 = vpop.f32.mrf.mxu1  ;;  %v3069_v5 = vpop.f32.mrf.mxu2 }
 0x38e   : > { %v3065_v39 = vadd.f32 %v3064_v34, %v2947_v51  ;;  %v8464_v51 = vld [vmem:[#allocation16_spill] sm:$0xff] }
 0x391   : > { %v3219_v53 = vpop.f32.mrf.mxu3 }
 0x392   : > { %v8031_v9 = vadd.f32 %v3219_v53, %v3065_v39  ;;  %3604 = vmatmul.bf16.gmra.mxu2 %v7841_v50 }
 0x395   : > { %v2950_v33 = vpop.f32.mrf.mxu1  ;;  %v3072_v2 = vpop.f32.mrf.mxu2 }
 0x396   : > { %v3068_v25 = vadd.f32 %v3067_v17, %v2950_v33  ;;  %3774 = vmatmul.bf16.gmra.mxu3 %v7727_v27  ;;  %v5625_v27 = vld [vmem:[%s8273_s4 + $0x1c0] sm:$0xff]  ;;  %v8465_v33 = vld [vmem:[#allocation8_spill] sm:$0xff] }
 0x397   : > { %4152 = vmatpush.bf16.msra.mxu1 %v5625_v27 }
 0x398   : > { %3392 = vmatmul.bf16.gmra.mxu1 %v7734_v20 }
 0x399   : > { %v3222_v42 = vpop.f32.mrf.mxu3 }
 0x39a   : > { %v8036_v54 = vadd.f32 %v3222_v42, %v3068_v25 }
 0x39d   : > { %v2952_v44 = vpop.f32.mrf.mxu1  ;;  %v3074_v30 = vpop.f32.mrf.mxu2 }
 0x39e   : > { %v3070_v46 = vadd.f32 %v3069_v5, %v2952_v44 }
 0x3a1   : > { %v3224_v22 = vpop.f32.mrf.mxu3 }
 0x3a2   : > { %v8041_v50 = vadd.f32 %v3224_v22, %v3070_v46  ;;  %3609 = vmatmul.bf16.gmra.mxu2 %v7908_v0 }
 0x3a5   : > { %v2955_v20 = vpop.f32.mrf.mxu1  ;;  %v3570_v31 = vpop.f32.mrf.mxu2 }
 0x3a6   : > { %v3073_v19 = vadd.f32 %v3072_v2, %v2955_v20  ;;  %3779 = vmatmul.bf16.gmra.mxu3 %v7819_v60  ;;  %v8468_v20 = vld [vmem:[#allocation9_spill] sm:$0xff] }
 0x3a8   : > { %3397 = vmatmul.bf16.gmra.mxu1 %v7831_v8 }
 0x3a9   : > { %v3227_v3 = vpop.f32.mrf.mxu3 }
 0x3aa   : > { %v8049_v12 = vadd.f32 %v3227_v3, %v3073_v19 }
 0x3ad   : > { %v2957_v14 = vpop.f32.mrf.mxu1  ;;  %v3572_v18 = vpop.f32.mrf.mxu2 }
 0x3ae   : > { %v3075_v58 = vadd.f32 %v3074_v30, %v2957_v14 }
 0x3b1   : > { %v3229_v40 = vpop.f32.mrf.mxu3 }
 0x3b2   : > { %v8051_v0 = vadd.f32 %v3229_v40, %v3075_v58  ;;  %3614 = vmatmul.bf16.gmra.mxu2 %v7938_v26 }
 0x3b5   : > { %v3363_v34 = vpop.f32.mrf.mxu1  ;;  %v3575_v4 = vpop.f32.mrf.mxu2 }
 0x3b6   : > { %v3413_v55 = vadd.f32 %v3363_v34, %v8463_v10  ;;  %3784 = vmatmul.bf16.gmra.mxu3 %v7892_v32  ;;  %v8470_v34 = vld [vmem:[#allocation13_spill] sm:$0xff] }
 0x3b8   : > { %3402 = vmatmul.bf16.gmra.mxu1 %v7897_v24  ;;  %v8057_v60 = vadd.f32 %v3570_v31, %v3413_v55 }
 0x3bd   : > { %v3365_v8 = vpop.f32.mrf.mxu1  ;;  %v3577_v57 = vpop.f32.mrf.mxu2 }
 0x3be   : > { %v3414_v17 = vadd.f32 %v3365_v8, %v7879_v15 }
 0x3c0   : > { %v8060_v47 = vadd.f32 %v3572_v18, %v3414_v17 }
 0x3c2   : > { %4328 = vmatmul.bf16.vlgmr.msra.gmra.mxu2 %v8464_v51 }
 0x3c5   : > { %v3368_v39 = vpop.f32.mrf.mxu1  ;;  %v3580_v5 = vpop.f32.mrf.mxu2 }
 0x3c6   : > { %v3415_v26 = vadd.f32 %v3368_v39, %v7911_v61  ;;  %3789 = vmatmul.bf16.gmra.mxu3 %v7924_v43  ;;  %v8466_v61 = vld [vmem:[#allocation26_spill] sm:$0xff]  ;;  %v8472_v39 = vld [vmem:[#allocation29_spill] sm:$0xff] }
 0x3c8   : > { %3407 = vmatmul.bf16.gmra.mxu1 %v7927_v56  ;;  %v8066_v32 = vadd.f32 %v3575_v4, %v3415_v26 }
 0x3cd   : > { %v3370_v24 = vpop.f32.mrf.mxu1  ;;  %v3582_v53 = vpop.f32.mrf.mxu2 }
 0x3ce   : > { %v3416_v63 = vadd.f32 %v3370_v24, %v7943_v28  ;;  %v8467_v28 = vld [vmem:[#allocation27_spill] sm:$0xff] }
 0x3d0   : > { %v8069_v15 = vadd.f32 %v3577_v57, %v3416_v63 }
 0x3d2   : > { %4333 = vmatmul.bf16.gmra.mxu2 %v8465_v33 }
 0x3d5   : > { %v3373_v25 = vpop.f32.mrf.mxu1  ;;  %v3585_v42 = vpop.f32.mrf.mxu2 }
 0x3d6   : > { %v3417_v2 = vadd.f32 %v3373_v25, %v7950_v62 }
 0x3d8   : > { %4153 = vmatmul.bf16.vlgmr.msra.gmra.mxu1 %v8466_v61  ;;  %v8074_v44 = vadd.f32 %v3580_v5, %v3417_v2  ;;  %v8474_v2 = vld [vmem:[#allocation30_spill] sm:$0xff] }
 0x3dd   : > { %v3375_v43 = vpop.f32.mrf.mxu1  ;;  %v3587_v46 = vpop.f32.mrf.mxu2 }
 0x3de   : > { %v3418_v56 = vadd.f32 %v3375_v43, %v7966_v6  ;;  %v8469_v6 = vld [vmem:[#allocation28_spill] sm:$0xff] }
 0x3e0   : > { %v8077_v30 = vadd.f32 %v3582_v53, %v3418_v56 }
 0x3e2   : > { %4338 = vmatmul.bf16.gmra.mxu2 %v8467_v28 }
 0x3e5   : > { %v3378_v29 = vpop.f32.mrf.mxu1  ;;  %v3590_v27 = vpop.f32.mrf.mxu2 }
 0x3e6   : > { %v3419_v22 = vadd.f32 %v3378_v29, %v7977_v41 }
 0x3e8   : > { %4158 = vmatmul.bf16.gmra.mxu1 %v8468_v20  ;;  %v8082_v62 = vadd.f32 %v3585_v42, %v3419_v22  ;;  %v8475_v22 = vld [vmem:[#allocation22_spill] sm:$0xff] }
 0x3ed   : > { %v3380_v19 = vpop.f32.mrf.mxu1  ;;  %v3592_v3 = vpop.f32.mrf.mxu2 }
 0x3ee   : > { %v3420_v31 = vadd.f32 %v3380_v19, %v7982_v37  ;;  %v8471_v37 = vld [vmem:[#allocation17_spill] sm:$0xff] }
 0x3f0   : > { %v8085_v14 = vadd.f32 %v3587_v46, %v3420_v31  ;;  %v3745_v46 = vpop.f32.mrf.mxu3 }
 0x3f2   : > { %4343 = vmatmul.bf16.gmra.mxu2 %v8469_v6 }
 0x3f5   : > { %v3383_v58 = vpop.f32.mrf.mxu1  ;;  %v3595_v40 = vpop.f32.mrf.mxu2 }
 0x3f6   : > { %v3421_v18 = vadd.f32 %v3383_v58, %v7990_v52 }
 0x3f8   : > { %4163 = vmatmul.bf16.gmra.mxu1 %v8470_v34  ;;  %v8090_v41 = vadd.f32 %v3590_v27, %v3421_v18  ;;  %v3913_v27 = vpop.f32.mrf.mxu0 }
 0x3fd   : > { %v3385_v10 = vpop.f32.mrf.mxu1  ;;  %v3597_v4 = vpop.f32.mrf.mxu2 }
 0x3fe   : > { %v3422_v55 = vadd.f32 %v3385_v10, %v7992_v45  ;;  %v8473_v45 = vld [vmem:[#allocation18_spill] sm:$0xff] }
 0x400   : > { %v8093_v8 = vadd.f32 %v3592_v3, %v3422_v55 }
 0x402   : > { %4348 = vmatmul.bf16.gmra.mxu2 %v8471_v37 }
 0x405   : > { %v3388_v17 = vpop.f32.mrf.mxu1  ;;  %v3600_v51 = vpop.f32.mrf.mxu2 }
 0x406   : > { %v3423_v57 = vadd.f32 %v3388_v17, %v8003_v35 }
 0x408   : > { %4168 = vmatmul.bf16.gmra.mxu1 %v8472_v39  ;;  %v8098_v52 = vadd.f32 %v3595_v40, %v3423_v57 }
 0x40d   : > { %v3390_v26 = vpop.f32.mrf.mxu1  ;;  %v3602_v24 = vpop.f32.mrf.mxu2 }
 0x40e   : > { %v3424_v5 = vadd.f32 %v3390_v26, %v8005_v59 }
 0x410   : > { %v8101_v63 = vadd.f32 %v3597_v4, %v3424_v5 }
 0x412   : > { %4353 = vmatmul.bf16.gmra.mxu2 %v8473_v45  ;;  %v5715_v45 = vld [vmem:[%s5880_s9 + $0x28] sm:$0xff] }
 0x415   : > { %v3393_v53 = vpop.f32.mrf.mxu1  ;;  %v3605_v25 = vpop.f32.mrf.mxu2 }
 0x416   : > { %v3425_v33 = vadd.f32 %v3393_v53, %v8013_v38  ;;  %v4445_v53 = vrot.slane %v5715_v45, 2 }
 0x418   : > { %4173 = vmatmul.bf16.gmra.mxu1 %v8474_v2  ;;  %v8106_v35 = vadd.f32 %v3600_v51, %v3425_v33  ;;  %v5716_v33 = vld [vmem:[%s5880_s9 + $0x30] sm:$0xff] }
 0x41d   : > { %v3395_v42 = vpop.f32.mrf.mxu1  ;;  %v3607_v43 = vpop.f32.mrf.mxu2 }
 0x41e   : > { %v3426_v61 = vadd.f32 %v3395_v42, %v8018_v7  ;;  %v3747_v7 = vpop.f32.mrf.mxu3 }
 0x41f   : > { %v3796_v42 = vadd.f32 %v3747_v7, %v8060_v47  ;;  %v5717_v47 = vld [vmem:[%s5880_s9 + $0x38] sm:$0xff] }
 0x420   : > { %v8109_v56 = vadd.f32 %v3602_v24, %v3426_v61 }
 0x422   : > { %4358 = vmatmul.bf16.gmra.mxu2 %v7857_v11 }
 0x425   : > { %v3398_v59 = vpop.f32.mrf.mxu1  ;;  %v3610_v29 = vpop.f32.mrf.mxu2 }
 0x426   : > { %v3427_v28 = vadd.f32 %v3398_v59, %v8023_v1  ;;  %v3915_v1 = vpop.f32.mrf.mxu0  ;;  %v3750_v40 = vpop.f32.mrf.mxu3 }
 0x428   : > { %4178 = vmatmul.bf16.gmra.mxu1 %v8475_v22  ;;  %v8114_v38 = vadd.f32 %v3605_v25, %v3427_v28  ;;  %v4446_v25 = vrot.slane %v5716_v33, 2  ;;  %v3964_v28 = vadd.f32 %v3915_v1, %v3796_v42  ;;  %v4448_v22 = vrot.slane %v5717_v47, 2 }
 0x42a   : > { %v4449_v7 = vsel %vm1081_vm2, %v4446_v25, %v4448_v22 }
 0x42d   : > { %v3400_v20 = vpop.f32.mrf.mxu1  ;;  %v3612_v31 = vpop.f32.mrf.mxu2 }
 0x42e   : > { %v3428_v19 = vadd.f32 %v3400_v20, %v8031_v9  ;;  %v3918_v4 = vpop.f32.mrf.mxu0 }
 0x430   : > { %v8117_v3 = vadd.f32 %v3607_v43, %v3428_v19  ;;  %v4447_v43 = vsel %vm1081_vm2, %v4445_v53, %v4446_v25  ;;  %v3797_v19 = vadd.f32 %v3750_v40, %v8066_v32 }
 0x432   : > { %4363 = vmatmul.bf16.gmra.mxu2 %v7932_v49  ;;  %v3752_v49 = vpop.f32.mrf.mxu3 }
 0x435   : > { %v3403_v11 = vpop.f32.mrf.mxu1  ;;  %v3615_v58 = vpop.f32.mrf.mxu2 }
 0x436   : > { %v3429_v6 = vadd.f32 %v3403_v11, %v8036_v54  ;;  %v3920_v57 = vpop.f32.mrf.mxu0 }
 0x438   : > { %4183 = vmatmul.bf16.gmra.mxu1 %v7868_v48  ;;  %v8122_v18 = vadd.f32 %v3610_v29, %v3429_v6 }
 0x43a   : > { %v8132_v51 = vpop.f32.mrf.mxu3 }
 0x43d   : > { %v3405_v34 = vpop.f32.mrf.mxu1  ;;  %v3617_v9 = vpop.f32.mrf.mxu2 }
 0x43e   : > { %v3430_v10 = vadd.f32 %v3405_v34, %v8041_v50  ;;  %v3965_v34 = vadd.f32 %v3918_v4, %v3797_v19  ;;  %v5721_v19 = vld [vmem:[%s5880_s9 + $0x58] sm:$0xff] }
 0x440   : > { %v8125_v55 = vadd.f32 %v3612_v31, %v3430_v10  ;;  %v5718_v10 = vld [vmem:[%s5880_s9 + $0x40] sm:$0xff] }
 0x442   : > { %4368 = vmatmul.bf16.gmra.mxu2 %v7957_v23  ;;  %v3795_v23 = vadd.f32 %v3745_v46, %v8057_v60  ;;  %v3757_v61 = vpop.f32.mrf.mxu3 }
 0x445   : > { %v3408_v54 = vpop.f32.mrf.mxu1  ;;  %v4329_v17 = vpop.f32.mrf.mxu2 }
 0x446   : > { %v3431_v37 = vadd.f32 %v3408_v54, %v8049_v12  ;;  %v3923_v12 = vpop.f32.mrf.mxu0 }
 0x448   : > { %4188 = vmatmul.bf16.gmra.mxu1 %v7941_v36  ;;  %v8130_v48 = vadd.f32 %v3615_v58, %v3431_v37  ;;  %v3963_v36 = vadd.f32 %v3913_v27, %v3795_v23 }
 0x44a   : > { %v3760_v11 = vpop.f32.mrf.mxu3 }
 0x44d   : > { %v3410_v50 = vpop.f32.mrf.mxu1  ;;  %v4331_v26 = vpop.f32.mrf.mxu2 }
 0x44e   : > { %v3432_v39 = vadd.f32 %v3410_v50, %v8051_v0  ;;  %v8146_v0 = vld [vmem:[%s8274_s5] ss:$0 sm:$0xff]  ;;  %v3925_v20 = vpop.f32.mrf.mxu0 }
 0x450   : > { %v8136_v5 = vadd.f32 %v3617_v9, %v3432_v39  ;;  %v4450_v9 = vrot.slane %v5718_v10, 2 }
 0x452   : > { %4373 = vmatmul.bf16.gmra.mxu2 %v7970_v16  ;;  %v4451_v40 = vsel %vm1081_vm2, %v4448_v22, %v4450_v9 }
 0x455   : > { %v4154_v24 = vpop.f32.mrf.mxu1  ;;  %v4334_v60 = vpop.f32.mrf.mxu2 }
 0x456   : > { %v4204_v2 = vadd.f32 %v4154_v24, %v3963_v36  ;;  %v3928_v32 = vpop.f32.mrf.mxu0  ;;  %v5719_v24 = vld [vmem:[%s5880_s9 + $0x48] sm:$0xff] }
 0x457   : > { %v4452_v45 = vrot.slane %v5719_v24, 2 }
 0x458   : > { %v4379_v16 = vadd.f32 %v4329_v17, %v4204_v2  ;;  %4193 = vmatmul.bf16.gmra.mxu1 %v7964_v21  ;;  %v3798_v17 = vadd.f32 %v3752_v49, %v8069_v15  ;;  %v3799_v15 = vadd.f32 %v8132_v51, %v8074_v44 }
 0x459   : > { %v4453_v49 = vsel %vm1081_vm2, %v4450_v9, %v4452_v45 }
 0x45a   : > { %v4403_v59 = vadd.f32 %v8146_v0, %v4379_v16  ;;  %v3966_v23 = vadd.f32 %v3920_v57, %v3798_v17  ;;  %v3967_v42 = vadd.f32 %v3923_v12, %v3799_v15  ;;  %v5720_v16 = vld [vmem:[%s5880_s9 + $0x50] sm:$0xff] }
 0x45c   : > { %v4506_v46 = vadd.f32 %v4447_v43, %v4403_v59  ;;  %v4454_v43 = vrot.slane %v5720_v16, 2  ;;  %v5724_v16 = vld [vmem:[%s5880_s9 + $0x70] sm:$0xff] }
 0x45d   : > { %v4156_v29 = vpop.f32.mrf.mxu1  ;;  %v4336_v21 = vpop.f32.mrf.mxu2 }
 0x45e   : > { %4526 = vst [vmem:[%s8155_s7] sm:$0xff] %v4506_v46  ;;  %v4205_v27 = vadd.f32 %v4156_v29, %v3964_v28  ;;  %v3930_v2 = vpop.f32.mrf.mxu0  ;;  %v3800_v29 = vadd.f32 %v3757_v61, %v8077_v30  ;;  %v4455_v51 = vsel %vm1081_vm2, %v4452_v45, %v4454_v43  ;;  %v5723_v45 = vld [vmem:[%s5880_s9 + $0x68] sm:$0xff] }
 0x460   : > { %v4380_v31 = vadd.f32 %v4331_v26, %v4205_v27  ;;  %v3762_v26 = vpop.f32.mrf.mxu3  ;;  %v3968_v27 = vadd.f32 %v3925_v20, %v3800_v29 }
 0x462   : > { %v4404_v6 = vadd.f32 %v8146_v0, %v4380_v31  ;;  %v4456_v31 = vrot.slane %v5721_v19, 2 }
 0x464   : > { %v4507_v58 = vadd.f32 %v4449_v7, %v4404_v6  ;;  %v4457_v61 = vsel %vm1081_vm2, %v4454_v43, %v4456_v31  ;;  %v4462_v43 = vrot.slane %v5724_v16, 2 }
 0x465   : > { %v4159_v1 = vpop.f32.mrf.mxu1  ;;  %v4339_v37 = vpop.f32.mrf.mxu2 }
 0x466   : > { %4527 = vst [vmem:[%s8155_s7 + $0x8] sm:$0xff] %v4507_v58  ;;  %v4206_v54 = vadd.f32 %v4159_v1, %v3965_v34  ;;  %v3933_v12 = vpop.f32.mrf.mxu0  ;;  %v3801_v58 = vadd.f32 %v3760_v11, %v8082_v62 }
 0x468   : > { %v4381_v50 = vadd.f32 %v4334_v60, %v4206_v54  ;;  %4198 = vmatmul.bf16.gmra.mxu1 %v7974_v13  ;;  %v3765_v59 = vpop.f32.mrf.mxu3  ;;  %v3969_v9 = vadd.f32 %v3928_v32, %v3801_v58  ;;  %v5722_v54 = vld [vmem:[%s5880_s9 + $0x60] sm:$0xff] }
 0x46a   : > { %v4405_v39 = vadd.f32 %v8146_v0, %v4381_v50 }
 0x46c   : > { %v4508_v4 = vadd.f32 %v4451_v40, %v4405_v39  ;;  %v3802_v39 = vadd.f32 %v3762_v26, %v8085_v14 }
 0x46d   : > { %v4161_v36 = vpop.f32.mrf.mxu1  ;;  %v4341_v33 = vpop.f32.mrf.mxu2 }
 0x46e   : > { %4528 = vst [vmem:[%s8155_s7 + $0x10] sm:$0xff] %v4508_v4  ;;  %v4207_v53 = vadd.f32 %v4161_v36, %v3966_v23  ;;  %v3935_v40 = vpop.f32.mrf.mxu0  ;;  %v3970_v24 = vadd.f32 %v3930_v2, %v3802_v39 }
 0x470   : > { %v4382_v13 = vadd.f32 %v4336_v21, %v4207_v53  ;;  %v3767_v34 = vpop.f32.mrf.mxu3  ;;  %v4460_v53 = vrot.slane %v5723_v45, 2 }
 0x471   : > { %v3804_v29 = vadd.f32 %v3767_v34, %v8093_v8 }
 0x472   : > { %v4406_v25 = vadd.f32 %v8146_v0, %v4382_v13  ;;  %v3803_v13 = vadd.f32 %v3765_v59, %v8090_v41  ;;  %v4463_v59 = vsel %vm1081_vm2, %v4460_v53, %v4462_v43 }
 0x474   : > { %v4509_v60 = vadd.f32 %v4453_v49, %v4406_v25  ;;  %v3971_v2 = vadd.f32 %v3933_v12, %v3803_v13  ;;  %v5725_v12 = vld [vmem:[%s5880_s9 + $0x78] sm:$0xff] }
 0x475   : > { %v4164_v57 = vpop.f32.mrf.mxu1  ;;  %v4344_v28 = vpop.f32.mrf.mxu2 }
 0x476   : > { %4529 = vst [vmem:[%s8155_s7 + $0x18] sm:$0xff] %v4509_v60  ;;  %v4208_v46 = vadd.f32 %v4164_v57, %v3967_v42  ;;  %v3938_v14 = vpop.f32.mrf.mxu0 }
 0x478   : > { %v4383_v44 = vadd.f32 %v4339_v37, %v4208_v46  ;;  %v4458_v37 = vrot.slane %v5722_v54, 2  ;;  %v3770_v4 = vpop.f32.mrf.mxu3 }
 0x47a   : > { %v4407_v47 = vadd.f32 %v8146_v0, %v4383_v44  ;;  %v4459_v11 = vsel %vm1081_vm2, %v4456_v31, %v4458_v37  ;;  %v4461_v26 = vsel %vm1081_vm2, %v4458_v37, %v4460_v53 }
 0x47c   : > { %v4510_v22 = vadd.f32 %v4455_v51, %v4407_v47 }
 0x47d   : > { %v4166_v21 = vpop.f32.mrf.mxu1  ;;  %v4346_v6 = vpop.f32.mrf.mxu2 }
 0x47e   : > { %4530 = vst [vmem:[%s8155_s7 + $0x20] sm:$0xff] %v4510_v22  ;;  %v4209_v7 = vadd.f32 %v4166_v21, %v3968_v27  ;;  %v3940_v51 = vpop.f32.mrf.mxu0  ;;  %v3972_v22 = vadd.f32 %v3935_v40, %v3804_v29  ;;  %v4464_v21 = vrot.slane %v5725_v12, 2 }
 0x480   : > { %v4384_v30 = vadd.f32 %v4341_v33, %v4209_v7  ;;  %v3772_v60 = vpop.f32.mrf.mxu3  ;;  %v4465_v58 = vsel %vm1081_vm2, %v4462_v43, %v4464_v21 }
 0x481   : > { %v3806_v37 = vadd.f32 %v3772_v60, %v8101_v63 }
 0x482   : > { %v4408_v1 = vadd.f32 %v8146_v0, %v4384_v30 }
 0x484   : > { %v4511_v10 = vadd.f32 %v4457_v61, %v4408_v1 }
 0x485   : > { %v4169_v20 = vpop.f32.mrf.mxu1  ;;  %v4349_v50 = vpop.f32.mrf.mxu2 }
 0x486   : > { %4531 = vst [vmem:[%s8155_s7 + $0x28] sm:$0xff] %v4511_v10  ;;  %v4210_v17 = vadd.f32 %v4169_v20, %v3969_v9  ;;  %v3943_v1 = vpop.f32.mrf.mxu0  ;;  %v5726_v9 = vld [vmem:[%s5880_s9 + $0x80] sm:$0xff] }
 0x487   : > { %v4466_v20 = vrot.slane %v5726_v9, 2 }
 0x488   : > { %v4385_v62 = vadd.f32 %v4344_v28, %v4210_v17  ;;  %v3775_v19 = vpop.f32.mrf.mxu3 }
 0x489   : > { %v3807_v45 = vadd.f32 %v3775_v19, %v8106_v35 }
 0x48a   : > { %v4409_v23 = vadd.f32 %v8146_v0, %v4385_v62 }
 0x48c   : > { %v4512_v36 = vadd.f32 %v4459_v11, %v4409_v23  ;;  %v3974_v11 = vadd.f32 %v3940_v51, %v3806_v37  ;;  %v5727_v23 = vld [vmem:[%s5880_s9 + $0x88] sm:$0xff] }
 0x48d   : > { %v4171_v32 = vpop.f32.mrf.mxu1  ;;  %v4351_v15 = vpop.f32.mrf.mxu2 }
 0x48e   : > { %4532 = vst [vmem:[%s8155_s7 + $0x30] sm:$0xff] %v4512_v36  ;;  %v4211_v33 = vadd.f32 %v4171_v32, %v3970_v24  ;;  %v4468_v36 = vrot.slane %v5727_v23, 2  ;;  %v3945_v32 = vpop.f32.mrf.mxu0 }
 0x490   : > { %v4386_v49 = vadd.f32 %v4346_v6, %v4211_v33  ;;  %v3805_v6 = vadd.f32 %v3770_v4, %v8098_v52  ;;  %v3777_v17 = vpop.f32.mrf.mxu3  ;;  %v4467_v52 = vsel %vm1081_vm2, %v4464_v21, %v4466_v20  ;;  %v4469_v53 = vsel %vm1081_vm2, %v4466_v20, %v4468_v36 }
 0x492   : > { %v4410_v25 = vadd.f32 %v8146_v0, %v4386_v49  ;;  %v3973_v61 = vadd.f32 %v3938_v14, %v3805_v6  ;;  %v3975_v14 = vadd.f32 %v3943_v1, %v3807_v45  ;;  %v5730_v6 = vld [vmem:[%s5880_s9 + $0xa0] sm:$0xff] }
 0x494   : > { %v4513_v42 = vadd.f32 %v4461_v26, %v4410_v25  ;;  %v5728_v25 = vld [vmem:[%s5880_s9 + $0x90] sm:$0xff] }
 0x495   : > { %v4174_v57 = vpop.f32.mrf.mxu1  ;;  %v4354_v28 = vpop.f32.mrf.mxu2  ;;  %v4470_v60 = vrot.slane %v5728_v25, 2 }
 0x496   : > { %4533 = vst [vmem:[%s8155_s7 + $0x38] sm:$0xff] %v4513_v42  ;;  %v4212_v46 = vadd.f32 %v4174_v57, %v3971_v2  ;;  %v3808_v2 = vadd.f32 %v3777_v17, %v8109_v56  ;;  %v3948_v35 = vpop.f32.mrf.mxu0  ;;  %v5731_v17 = vld [vmem:[%s5880_s9 + $0xa8] sm:$0xff] }
 0x497   : > { %v4471_v16 = vsel %vm1081_vm2, %v4468_v36, %v4470_v60 }
 0x498   : > { %v4387_v41 = vadd.f32 %v4349_v50, %v4212_v46  ;;  %v3780_v33 = vpop.f32.mrf.mxu3  ;;  %v3976_v29 = vadd.f32 %v3945_v32, %v3808_v2  ;;  %v5732_v32 = vld [vmem:[%s5880_s9 + $0xb0] sm:$0xff] }
 0x499   : > { %v4478_v45 = vrot.slane %v5732_v32, 2 }
 0x49a   : > { %v4411_v44 = vadd.f32 %v8146_v0, %v4387_v41 }
 0x49c   : > { %v4514_v47 = vadd.f32 %v4463_v59, %v4411_v44  ;;  %v5729_v44 = vld [vmem:[%s5880_s9 + $0x98] sm:$0xff] }
 0x49d   : > { %v4176_v27 = vpop.f32.mrf.mxu1  ;;  %v4356_v7 = vpop.f32.mrf.mxu2  ;;  %v4472_v51 = vrot.slane %v5729_v44, 2 }
 0x49e   : > { %4534 = vst [vmem:[%s8155_s7 + $0x40] sm:$0xff] %v4514_v47  ;;  %v4213_v31 = vadd.f32 %v4176_v27, %v3972_v22  ;;  %v3809_v22 = vadd.f32 %v3780_v33, %v8114_v38  ;;  %v3950_v21 = vpop.f32.mrf.mxu0 }
 0x49f   : > { %v4473_v27 = vsel %vm1081_vm2, %v4470_v60, %v4472_v51 }
 0x4a0   : > { %v4388_v8 = vadd.f32 %v4351_v15, %v4213_v31  ;;  %v3782_v46 = vpop.f32.mrf.mxu3  ;;  %v3977_v31 = vadd.f32 %v3948_v35, %v3809_v22 }
 0x4a2   : > { %v4412_v34 = vadd.f32 %v8146_v0, %v4388_v8  ;;  %v4474_v8 = vrot.slane %v5730_v6, 2  ;;  %v5735_v6 = vld [vmem:[%s5880_s9 + $0xc8] sm:$0xff] }
 0x4a4   : > { %v4515_v30 = vadd.f32 %v4465_v58, %v4412_v34  ;;  %v4475_v1 = vsel %vm1081_vm2, %v4472_v51, %v4474_v8  ;;  %v5734_v51 = vld [vmem:[%s5880_s9 + $0xc0] sm:$0xff] }
 0x4a5   : > { %v4179_v10 = vpop.f32.mrf.mxu1  ;;  %v4359_v40 = vpop.f32.mrf.mxu2 }
 0x4a6   : > { %4535 = vst [vmem:[%s8155_s7 + $0x48] sm:$0xff] %v4515_v30  ;;  %v4214_v54 = vadd.f32 %v4179_v10, %v3973_v61  ;;  %v3810_v61 = vadd.f32 %v3782_v46, %v8117_v3 }
 0x4a8   : > { %v4389_v50 = vadd.f32 %v4354_v28, %v4214_v54  ;;  %v3785_v58 = vpop.f32.mrf.mxu3  ;;  %v3978_v20 = vadd.f32 %v3950_v21, %v3810_v61  ;;  %v3953_v54 = vpop.f32.mrf.mxu0 }
 0x4aa   : > { %v4413_v39 = vadd.f32 %v8146_v0, %v4389_v50  ;;  %v4476_v50 = vrot.slane %v5731_v17, 2 }
 0x4ac   : > { %v4516_v62 = vadd.f32 %v4467_v52, %v4413_v39 }
 0x4ad   : > { %v4181_v4 = vpop.f32.mrf.mxu1  ;;  %v4361_v13 = vpop.f32.mrf.mxu2 }
 0x4ae   : > { %4536 = vst [vmem:[%s8155_s7 + $0x50] sm:$0xff] %v4516_v62  ;;  %v4215_v24 = vadd.f32 %v4181_v4, %v3974_v11  ;;  %v4477_v11 = vsel %vm1081_vm2, %v4474_v8, %v4476_v50  ;;  %v4484_v8 = vrot.slane %v5735_v6, 2 }
 0x4b0   : > { %v4390_v63 = vadd.f32 %v4356_v7, %v4215_v24  ;;  %v3787_v39 = vpop.f32.mrf.mxu3 }
 0x4b1   : > { %v3812_v33 = vadd.f32 %v3787_v39, %v8125_v55 }
 0x4b2   : > { %v4414_v15 = vadd.f32 %v8146_v0, %v4390_v63 }
 0x4b4   : > { %v4517_v49 = vadd.f32 %v4469_v53, %v4414_v15  ;;  %v3955_v53 = vpop.f32.mrf.mxu0  ;;  %v4479_v15 = vsel %vm1081_vm2, %v4476_v50, %v4478_v45 }
 0x4b5   : > { %v4184_v26 = vpop.f32.mrf.mxu1  ;;  %v4364_v41 = vpop.f32.mrf.mxu2  ;;  %v3980_v25 = vadd.f32 %v3955_v53, %v3812_v33 }
 0x4b6   : > { %4537 = vst [vmem:[%s8155_s7 + $0x58] sm:$0xff] %v4517_v49  ;;  %v4216_v42 = vadd.f32 %v4184_v26, %v3975_v14 }
 0x4b8   : > { %v4391_v57 = vadd.f32 %v4359_v40, %v4216_v42  ;;  %v3811_v40 = vadd.f32 %v3785_v58, %v8122_v18  ;;  %v5733_v42 = vld [vmem:[%s5880_s9 + $0xb8] sm:$0xff] }
 0x4b9   : > { %v4480_v2 = vrot.slane %v5733_v42, 2 }
 0x4ba   : > { %v4415_v43 = vadd.f32 %v8146_v0, %v4391_v57  ;;  %v3979_v36 = vadd.f32 %v3953_v54, %v3811_v40 }
 0x4bc   : > { %v4518_v28 = vadd.f32 %v4471_v16, %v4415_v43  ;;  %v3958_v55 = vpop.f32.mrf.mxu0  ;;  %v4481_v43 = vsel %vm1081_vm2, %v4478_v45, %v4480_v2 }
 0x4bd   : > { %v4186_v59 = vpop.f32.mrf.mxu1  ;;  %v4366_v30 = vpop.f32.mrf.mxu2 }
 0x4be   : > { %4538 = vst [vmem:[%s8155_s7 + $0x60] sm:$0xff] %v4518_v28  ;;  %v4217_v47 = vadd.f32 %v4186_v59, %v3976_v29 }
 0x4c0   : > { %v4392_v56 = vadd.f32 %v4361_v13, %v4217_v47  ;;  %v3790_v13 = vpop.f32.mrf.mxu3  ;;  %v4482_v47 = vrot.slane %v5734_v51, 2 }
 0x4c1   : > { %v3813_v35 = vadd.f32 %v3790_v13, %v8130_v48 }
 0x4c2   : > { %v4416_v12 = vadd.f32 %v8146_v0, %v4392_v56  ;;  %v4485_v61 = vsel %vm1081_vm2, %v4482_v47, %v4484_v8 }
 0x4c4   : > { %v4519_v19 = vadd.f32 %v4473_v27, %v4416_v12  ;;  %v4483_v27 = vsel %vm1081_vm2, %v4480_v2, %v4482_v47  ;;  %v3960_v21 = vpop.f32.mrf.mxu0 }
 0x4c5   : > { %v4189_v7 = vpop.f32.mrf.mxu1  ;;  %v4369_v3 = vpop.f32.mrf.mxu2 }
 0x4c6   : > { %4539 = vst [vmem:[%s8155_s7 + $0x68] sm:$0xff] %v4519_v19  ;;  %v4218_v34 = vadd.f32 %v4189_v7, %v3977_v31 }
 0x4c8   : > { %v4393_v38 = vadd.f32 %v4364_v41, %v4218_v34  ;;  %v3792_v28 = vpop.f32.mrf.mxu3  ;;  %v3981_v41 = vadd.f32 %v3958_v55, %v3813_v35 }
 0x4c9   : > { %v3814_v56 = vadd.f32 %v3792_v28, %v8136_v5 }
 0x4ca   : > { %v4417_v10 = vadd.f32 %v8146_v0, %v4393_v38 }
 0x4cb   : > { %v3982_v31 = vadd.f32 %v3960_v21, %v3814_v56 }
 0x4cc   : > { %v4520_v9 = vadd.f32 %v4475_v1, %v4417_v10 }
 0x4cd   : > { %v4191_v37 = vpop.f32.mrf.mxu1  ;;  %v4371_v14 = vpop.f32.mrf.mxu2 }
 0x4ce   : > { %4540 = vst [vmem:[%s8155_s7 + $0x70] sm:$0xff] %v4520_v9  ;;  %v4219_v52 = vadd.f32 %v4191_v37, %v3978_v20 }
 0x4d0   : > { %v4394_v62 = vadd.f32 %v4366_v30, %v4219_v52 }
 0x4d2   : > { %v4418_v4 = vadd.f32 %v8146_v0, %v4394_v62 }
 0x4d4   : > { %v4521_v23 = vadd.f32 %v4477_v11, %v4418_v4 }
 0x4d5   : > { %v4194_v24 = vpop.f32.mrf.mxu1  ;;  %v4374_v59 = vpop.f32.mrf.mxu2 }
 0x4d6   : > { %4541 = vst [vmem:[%s8155_s7 + $0x78] sm:$0xff] %v4521_v23  ;;  %v4220_v63 = vadd.f32 %v4194_v24, %v3979_v36 }
 0x4d8   : > { %v4395_v18 = vadd.f32 %v4369_v3, %v4220_v63 }
 0x4da   : > { %v4419_v49 = vadd.f32 %v8146_v0, %v4395_v18 }
 0x4dc   : > { %v4522_v26 = vadd.f32 %v4479_v15, %v4419_v49 }
 0x4dd   : > { %v4196_v60 = vpop.f32.mrf.mxu1  ;;  %v4376_v34 = vpop.f32.mrf.mxu2 }
 0x4de   : > { %4542 = vst [vmem:[%s8155_s7 + $0x80] sm:$0xff] %v4522_v26  ;;  %v4221_v57 = vadd.f32 %v4196_v60, %v3980_v25 }
 0x4e0   : > { %v4396_v16 = vadd.f32 %v4371_v14, %v4221_v57 }
 0x4e2   : > { %v4420_v46 = vadd.f32 %v8146_v0, %v4396_v16 }
 0x4e4   : > { %v4523_v29 = vadd.f32 %v4481_v43, %v4420_v46 }
 0x4e5   : > { %v4199_v44 = vpop.f32.mrf.mxu1 }
 0x4e6   : > { %4543 = vst [vmem:[%s8155_s7 + $0x88] sm:$0xff] %v4523_v29  ;;  %v4222_v22 = vadd.f32 %v4199_v44, %v3981_v41 }
 0x4e8   : > { %v4397_v48 = vadd.f32 %v4374_v59, %v4222_v22 }
 0x4ea   : > { %v4421_v12 = vadd.f32 %v8146_v0, %v4397_v48 }
 0x4ec   : > { %v4524_v19 = vadd.f32 %v4483_v27, %v4421_v12 }
 0x4ed   : > { %v4201_v7 = vpop.f32.mrf.mxu1 }
 0x4ee   : > { %4544 = vst [vmem:[%s8155_s7 + $0x90] sm:$0xff] %v4524_v19  ;;  %v4223_v58 = vadd.f32 %v4201_v7, %v3982_v31 }
 0x4f0   : > { %v4398_v30 = vadd.f32 %v4376_v34, %v4223_v58 }
 0x4f2   : > { %v4422_v5 = vadd.f32 %v8146_v0, %v4398_v30 }
 0x4f4   : > { %v4525_v38 = vadd.f32 %v4485_v61, %v4422_v5 }
 0x4f6   : > { %4545 = vst [vmem:[%s8155_s7 + $0x98] sm:$0xff] %v4525_v38 }
 0x4f7 PF: > { %s16_s25 = sadd.s32 1, %s5774_s25   ;;  %s8476_s21 = smov %s5766_s23 }
 0x4f8   : > { %p13_p7 = scmp.ge.s32.totalorder %s16_s25, 6   ;;  %s8477_s22 = smov %s5770_s24 }
 0x4f9   : > { %s8478_s23 = smov %s8481_s26  ;;  %s8479_s24 = smov %s8485_s27 }
 0x4fa   :  { %15 = sbr.rel (!%p13_p7) target bundleno = 3 (0x3), region = 93 }

</bundles_post_ra>
